<compile_context>
chip_gen: v6e
topology: v6e:2x2x1
jax: 0.10.0
libtpu: 0.0.40
codegen_flags: <defaults>
</compile_context>

<pallas_src>
from functools import partial

import jax
import jax.numpy as jnp
from jax import lax
from jax.experimental import pallas as pl
from jax.experimental.pallas import tpu as pltpu

_EPS = 1e-6  # matches norm_layer=partial(nn.LayerNorm, eps=1e-06)


# ----------------------------- in-kernel helpers ----------------------------

def _ln(x, g, b, eps=_EPS):
    mu = jnp.mean(x, axis=-1, keepdims=True)
    var = jnp.mean(jnp.square(x - mu), axis=-1, keepdims=True)
    return (x - mu) * lax.rsqrt(var + eps) * g + b


def _gelu(x):
    # torch.nn.GELU default = exact erf formulation
    return 0.5 * x * (1.0 + lax.erf(x * 0.7071067811865476))


def _softmax(s):
    s = s - jnp.max(s, axis=-1, keepdims=True)
    p = jnp.exp(s)
    return p / jnp.sum(p, axis=-1, keepdims=True)       # exact division


def _mha(xq, xkv, wq, wk, wv, pw, bq=None, bk=None, bv=None):
    """Multi-head attention + output projection with head-major weights.

    wq/wk/wv: (H, D, d); pw: (H, d, Dout); optional biases (H, 1, d).
    Heads live on the leading (vreg-array) axis of the weights, so there is no
    lane-axis slicing of activations; the per-head output-projection partials
    are accumulated directly (concat-free).
    """
    H, _, d = wq.shape
    scale = d ** -0.5
    acc = None
    for h in range(H):
        q = jnp.dot(xq, wq[h], preferred_element_type=jnp.float32)
        k = jnp.dot(xkv, wk[h], preferred_element_type=jnp.float32)
        v = jnp.dot(xkv, wv[h], preferred_element_type=jnp.float32)
        if bq is not None:
            q = q + bq[h]
            k = k + bk[h]
            v = v + bv[h]
        s = lax.dot_general(q, k, (((1,), (1,)), ((), ())),
                            preferred_element_type=jnp.float32) * scale
        o = jnp.dot(_softmax(s), v, preferred_element_type=jnp.float32)
        c = jnp.dot(o, pw[h], preferred_element_type=jnp.float32)
        acc = c if acc is None else acc + c
    return acc


# ------------------------------- Pallas kernels ------------------------------

def _encoder_kernel(patches_ref, pos_ref, cls_ref, pw_ref, pb_ref,
                    ln1_g_ref, ln1_b_ref, wq_ref, wk_ref, wv_ref,
                    bq_ref, bk_ref, bv_ref, aw_ref, ab_ref,
                    ln2_g_ref, ln2_b_ref, fc1_w_ref, fc1_b_ref,
                    fc2_w_ref, fc2_b_ref, ng_ref, nb_ref, o_ref, *, eps):
    # grid = (batch, depth); depth innermost/"arbitrary", token stream carried
    # in o_ref (same output block index across the depth axis).
    l = pl.program_id(1)
    n_keep = patches_ref.shape[1]

    @pl.when(l == 0)
    def _():
        # fused patch-embed (+pos add) and cls-token prepend
        tok = (jnp.dot(patches_ref[0], pw_ref[...],
                       preferred_element_type=jnp.float32)
               + pb_ref[...] + pos_ref[0])
        o_ref[0, pl.ds(0, 1), :] = cls_ref[...]
        o_ref[0, pl.ds(1, n_keep), :] = tok

    x = o_ref[0]                                          # (n_keep + 1, D)
    # attention sub-block: LN1 -> MHA -> proj (+residual)
    h = _ln(x, ln1_g_ref[0], ln1_b_ref[0], eps)
    attn = _mha(h, h, wq_ref[0], wk_ref[0], wv_ref[0], aw_ref[0],
                bq_ref[0], bk_ref[0], bv_ref[0])
    x = x + attn + ab_ref[0]
    # MLP sub-block: LN2 -> fc1 -> GELU -> fc2 (+residual)
    h = _ln(x, ln2_g_ref[0], ln2_b_ref[0], eps)
    h = _gelu(jnp.dot(h, fc1_w_ref[0], preferred_element_type=jnp.float32)
              + fc1_b_ref[0])
    x = x + jnp.dot(h, fc2_w_ref[0], preferred_element_type=jnp.float32) + fc2_b_ref[0]
    o_ref[0] = x

    @pl.when(l == pl.num_programs(1) - 1)
    def _():
        o_ref[0] = _ln(x, ng_ref[...], nb_ref[...], eps)  # final encoder norm


def _cross_attn_kernel(x_ref, wq_ref, wk_ref, wv_ref, pw_ref, pb_ref,
                       cng_ref, cnb_ref, fng_ref, fnb_ref, o_ref, *, eps):
    # Queries are the raw [rgb; touch] tokens (== context before context_norm);
    # K/V use the fused context_norm; feat_norm fused on the output.
    x = x_ref[0]                                          # (2M, D)
    ctx = _ln(x, cng_ref[...], cnb_ref[...], eps)
    o = _mha(x, ctx, wq_ref[...], wk_ref[...], wv_ref[...], pw_ref[...]) + pb_ref[...]
    o_ref[0] = _ln(o, fng_ref[...], fnb_ref[...], eps)


def _tail_kernel(f1_ref, f2_ref, wq_ref, wk_ref, wv_ref, pw_ref, pb_ref,
                 fng_ref, fnb_ref, r1w_ref, r1b_ref, r2w_ref, r2b_ref,
                 o_ref, *, eps):
    x1 = f1_ref[0]
    x2 = f2_ref[0]
    D = x1.shape[-1]

    def cross(xq, xkv):
        return _mha(xq, xkv, wq_ref[...], wk_ref[...], wv_ref[...],
                    pw_ref[...]) + pb_ref[...]

    c1 = cross(x1, x2)                                    # unimodal CA 1->2
    c2 = cross(x2, x1)                                    # unimodal CA 2->1
    p1 = _ln(jnp.mean(c1, axis=0, keepdims=True), fng_ref[...], fnb_ref[...], eps)
    p2 = _ln(jnp.mean(c2, axis=0, keepdims=True), fng_ref[...], fnb_ref[...], eps)
    # regressor Linear(2D -> D): the feature concat is folded into two partial
    # matmuls against sublane-aligned row halves of reg_w1.
    h = (jnp.dot(p1, r1w_ref[pl.ds(0, D), :], preferred_element_type=jnp.float32)
         + jnp.dot(p2, r1w_ref[pl.ds(D, D), :], preferred_element_type=jnp.float32)
         + r1b_ref[...])
    h = _gelu(h)
    o_ref[0] = jnp.dot(h, r2w_ref[...],
                       preferred_element_type=jnp.float32) + r2b_ref[...]


# ------------------------------ kernel wrappers ------------------------------

def pallas_encoder(patches, pos, cls_embed, p, depth, eps=_EPS):
    """Fused patch-embed + cls prepend + all transformer blocks + final LN.

    grid = (batch, depth); per-layer weights are streamed along the depth axis
    and the token stream is carried in the output block.
    """
    B, Lk, P = patches.shape
    D = p['patch_w'].shape[1]
    Nseq = Lk + 1

    def per_batch(a):
        return pl.BlockSpec((1,) + a.shape[1:],
                            lambda b, l, nd=a.ndim: (b,) + (0,) * (nd - 1))

    def per_layer(a):
        return pl.BlockSpec((1,) + a.shape[1:],
                            lambda b, l, nd=a.ndim: (l,) + (0,) * (nd - 1))

    def const(a):
        return pl.BlockSpec(a.shape, lambda b, l, nd=a.ndim: (0,) * nd)

    layer = [p['ln1_g'], p['ln1_b'], p['wq'], p['wk'], p['wv'],
             p['bq'], p['bk'], p['bv'], p['attn_w'], p['attn_b'],
             p['ln2_g'], p['ln2_b'], p['fc1_w'], p['fc1_b'],
             p['fc2_w'], p['fc2_b']]
    consts = [p['norm_g'], p['norm_b']]

    return pl.pallas_call(
        partial(_encoder_kernel, eps=eps),
        out_shape=jax.ShapeDtypeStruct((B, Nseq, D), jnp.float32),
        grid=(B, depth),
        in_specs=([per_batch(patches), per_batch(pos), const(cls_embed),
                   const(p['patch_w']), const(p['patch_b'])]
                  + [per_layer(a) for a in layer]
                  + [const(a) for a in consts]),
        out_specs=pl.BlockSpec((1, Nseq, D), lambda b, l: (b, 0, 0)),
        compiler_params=pltpu.CompilerParams(
            dimension_semantics=("parallel", "arbitrary"),
            vmem_limit_bytes=32 * 1024 * 1024),
    )(patches, pos, cls_embed, p['patch_w'], p['patch_b'], *layer, *consts)


def pallas_cross_modal_attention(ctx_tokens, ca, ctx_norm, feat_norm, eps=_EPS):
    """One cross-attention call covering rgb+touch queries and both fusions."""
    B2, M2, D = ctx_tokens.shape
    consts = [ca['wq'], ca['wk'], ca['wv'], ca['proj_w'], ca['proj_b'],
              ctx_norm[0], ctx_norm[1], feat_norm[0], feat_norm[1]]

    def const(a):
        return pl.BlockSpec(a.shape, lambda i, nd=a.ndim: (0,) * nd)

    return pl.pallas_call(
        partial(_cross_attn_kernel, eps=eps),
        out_shape=jax.ShapeDtypeStruct((B2, M2, D), jnp.float32),
        grid=(B2,),
        in_specs=[pl.BlockSpec((1, M2, D), lambda i: (i, 0, 0))]
                 + [const(a) for a in consts],
        out_specs=pl.BlockSpec((1, M2, D), lambda i: (i, 0, 0)),
        compiler_params=pltpu.CompilerParams(dimension_semantics=("parallel",)),
    )(ctx_tokens, *consts)


def pallas_tail(f1, f2, ca, fc_norm, reg, feature_dim, eps=_EPS):
    """Both unimodal cross-attentions + mean-pool + fc_norm + regressor."""
    B, M, D = f1.shape
    consts = [ca['wq'], ca['wk'], ca['wv'], ca['proj_w'], ca['proj_b'],
              fc_norm[0], fc_norm[1], reg['w1'], reg['b1'], reg['w2'], reg['b2']]

    def const(a):
        return pl.BlockSpec(a.shape, lambda i, nd=a.ndim: (0,) * nd)

    out = pl.pallas_call(
        partial(_tail_kernel, eps=eps),
        out_shape=jax.ShapeDtypeStruct((B, 1, feature_dim), jnp.float32),
        grid=(B,),
        in_specs=[pl.BlockSpec((1, M, D), lambda i: (i, 0, 0)),
                  pl.BlockSpec((1, M, D), lambda i: (i, 0, 0))]
                 + [const(a) for a in consts],
        out_specs=pl.BlockSpec((1, 1, feature_dim), lambda i: (i, 0, 0)),
        compiler_params=pltpu.CompilerParams(dimension_semantics=("parallel",)),
    )(f1, f2, *consts)
    return out.reshape(B, feature_dim)


# ------------------------ parameter initialization --------------------------

def _normal(key, shape, std=0.02):
    return jax.random.normal(key, shape, jnp.float32) * std


def _split_heads_cols(w, num_heads):
    # nn.Linear weight (D_in, H*d) with per-head column blocks -> (H, D_in, d)
    din, dout = w.shape
    d = dout // num_heads
    return jnp.transpose(w.reshape(din, num_heads, d), (1, 0, 2))


def _split_heads_rows(w, num_heads):
    # output proj (H*d, D_out) with per-head row blocks -> (H, d, D_out)
    din, dout = w.shape
    d = din // num_heads
    return w.reshape(num_heads, d, dout)


def init_cross_attention(key, D, num_heads):
    k = jax.random.split(key, 4)
    return {  # qkv_bias=False -> no q/k/v biases
        'wq': _split_heads_cols(_normal(k[0], (D, D)), num_heads),
        'wk': _split_heads_cols(_normal(k[1], (D, D)), num_heads),
        'wv': _split_heads_cols(_normal(k[2], (D, D)), num_heads),
        'proj_w': _split_heads_rows(_normal(k[3], (D, D)), num_heads),
        'proj_b': jnp.zeros((1, D), jnp.float32),
    }


def init_encoder(key, in_chans, patch, num_patches, D, depth, num_heads, mlp_ratio):
    hidden = int(D * mlp_ratio)
    d = D // num_heads
    keys = jax.random.split(key, 3 + depth)

    def block(k):
        kk = jax.random.split(k, 6)
        return {
            'wq': _split_heads_cols(_normal(kk[0], (D, D)), num_heads),
            'wk': _split_heads_cols(_normal(kk[1], (D, D)), num_heads),
            'wv': _split_heads_cols(_normal(kk[2], (D, D)), num_heads),
            'attn_w': _split_heads_rows(_normal(kk[3], (D, D)), num_heads),
            'fc1_w': _normal(kk[4], (D, hidden)),
            'fc2_w': _normal(kk[5], (hidden, D)),
        }

    blocks = [block(keys[3 + i]) for i in range(depth)]
    stack = lambda name: jnp.stack([b[name] for b in blocks])
    return {
        'patch_w': _normal(keys[0], (in_chans * patch * patch, D)),
        'patch_b': jnp.zeros((1, D), jnp.float32),
        'cls_token': _normal(keys[1], (1, 1, D)),
        'pos_embed': _normal(keys[2], (1, num_patches + 1, D)),
        # per-layer params stacked on a leading depth axis (streamed over the
        # depth grid axis inside the single fused encoder kernel)
        'ln1_g': jnp.ones((depth, 1, D), jnp.float32),
        'ln1_b': jnp.zeros((depth, 1, D), jnp.float32),
        'wq': stack('wq'), 'wk': stack('wk'), 'wv': stack('wv'),
        'bq': jnp.zeros((depth, num_heads, 1, d), jnp.float32),
        'bk': jnp.zeros((depth, num_heads, 1, d), jnp.float32),
        'bv': jnp.zeros((depth, num_heads, 1, d), jnp.float32),
        'attn_w': stack('attn_w'),
        'attn_b': jnp.zeros((depth, 1, D), jnp.float32),
        'ln2_g': jnp.ones((depth, 1, D), jnp.float32),
        'ln2_b': jnp.zeros((depth, 1, D), jnp.float32),
        'fc1_w': stack('fc1_w'),
        'fc1_b': jnp.zeros((depth, 1, hidden), jnp.float32),
        'fc2_w': stack('fc2_w'),
        'fc2_b': jnp.zeros((depth, 1, D), jnp.float32),
        'norm_g': jnp.ones((1, D), jnp.float32),
        'norm_b': jnp.zeros((1, D), jnp.float32),
    }


def init_model(key, cfg):
    D = cfg['embed_dim']
    num_patches = (cfg['img_size'] // cfg['patch_size']) ** 2
    keys = jax.random.split(key, 6)
    return {
        'rgb_encoder': init_encoder(keys[0], cfg['in_chans'], cfg['patch_size'],
                                    num_patches, D, cfg['depth'],
                                    cfg['encoder_num_heads'], cfg['mlp_ratio']),
        'touch_encoder': init_encoder(keys[1], cfg['in_chans'], cfg['patch_size'],
                                      num_patches, D, cfg['depth'],
                                      cfg['encoder_num_heads'], cfg['mlp_ratio']),
        'cross_ca': init_cross_attention(keys[2], D, cfg['cross_num_heads']),
        'uni_ca': init_cross_attention(keys[3], D, cfg['cross_num_heads']),
        'context_norm_g': jnp.ones((1, D), jnp.float32),
        'context_norm_b': jnp.zeros((1, D), jnp.float32),
        'fc_norm_g': jnp.ones((1, D), jnp.float32),
        'fc_norm_b': jnp.zeros((1, D), jnp.float32),
        'feat_norm_g': jnp.ones((1, D), jnp.float32),
        'feat_norm_b': jnp.zeros((1, D), jnp.float32),
        'reg_w1': _normal(keys[4], (2 * D, D)),
        'reg_b1': jnp.zeros((1, D), jnp.float32),
        'reg_w2': _normal(keys[5], (D, cfg['feature_dim'])),
        'reg_b2': jnp.zeros((1, cfg['feature_dim']), jnp.float32),
    }


# ------------------------------- model glue ---------------------------------

def _patchify(img, patch):
    B, C, H, W = img.shape
    gh, gw = H // patch, W // patch
    x = img.reshape(B, C, gh, patch, gw, patch)
    return jnp.transpose(x, (0, 2, 4, 1, 3, 5)).reshape(B, gh * gw, C * patch * patch)


def _make_ids_keep(key, B, L, mask_ratio):
    # TODO(synk): argsort-based token shuffling has no clean Pallas equivalent;
    # it is tiny index glue and stays in plain JAX.
    len_keep = int(L * (1 - mask_ratio))
    noise = jax.random.uniform(key, (B, L))
    ids_shuffle = jnp.argsort(noise, axis=1)
    return ids_shuffle[:, :len_keep]


def multi_cross_mae_forward(params, rgb1, rgb2, touch1, touch2, mask_ratio, mask_key, cfg):
    B = rgb1.shape[0]
    patch = cfg['patch_size']
    D = cfg['embed_dim']
    L = (cfg['img_size'] // patch) ** 2

    # The torch module reuses the keep-mask generated in the first fusion pass
    # for touch1 and the entire second fusion pass, so one ids_keep drives all
    # four images -- which is what makes the batched encoder calls exact.
    ids_keep = _make_ids_keep(mask_key, B, L, mask_ratio)
    ids2 = jnp.concatenate([ids_keep, ids_keep], axis=0)           # (2B, len_keep)

    def encode(pe, img_a, img_b):
        # both fusion passes of one modality batched through one encoder call
        img = jnp.concatenate([img_a, img_b], axis=0)              # (2B, C, H, W)
        patches = _patchify(img, patch)
        patches_kept = jnp.take_along_axis(patches, ids2[:, :, None], axis=1)
        pos_kept = jnp.take(pe['pos_embed'][0, 1:, :], ids2, axis=0)
        cls_embed = (pe['cls_token'][0, 0] + pe['pos_embed'][0, 0]).reshape(1, D)
        out = pallas_encoder(patches_kept, pos_kept, cls_embed, pe, cfg['depth'])
        return out[:, 1:, :]                                       # remove class token

    rgb_lat = encode(params['rgb_encoder'], rgb1, rgb2)            # (2B, len_keep, D)
    touch_lat = encode(params['touch_encoder'], touch1, touch2)

    # crossmodal cross-attention (queries = raw concat tokens, K/V = normed
    # context, feat_norm fused); one call covers both modalities' queries and
    # both fusion passes.
    context = jnp.concatenate([rgb_lat, touch_lat], axis=1)        # (2B, 2*len_keep, D)
    fusion = pallas_cross_modal_attention(
        context, params['cross_ca'],
        (params['context_norm_g'], params['context_norm_b']),
        (params['feat_norm_g'], params['feat_norm_b']))
    f1, f2 = fusion[:B], fusion[B:]

    return pallas_tail(
        f1, f2, params['uni_ca'],
        (params['fc_norm_g'], params['fc_norm_b']),
        {'w1': params['reg_w1'], 'b1': params['reg_b1'],
         'w2': params['reg_w2'], 'b2': params['reg_b2']},
        cfg['feature_dim'])


# --------------------------------- main --------------------------------------

if __name__ == "__main__":
    cfg = dict(img_size=32, patch_size=8, in_chans=3, embed_dim=32, depth=2,
               encoder_num_heads=4, cross_num_heads=4, mlp_ratio=4.0, feature_dim=3)

    key = jax.random.PRNGKey(0)
    k_params, k_rgb1, k_rgb2, k_t1, k_t2, k_mask = jax.random.split(key, 6)
    params = init_model(k_params, cfg)

    img_shape = (2, cfg['in_chans'], cfg['img_size'], cfg['img_size'])
    rgb1 = jax.random.normal(k_rgb1, img_shape, jnp.float32)
    rgb2 = jax.random.normal(k_rgb2, img_shape, jnp.float32)
    touch1 = jax.random.normal(k_t1, img_shape, jnp.float32)
    touch2 = jax.random.normal(k_t2, img_shape, jnp.float32)

    fwd = jax.jit(lambda p, a, b, c, d, k: multi_cross_mae_forward(
        p, a, b, c, d, 0.75, k, cfg))
    pred = jax.block_until_ready(fwd(params, rgb1, rgb2, touch1, touch2, k_mask))

    assert pred.shape == (2, cfg['feature_dim']), pred.shape
    assert bool(jnp.all(jnp.isfinite(pred)))
    print("KERNEL_OK")
</pallas_src>

<mosaic_0001>
module attributes {stable_mosaic.version = 11 : i64} {
  func.func @_encoder_kernel(%arg0: i32, %arg1: i32, %arg2: memref<1x4x192xf32, #tpu.memory_space<vmem>>, %arg3: memref<1x4x32xf32, #tpu.memory_space<vmem>>, %arg4: memref<1x32xf32, #tpu.memory_space<vmem>>, %arg5: memref<192x32xf32, #tpu.memory_space<vmem>>, %arg6: memref<1x32xf32, #tpu.memory_space<vmem>>, %arg7: memref<1x1x32xf32, #tpu.memory_space<vmem>>, %arg8: memref<1x1x32xf32, #tpu.memory_space<vmem>>, %arg9: memref<1x4x32x8xf32, #tpu.memory_space<vmem>>, %arg10: memref<1x4x32x8xf32, #tpu.memory_space<vmem>>, %arg11: memref<1x4x32x8xf32, #tpu.memory_space<vmem>>, %arg12: memref<1x4x1x8xf32, #tpu.memory_space<vmem>>, %arg13: memref<1x4x1x8xf32, #tpu.memory_space<vmem>>, %arg14: memref<1x4x1x8xf32, #tpu.memory_space<vmem>>, %arg15: memref<1x4x8x32xf32, #tpu.memory_space<vmem>>, %arg16: memref<1x1x32xf32, #tpu.memory_space<vmem>>, %arg17: memref<1x1x32xf32, #tpu.memory_space<vmem>>, %arg18: memref<1x1x32xf32, #tpu.memory_space<vmem>>, %arg19: memref<1x32x128xf32, #tpu.memory_space<vmem>>, %arg20: memref<1x1x128xf32, #tpu.memory_space<vmem>>, %arg21: memref<1x128x32xf32, #tpu.memory_space<vmem>>, %arg22: memref<1x1x32xf32, #tpu.memory_space<vmem>>, %arg23: memref<1x32xf32, #tpu.memory_space<vmem>>, %arg24: memref<1x32xf32, #tpu.memory_space<vmem>>, %arg25: memref<1x5x32xf32, #tpu.memory_space<vmem>>) attributes {dimension_semantics = [#tpu.dimension_semantics<parallel>, #tpu.dimension_semantics<arbitrary>], iteration_bounds = array<i64: 4, 2>, scalar_prefetch = 0 : i64, scratch_operands = 0 : i64, tpu.core_type = #tpu.core_type<tc>, window_params = [{transform_indices = @transform_0, window_bounds = array<i64: 1, 4, 192>}, {transform_indices = @transform_1, window_bounds = array<i64: 1, 4, 32>}, {pipeline_mode = #tpu.pipeline_mode<synchronous>, transform_indices = @transform_2, window_bounds = array<i64: 1, 32>}, {pipeline_mode = #tpu.pipeline_mode<synchronous>, transform_indices = @transform_3, window_bounds = array<i64: 192, 32>}, {pipeline_mode = #tpu.pipeline_mode<synchronous>, transform_indices = @transform_4, window_bounds = array<i64: 1, 32>}, {transform_indices = @transform_5, window_bounds = array<i64: 1, 1, 32>}, {transform_indices = @transform_6, window_bounds = array<i64: 1, 1, 32>}, {transform_indices = @transform_7, window_bounds = array<i64: 1, 4, 32, 8>}, {transform_indices = @transform_8, window_bounds = array<i64: 1, 4, 32, 8>}, {transform_indices = @transform_9, window_bounds = array<i64: 1, 4, 32, 8>}, {transform_indices = @transform_10, window_bounds = array<i64: 1, 4, 1, 8>}, {transform_indices = @transform_11, window_bounds = array<i64: 1, 4, 1, 8>}, {transform_indices = @transform_12, window_bounds = array<i64: 1, 4, 1, 8>}, {transform_indices = @transform_13, window_bounds = array<i64: 1, 4, 8, 32>}, {transform_indices = @transform_14, window_bounds = array<i64: 1, 1, 32>}, {transform_indices = @transform_15, window_bounds = array<i64: 1, 1, 32>}, {transform_indices = @transform_16, window_bounds = array<i64: 1, 1, 32>}, {transform_indices = @transform_17, window_bounds = array<i64: 1, 32, 128>}, {transform_indices = @transform_18, window_bounds = array<i64: 1, 1, 128>}, {transform_indices = @transform_19, window_bounds = array<i64: 1, 128, 32>}, {transform_indices = @transform_20, window_bounds = array<i64: 1, 1, 32>}, {pipeline_mode = #tpu.pipeline_mode<synchronous>, transform_indices = @transform_21, window_bounds = array<i64: 1, 32>}, {pipeline_mode = #tpu.pipeline_mode<synchronous>, transform_indices = @transform_22, window_bounds = array<i64: 1, 32>}, {transform_indices = @transform_23, window_bounds = array<i64: 1, 5, 32>}]} {
    %c0_i32 = arith.constant 0 : i32
    %0 = arith.cmpi eq, %arg1, %c0_i32 : i32
    %1 = arith.extui %0 : i1 to i32
    %c0_i32_0 = arith.constant 0 : i32
    %2 = arith.cmpi ne, %1, %c0_i32_0 : i32
    scf.if %2 {
      %c0_112 = arith.constant 0 : index
      %c0_113 = arith.constant 0 : index
      %c0_114 = arith.constant 0 : index
      %256 = vector.load %arg2[%c0_112, %c0_113, %c0_114] : memref<1x4x192xf32, #tpu.memory_space<vmem>>, vector<1x4x192xf32>
      %257 = vector.shape_cast %256 : vector<1x4x192xf32> to vector<4x192xf32>
      %c0_115 = arith.constant 0 : index
      %c0_116 = arith.constant 0 : index
      %258 = vector.load %arg5[%c0_115, %c0_116] : memref<192x32xf32, #tpu.memory_space<vmem>>, vector<192x32xf32>
      %cst_117 = arith.constant dense<0.000000e+00> : vector<4x32xf32>
      %259 = tpu.matmul %257, %258, %cst_117 {dimension_numbers = #tpu.dot_dimension_numbers<[1], [0], [0], [1], [0, 0, 1, 1], [], []>} : vector<4x192xf32>, vector<192x32xf32>, vector<4x32xf32> -> vector<4x32xf32>
      %c0_118 = arith.constant 0 : index
      %c0_119 = arith.constant 0 : index
      %260 = vector.load %arg6[%c0_118, %c0_119] : memref<1x32xf32, #tpu.memory_space<vmem>>, vector<1x32xf32>
      %261 = vector.broadcast %260 : vector<1x32xf32> to vector<4x32xf32>
      %262 = arith.addf %259, %261 : vector<4x32xf32>
      %c0_120 = arith.constant 0 : index
      %c0_121 = arith.constant 0 : index
      %c0_122 = arith.constant 0 : index
      %263 = vector.load %arg3[%c0_120, %c0_121, %c0_122] : memref<1x4x32xf32, #tpu.memory_space<vmem>>, vector<1x4x32xf32>
      %264 = vector.shape_cast %263 : vector<1x4x32xf32> to vector<4x32xf32>
      %265 = arith.addf %262, %264 : vector<4x32xf32>
      %c0_123 = arith.constant 0 : index
      %c0_124 = arith.constant 0 : index
      %266 = vector.load %arg4[%c0_123, %c0_124] : memref<1x32xf32, #tpu.memory_space<vmem>>, vector<1x32xf32>
      %c0_125 = arith.constant 0 : index
      %c0_126 = arith.constant 0 : index
      %c0_127 = arith.constant 0 : index
      %267 = vector.load %arg25[%c0_125, %c0_126, %c0_127] : memref<1x5x32xf32, #tpu.memory_space<vmem>>, vector<1x1x32xf32>
      %268 = vector.shape_cast %267 : vector<1x1x32xf32> to vector<1x32xf32>
      %269 = vector.shape_cast %266 : vector<1x32xf32> to vector<1x1x32xf32>
      tpu.vector_store %arg25[%c0_125, %c0_126, %c0_127], %269 {strides = array<i32>} : memref<1x5x32xf32, #tpu.memory_space<vmem>>, vector<1x1x32xf32>,
      %c0_128 = arith.constant 0 : index
      %c1 = arith.constant 1 : index
      %c0_129 = arith.constant 0 : index
      %270 = vector.load %arg25[%c0_128, %c1, %c0_129] : memref<1x5x32xf32, #tpu.memory_space<vmem>>, vector<1x4x32xf32>
      %271 = vector.shape_cast %270 : vector<1x4x32xf32> to vector<4x32xf32>
      %272 = vector.shape_cast %265 : vector<4x32xf32> to vector<1x4x32xf32>
      tpu.vector_store %arg25[%c0_128, %c1, %c0_129], %272 {strides = array<i32>} : memref<1x5x32xf32, #tpu.memory_space<vmem>>, vector<1x4x32xf32>,
    } else {
    }
    %c0 = arith.constant 0 : index
    %c0_1 = arith.constant 0 : index
    %c0_2 = arith.constant 0 : index
    %3 = vector.load %arg25[%c0, %c0_1, %c0_2] : memref<1x5x32xf32, #tpu.memory_space<vmem>>, vector<1x5x32xf32>
    %4 = vector.shape_cast %3 : vector<1x5x32xf32> to vector<5x32xf32>
    %c0_3 = arith.constant 0 : index
    %c0_4 = arith.constant 0 : index
    %c0_5 = arith.constant 0 : index
    %5 = vector.load %arg7[%c0_3, %c0_4, %c0_5] : memref<1x1x32xf32, #tpu.memory_space<vmem>>, vector<1x1x32xf32>
    %6 = vector.shape_cast %5 : vector<1x1x32xf32> to vector<1x32xf32>
    %c0_6 = arith.constant 0 : index
    %c0_7 = arith.constant 0 : index
    %c0_8 = arith.constant 0 : index
    %7 = vector.load %arg8[%c0_6, %c0_7, %c0_8] : memref<1x1x32xf32, #tpu.memory_space<vmem>>, vector<1x1x32xf32>
    %8 = vector.shape_cast %7 : vector<1x1x32xf32> to vector<1x32xf32>
    %cst = arith.constant dense<0.000000e+00> : vector<5xf32>
    %9 = vector.multi_reduction <add>, %4, %cst [1] : vector<5x32xf32> to vector<5xf32>
    %10 = vector.shape_cast %9 : vector<5xf32> to vector<5x1xf32>
    %cst_9 = arith.constant 3.200000e+01 : f32
    %11 = vector.broadcast %cst_9 : f32 to vector<5x1xf32>
    %12 = arith.divf %10, %11 : vector<5x1xf32>
    %13 = vector.broadcast %12 : vector<5x1xf32> to vector<5x32xf32>
    %14 = arith.subf %4, %13 : vector<5x32xf32>
    %15 = arith.mulf %14, %14 : vector<5x32xf32>
    %cst_10 = arith.constant dense<0.000000e+00> : vector<5xf32>
    %16 = vector.multi_reduction <add>, %15, %cst_10 [1] : vector<5x32xf32> to vector<5xf32>
    %17 = vector.shape_cast %16 : vector<5xf32> to vector<5x1xf32>
    %cst_11 = arith.constant 3.200000e+01 : f32
    %18 = vector.broadcast %cst_11 : f32 to vector<5x1xf32>
    %19 = arith.divf %17, %18 : vector<5x1xf32>
    %20 = vector.broadcast %12 : vector<5x1xf32> to vector<5x32xf32>
    %21 = arith.subf %4, %20 : vector<5x32xf32>
    %cst_12 = arith.constant 9.99999997E-7 : f32
    %22 = vector.broadcast %cst_12 : f32 to vector<5x1xf32>
    %23 = arith.addf %19, %22 : vector<5x1xf32>
    %24 = math.rsqrt %23 : vector<5x1xf32>
    %25 = vector.broadcast %24 : vector<5x1xf32> to vector<5x32xf32>
    %26 = arith.mulf %21, %25 : vector<5x32xf32>
    %27 = vector.broadcast %6 : vector<1x32xf32> to vector<5x32xf32>
    %28 = arith.mulf %26, %27 : vector<5x32xf32>
    %29 = vector.broadcast %8 : vector<1x32xf32> to vector<5x32xf32>
    %30 = arith.addf %28, %29 : vector<5x32xf32>
    %c0_13 = arith.constant 0 : index
    %c0_14 = arith.constant 0 : index
    %c0_15 = arith.constant 0 : index
    %c0_16 = arith.constant 0 : index
    %31 = vector.load %arg9[%c0_13, %c0_14, %c0_15, %c0_16] : memref<1x4x32x8xf32, #tpu.memory_space<vmem>>, vector<1x4x32x8xf32>
    %32 = vector.shape_cast %31 : vector<1x4x32x8xf32> to vector<4x32x8xf32>
    %c0_17 = arith.constant 0 : index
    %c0_18 = arith.constant 0 : index
    %c0_19 = arith.constant 0 : index
    %c0_20 = arith.constant 0 : index
    %33 = vector.load %arg10[%c0_17, %c0_18, %c0_19, %c0_20] : memref<1x4x32x8xf32, #tpu.memory_space<vmem>>, vector<1x4x32x8xf32>
    %34 = vector.shape_cast %33 : vector<1x4x32x8xf32> to vector<4x32x8xf32>
    %c0_21 = arith.constant 0 : index
    %c0_22 = arith.constant 0 : index
    %c0_23 = arith.constant 0 : index
    %c0_24 = arith.constant 0 : index
    %35 = vector.load %arg11[%c0_21, %c0_22, %c0_23, %c0_24] : memref<1x4x32x8xf32, #tpu.memory_space<vmem>>, vector<1x4x32x8xf32>
    %36 = vector.shape_cast %35 : vector<1x4x32x8xf32> to vector<4x32x8xf32>
    %c0_25 = arith.constant 0 : index
    %c0_26 = arith.constant 0 : index
    %c0_27 = arith.constant 0 : index
    %c0_28 = arith.constant 0 : index
    %37 = vector.load %arg15[%c0_25, %c0_26, %c0_27, %c0_28] : memref<1x4x8x32xf32, #tpu.memory_space<vmem>>, vector<1x4x8x32xf32>
    %38 = vector.shape_cast %37 : vector<1x4x8x32xf32> to vector<4x8x32xf32>
    %c0_29 = arith.constant 0 : index
    %c0_30 = arith.constant 0 : index
    %c0_31 = arith.constant 0 : index
    %c0_32 = arith.constant 0 : index
    %39 = vector.load %arg12[%c0_29, %c0_30, %c0_31, %c0_32] : memref<1x4x1x8xf32, #tpu.memory_space<vmem>>, vector<1x4x1x8xf32>
    %40 = vector.shape_cast %39 : vector<1x4x1x8xf32> to vector<4x1x8xf32>
    %c0_33 = arith.constant 0 : index
    %c0_34 = arith.constant 0 : index
    %c0_35 = arith.constant 0 : index
    %c0_36 = arith.constant 0 : index
    %41 = vector.load %arg13[%c0_33, %c0_34, %c0_35, %c0_36] : memref<1x4x1x8xf32, #tpu.memory_space<vmem>>, vector<1x4x1x8xf32>
    %42 = vector.shape_cast %41 : vector<1x4x1x8xf32> to vector<4x1x8xf32>
    %c0_37 = arith.constant 0 : index
    %c0_38 = arith.constant 0 : index
    %c0_39 = arith.constant 0 : index
    %c0_40 = arith.constant 0 : index
    %43 = vector.load %arg14[%c0_37, %c0_38, %c0_39, %c0_40] : memref<1x4x1x8xf32, #tpu.memory_space<vmem>>, vector<1x4x1x8xf32>
    %44 = vector.shape_cast %43 : vector<1x4x1x8xf32> to vector<4x1x8xf32>
    %45 = vector.extract_strided_slice %32 {offsets = [0, 0, 0], sizes = [1, 32, 8], strides = [1, 1, 1]} : vector<4x32x8xf32> to vector<1x32x8xf32>
    %46 = vector.shape_cast %45 : vector<1x32x8xf32> to vector<32x8xf32>
    %cst_41 = arith.constant dense<0.000000e+00> : vector<5x8xf32>
    %47 = tpu.matmul %30, %46, %cst_41 {dimension_numbers = #tpu.dot_dimension_numbers<[1], [0], [0], [1], [0, 0, 1, 1], [], []>} : vector<5x32xf32>, vector<32x8xf32>, vector<5x8xf32> -> vector<5x8xf32>
    %48 = vector.extract_strided_slice %34 {offsets = [0, 0, 0], sizes = [1, 32, 8], strides = [1, 1, 1]} : vector<4x32x8xf32> to vector<1x32x8xf32>
    %49 = vector.shape_cast %48 : vector<1x32x8xf32> to vector<32x8xf32>
    %cst_42 = arith.constant dense<0.000000e+00> : vector<5x8xf32>
    %50 = tpu.matmul %30, %49, %cst_42 {dimension_numbers = #tpu.dot_dimension_numbers<[1], [0], [0], [1], [0, 0, 1, 1], [], []>} : vector<5x32xf32>, vector<32x8xf32>, vector<5x8xf32> -> vector<5x8xf32>
    %51 = vector.extract_strided_slice %36 {offsets = [0, 0, 0], sizes = [1, 32, 8], strides = [1, 1, 1]} : vector<4x32x8xf32> to vector<1x32x8xf32>
    %52 = vector.shape_cast %51 : vector<1x32x8xf32> to vector<32x8xf32>
    %cst_43 = arith.constant dense<0.000000e+00> : vector<5x8xf32>
    %53 = tpu.matmul %30, %52, %cst_43 {dimension_numbers = #tpu.dot_dimension_numbers<[1], [0], [0], [1], [0, 0, 1, 1], [], []>} : vector<5x32xf32>, vector<32x8xf32>, vector<5x8xf32> -> vector<5x8xf32>
    %54 = vector.extract_strided_slice %40 {offsets = [0, 0, 0], sizes = [1, 1, 8], strides = [1, 1, 1]} : vector<4x1x8xf32> to vector<1x1x8xf32>
    %55 = vector.shape_cast %54 : vector<1x1x8xf32> to vector<1x8xf32>
    %56 = vector.broadcast %55 : vector<1x8xf32> to vector<5x8xf32>
    %57 = arith.addf %47, %56 : vector<5x8xf32>
    %58 = vector.extract_strided_slice %42 {offsets = [0, 0, 0], sizes = [1, 1, 8], strides = [1, 1, 1]} : vector<4x1x8xf32> to vector<1x1x8xf32>
    %59 = vector.shape_cast %58 : vector<1x1x8xf32> to vector<1x8xf32>
    %60 = vector.broadcast %59 : vector<1x8xf32> to vector<5x8xf32>
    %61 = arith.addf %50, %60 : vector<5x8xf32>
    %62 = vector.extract_strided_slice %44 {offsets = [0, 0, 0], sizes = [1, 1, 8], strides = [1, 1, 1]} : vector<4x1x8xf32> to vector<1x1x8xf32>
    %63 = vector.shape_cast %62 : vector<1x1x8xf32> to vector<1x8xf32>
    %64 = vector.broadcast %63 : vector<1x8xf32> to vector<5x8xf32>
    %65 = arith.addf %53, %64 : vector<5x8xf32>
    %cst_44 = arith.constant dense<0.000000e+00> : vector<5x5xf32>
    %66 = tpu.matmul %57, %61, %cst_44 {dimension_numbers = #tpu.dot_dimension_numbers<[1], [1], [0], [0], [0, 0, 1, 0], [], []>} : vector<5x8xf32>, vector<5x8xf32>, vector<5x5xf32> -> vector<5x5xf32>
    %cst_45 = arith.constant 0.353553385 : f32
    %67 = vector.broadcast %cst_45 : f32 to vector<5x5xf32>
    %68 = arith.mulf %66, %67 : vector<5x5xf32>
    %cst_46 = arith.constant dense<0xFF800000> : vector<5xf32>
    %69 = vector.multi_reduction <maximumf>, %68, %cst_46 [1] : vector<5x5xf32> to vector<5xf32>
    %70 = vector.shape_cast %69 : vector<5xf32> to vector<5x1xf32>
    %71 = vector.broadcast %70 : vector<5x1xf32> to vector<5x5xf32>
    %72 = arith.subf %68, %71 : vector<5x5xf32>
    %73 = math.exp %72 : vector<5x5xf32>
    %cst_47 = arith.constant dense<0.000000e+00> : vector<5xf32>
    %74 = vector.multi_reduction <add>, %73, %cst_47 [1] : vector<5x5xf32> to vector<5xf32>
    %75 = vector.shape_cast %74 : vector<5xf32> to vector<5x1xf32>
    %76 = vector.broadcast %75 : vector<5x1xf32> to vector<5x5xf32>
    %77 = arith.divf %73, %76 : vector<5x5xf32>
    %cst_48 = arith.constant dense<0.000000e+00> : vector<5x8xf32>
    %78 = tpu.matmul %77, %65, %cst_48 {dimension_numbers = #tpu.dot_dimension_numbers<[1], [0], [0], [1], [0, 0, 1, 1], [], []>} : vector<5x5xf32>, vector<5x8xf32>, vector<5x8xf32> -> vector<5x8xf32>
    %79 = vector.extract_strided_slice %38 {offsets = [0, 0, 0], sizes = [1, 8, 32], strides = [1, 1, 1]} : vector<4x8x32xf32> to vector<1x8x32xf32>
    %80 = vector.shape_cast %79 : vector<1x8x32xf32> to vector<8x32xf32>
    %cst_49 = arith.constant dense<0.000000e+00> : vector<5x32xf32>
    %81 = tpu.matmul %78, %80, %cst_49 {dimension_numbers = #tpu.dot_dimension_numbers<[1], [0], [0], [1], [0, 0, 1, 1], [], []>} : vector<5x8xf32>, vector<8x32xf32>, vector<5x32xf32> -> vector<5x32xf32>
    %82 = vector.extract_strided_slice %32 {offsets = [1, 0, 0], sizes = [1, 32, 8], strides = [1, 1, 1]} : vector<4x32x8xf32> to vector<1x32x8xf32>
    %83 = vector.shape_cast %82 : vector<1x32x8xf32> to vector<32x8xf32>
    %cst_50 = arith.constant dense<0.000000e+00> : vector<5x8xf32>
    %84 = tpu.matmul %30, %83, %cst_50 {dimension_numbers = #tpu.dot_dimension_numbers<[1], [0], [0], [1], [0, 0, 1, 1], [], []>} : vector<5x32xf32>, vector<32x8xf32>, vector<5x8xf32> -> vector<5x8xf32>
    %85 = vector.extract_strided_slice %34 {offsets = [1, 0, 0], sizes = [1, 32, 8], strides = [1, 1, 1]} : vector<4x32x8xf32> to vector<1x32x8xf32>
    %86 = vector.shape_cast %85 : vector<1x32x8xf32> to vector<32x8xf32>
    %cst_51 = arith.constant dense<0.000000e+00> : vector<5x8xf32>
    %87 = tpu.matmul %30, %86, %cst_51 {dimension_numbers = #tpu.dot_dimension_numbers<[1], [0], [0], [1], [0, 0, 1, 1], [], []>} : vector<5x32xf32>, vector<32x8xf32>, vector<5x8xf32> -> vector<5x8xf32>
    %88 = vector.extract_strided_slice %36 {offsets = [1, 0, 0], sizes = [1, 32, 8], strides = [1, 1, 1]} : vector<4x32x8xf32> to vector<1x32x8xf32>
    %89 = vector.shape_cast %88 : vector<1x32x8xf32> to vector<32x8xf32>
    %cst_52 = arith.constant dense<0.000000e+00> : vector<5x8xf32>
    %90 = tpu.matmul %30, %89, %cst_52 {dimension_numbers = #tpu.dot_dimension_numbers<[1], [0], [0], [1], [0, 0, 1, 1], [], []>} : vector<5x32xf32>, vector<32x8xf32>, vector<5x8xf32> -> vector<5x8xf32>
    %91 = vector.extract_strided_slice %40 {offsets = [1, 0, 0], sizes = [1, 1, 8], strides = [1, 1, 1]} : vector<4x1x8xf32> to vector<1x1x8xf32>
    %92 = vector.shape_cast %91 : vector<1x1x8xf32> to vector<1x8xf32>
    %93 = vector.broadcast %92 : vector<1x8xf32> to vector<5x8xf32>
    %94 = arith.addf %84, %93 : vector<5x8xf32>
    %95 = vector.extract_strided_slice %42 {offsets = [1, 0, 0], sizes = [1, 1, 8], strides = [1, 1, 1]} : vector<4x1x8xf32> to vector<1x1x8xf32>
    %96 = vector.shape_cast %95 : vector<1x1x8xf32> to vector<1x8xf32>
    %97 = vector.broadcast %96 : vector<1x8xf32> to vector<5x8xf32>
    %98 = arith.addf %87, %97 : vector<5x8xf32>
    %99 = vector.extract_strided_slice %44 {offsets = [1, 0, 0], sizes = [1, 1, 8], strides = [1, 1, 1]} : vector<4x1x8xf32> to vector<1x1x8xf32>
    %100 = vector.shape_cast %99 : vector<1x1x8xf32> to vector<1x8xf32>
    %101 = vector.broadcast %100 : vector<1x8xf32> to vector<5x8xf32>
    %102 = arith.addf %90, %101 : vector<5x8xf32>
    %cst_53 = arith.constant dense<0.000000e+00> : vector<5x5xf32>
    %103 = tpu.matmul %94, %98, %cst_53 {dimension_numbers = #tpu.dot_dimension_numbers<[1], [1], [0], [0], [0, 0, 1, 0], [], []>} : vector<5x8xf32>, vector<5x8xf32>, vector<5x5xf32> -> vector<5x5xf32>
    %cst_54 = arith.constant 0.353553385 : f32
    %104 = vector.broadcast %cst_54 : f32 to vector<5x5xf32>
    %105 = arith.mulf %103, %104 : vector<5x5xf32>
    %cst_55 = arith.constant dense<0xFF800000> : vector<5xf32>
    %106 = vector.multi_reduction <maximumf>, %105, %cst_55 [1] : vector<5x5xf32> to vector<5xf32>
    %107 = vector.shape_cast %106 : vector<5xf32> to vector<5x1xf32>
    %108 = vector.broadcast %107 : vector<5x1xf32> to vector<5x5xf32>
    %109 = arith.subf %105, %108 : vector<5x5xf32>
    %110 = math.exp %109 : vector<5x5xf32>
    %cst_56 = arith.constant dense<0.000000e+00> : vector<5xf32>
    %111 = vector.multi_reduction <add>, %110, %cst_56 [1] : vector<5x5xf32> to vector<5xf32>
    %112 = vector.shape_cast %111 : vector<5xf32> to vector<5x1xf32>
    %113 = vector.broadcast %112 : vector<5x1xf32> to vector<5x5xf32>
    %114 = arith.divf %110, %113 : vector<5x5xf32>
    %cst_57 = arith.constant dense<0.000000e+00> : vector<5x8xf32>
    %115 = tpu.matmul %114, %102, %cst_57 {dimension_numbers = #tpu.dot_dimension_numbers<[1], [0], [0], [1], [0, 0, 1, 1], [], []>} : vector<5x5xf32>, vector<5x8xf32>, vector<5x8xf32> -> vector<5x8xf32>
    %116 = vector.extract_strided_slice %38 {offsets = [1, 0, 0], sizes = [1, 8, 32], strides = [1, 1, 1]} : vector<4x8x32xf32> to vector<1x8x32xf32>
    %117 = vector.shape_cast %116 : vector<1x8x32xf32> to vector<8x32xf32>
    %cst_58 = arith.constant dense<0.000000e+00> : vector<5x32xf32>
    %118 = tpu.matmul %115, %117, %cst_58 {dimension_numbers = #tpu.dot_dimension_numbers<[1], [0], [0], [1], [0, 0, 1, 1], [], []>} : vector<5x8xf32>, vector<8x32xf32>, vector<5x32xf32> -> vector<5x32xf32>
    %119 = arith.addf %81, %118 : vector<5x32xf32>
    %120 = vector.extract_strided_slice %32 {offsets = [2, 0, 0], sizes = [1, 32, 8], strides = [1, 1, 1]} : vector<4x32x8xf32> to vector<1x32x8xf32>
    %121 = vector.shape_cast %120 : vector<1x32x8xf32> to vector<32x8xf32>
    %cst_59 = arith.constant dense<0.000000e+00> : vector<5x8xf32>
    %122 = tpu.matmul %30, %121, %cst_59 {dimension_numbers = #tpu.dot_dimension_numbers<[1], [0], [0], [1], [0, 0, 1, 1], [], []>} : vector<5x32xf32>, vector<32x8xf32>, vector<5x8xf32> -> vector<5x8xf32>
    %123 = vector.extract_strided_slice %34 {offsets = [2, 0, 0], sizes = [1, 32, 8], strides = [1, 1, 1]} : vector<4x32x8xf32> to vector<1x32x8xf32>
    %124 = vector.shape_cast %123 : vector<1x32x8xf32> to vector<32x8xf32>
    %cst_60 = arith.constant dense<0.000000e+00> : vector<5x8xf32>
    %125 = tpu.matmul %30, %124, %cst_60 {dimension_numbers = #tpu.dot_dimension_numbers<[1], [0], [0], [1], [0, 0, 1, 1], [], []>} : vector<5x32xf32>, vector<32x8xf32>, vector<5x8xf32> -> vector<5x8xf32>
    %126 = vector.extract_strided_slice %36 {offsets = [2, 0, 0], sizes = [1, 32, 8], strides = [1, 1, 1]} : vector<4x32x8xf32> to vector<1x32x8xf32>
    %127 = vector.shape_cast %126 : vector<1x32x8xf32> to vector<32x8xf32>
    %cst_61 = arith.constant dense<0.000000e+00> : vector<5x8xf32>
    %128 = tpu.matmul %30, %127, %cst_61 {dimension_numbers = #tpu.dot_dimension_numbers<[1], [0], [0], [1], [0, 0, 1, 1], [], []>} : vector<5x32xf32>, vector<32x8xf32>, vector<5x8xf32> -> vector<5x8xf32>
    %129 = vector.extract_strided_slice %40 {offsets = [2, 0, 0], sizes = [1, 1, 8], strides = [1, 1, 1]} : vector<4x1x8xf32> to vector<1x1x8xf32>
    %130 = vector.shape_cast %129 : vector<1x1x8xf32> to vector<1x8xf32>
    %131 = vector.broadcast %130 : vector<1x8xf32> to vector<5x8xf32>
    %132 = arith.addf %122, %131 : vector<5x8xf32>
    %133 = vector.extract_strided_slice %42 {offsets = [2, 0, 0], sizes = [1, 1, 8], strides = [1, 1, 1]} : vector<4x1x8xf32> to vector<1x1x8xf32>
    %134 = vector.shape_cast %133 : vector<1x1x8xf32> to vector<1x8xf32>
    %135 = vector.broadcast %134 : vector<1x8xf32> to vector<5x8xf32>
    %136 = arith.addf %125, %135 : vector<5x8xf32>
    %137 = vector.extract_strided_slice %44 {offsets = [2, 0, 0], sizes = [1, 1, 8], strides = [1, 1, 1]} : vector<4x1x8xf32> to vector<1x1x8xf32>
    %138 = vector.shape_cast %137 : vector<1x1x8xf32> to vector<1x8xf32>
    %139 = vector.broadcast %138 : vector<1x8xf32> to vector<5x8xf32>
    %140 = arith.addf %128, %139 : vector<5x8xf32>
    %cst_62 = arith.constant dense<0.000000e+00> : vector<5x5xf32>
    %141 = tpu.matmul %132, %136, %cst_62 {dimension_numbers = #tpu.dot_dimension_numbers<[1], [1], [0], [0], [0, 0, 1, 0], [], []>} : vector<5x8xf32>, vector<5x8xf32>, vector<5x5xf32> -> vector<5x5xf32>
    %cst_63 = arith.constant 0.353553385 : f32
    %142 = vector.broadcast %cst_63 : f32 to vector<5x5xf32>
    %143 = arith.mulf %141, %142 : vector<5x5xf32>
    %cst_64 = arith.constant dense<0xFF800000> : vector<5xf32>
    %144 = vector.multi_reduction <maximumf>, %143, %cst_64 [1] : vector<5x5xf32> to vector<5xf32>
    %145 = vector.shape_cast %144 : vector<5xf32> to vector<5x1xf32>
    %146 = vector.broadcast %145 : vector<5x1xf32> to vector<5x5xf32>
    %147 = arith.subf %143, %146 : vector<5x5xf32>
    %148 = math.exp %147 : vector<5x5xf32>
    %cst_65 = arith.constant dense<0.000000e+00> : vector<5xf32>
    %149 = vector.multi_reduction <add>, %148, %cst_65 [1] : vector<5x5xf32> to vector<5xf32>
    %150 = vector.shape_cast %149 : vector<5xf32> to vector<5x1xf32>
    %151 = vector.broadcast %150 : vector<5x1xf32> to vector<5x5xf32>
    %152 = arith.divf %148, %151 : vector<5x5xf32>
    %cst_66 = arith.constant dense<0.000000e+00> : vector<5x8xf32>
    %153 = tpu.matmul %152, %140, %cst_66 {dimension_numbers = #tpu.dot_dimension_numbers<[1], [0], [0], [1], [0, 0, 1, 1], [], []>} : vector<5x5xf32>, vector<5x8xf32>, vector<5x8xf32> -> vector<5x8xf32>
    %154 = vector.extract_strided_slice %38 {offsets = [2, 0, 0], sizes = [1, 8, 32], strides = [1, 1, 1]} : vector<4x8x32xf32> to vector<1x8x32xf32>
    %155 = vector.shape_cast %154 : vector<1x8x32xf32> to vector<8x32xf32>
    %cst_67 = arith.constant dense<0.000000e+00> : vector<5x32xf32>
    %156 = tpu.matmul %153, %155, %cst_67 {dimension_numbers = #tpu.dot_dimension_numbers<[1], [0], [0], [1], [0, 0, 1, 1], [], []>} : vector<5x8xf32>, vector<8x32xf32>, vector<5x32xf32> -> vector<5x32xf32>
    %157 = arith.addf %119, %156 : vector<5x32xf32>
    %158 = vector.extract_strided_slice %32 {offsets = [3, 0, 0], sizes = [1, 32, 8], strides = [1, 1, 1]} : vector<4x32x8xf32> to vector<1x32x8xf32>
    %159 = vector.shape_cast %158 : vector<1x32x8xf32> to vector<32x8xf32>
    %cst_68 = arith.constant dense<0.000000e+00> : vector<5x8xf32>
    %160 = tpu.matmul %30, %159, %cst_68 {dimension_numbers = #tpu.dot_dimension_numbers<[1], [0], [0], [1], [0, 0, 1, 1], [], []>} : vector<5x32xf32>, vector<32x8xf32>, vector<5x8xf32> -> vector<5x8xf32>
    %161 = vector.extract_strided_slice %34 {offsets = [3, 0, 0], sizes = [1, 32, 8], strides = [1, 1, 1]} : vector<4x32x8xf32> to vector<1x32x8xf32>
    %162 = vector.shape_cast %161 : vector<1x32x8xf32> to vector<32x8xf32>
    %cst_69 = arith.constant dense<0.000000e+00> : vector<5x8xf32>
    %163 = tpu.matmul %30, %162, %cst_69 {dimension_numbers = #tpu.dot_dimension_numbers<[1], [0], [0], [1], [0, 0, 1, 1], [], []>} : vector<5x32xf32>, vector<32x8xf32>, vector<5x8xf32> -> vector<5x8xf32>
    %164 = vector.extract_strided_slice %36 {offsets = [3, 0, 0], sizes = [1, 32, 8], strides = [1, 1, 1]} : vector<4x32x8xf32> to vector<1x32x8xf32>
    %165 = vector.shape_cast %164 : vector<1x32x8xf32> to vector<32x8xf32>
    %cst_70 = arith.constant dense<0.000000e+00> : vector<5x8xf32>
    %166 = tpu.matmul %30, %165, %cst_70 {dimension_numbers = #tpu.dot_dimension_numbers<[1], [0], [0], [1], [0, 0, 1, 1], [], []>} : vector<5x32xf32>, vector<32x8xf32>, vector<5x8xf32> -> vector<5x8xf32>
    %167 = vector.extract_strided_slice %40 {offsets = [3, 0, 0], sizes = [1, 1, 8], strides = [1, 1, 1]} : vector<4x1x8xf32> to vector<1x1x8xf32>
    %168 = vector.shape_cast %167 : vector<1x1x8xf32> to vector<1x8xf32>
    %169 = vector.broadcast %168 : vector<1x8xf32> to vector<5x8xf32>
    %170 = arith.addf %160, %169 : vector<5x8xf32>
    %171 = vector.extract_strided_slice %42 {offsets = [3, 0, 0], sizes = [1, 1, 8], strides = [1, 1, 1]} : vector<4x1x8xf32> to vector<1x1x8xf32>
    %172 = vector.shape_cast %171 : vector<1x1x8xf32> to vector<1x8xf32>
    %173 = vector.broadcast %172 : vector<1x8xf32> to vector<5x8xf32>
    %174 = arith.addf %163, %173 : vector<5x8xf32>
    %175 = vector.extract_strided_slice %44 {offsets = [3, 0, 0], sizes = [1, 1, 8], strides = [1, 1, 1]} : vector<4x1x8xf32> to vector<1x1x8xf32>
    %176 = vector.shape_cast %175 : vector<1x1x8xf32> to vector<1x8xf32>
    %177 = vector.broadcast %176 : vector<1x8xf32> to vector<5x8xf32>
    %178 = arith.addf %166, %177 : vector<5x8xf32>
    %cst_71 = arith.constant dense<0.000000e+00> : vector<5x5xf32>
    %179 = tpu.matmul %170, %174, %cst_71 {dimension_numbers = #tpu.dot_dimension_numbers<[1], [1], [0], [0], [0, 0, 1, 0], [], []>} : vector<5x8xf32>, vector<5x8xf32>, vector<5x5xf32> -> vector<5x5xf32>
    %cst_72 = arith.constant 0.353553385 : f32
    %180 = vector.broadcast %cst_72 : f32 to vector<5x5xf32>
    %181 = arith.mulf %179, %180 : vector<5x5xf32>
    %cst_73 = arith.constant dense<0xFF800000> : vector<5xf32>
    %182 = vector.multi_reduction <maximumf>, %181, %cst_73 [1] : vector<5x5xf32> to vector<5xf32>
    %183 = vector.shape_cast %182 : vector<5xf32> to vector<5x1xf32>
    %184 = vector.broadcast %183 : vector<5x1xf32> to vector<5x5xf32>
    %185 = arith.subf %181, %184 : vector<5x5xf32>
    %186 = math.exp %185 : vector<5x5xf32>
    %cst_74 = arith.constant dense<0.000000e+00> : vector<5xf32>
    %187 = vector.multi_reduction <add>, %186, %cst_74 [1] : vector<5x5xf32> to vector<5xf32>
    %188 = vector.shape_cast %187 : vector<5xf32> to vector<5x1xf32>
    %189 = vector.broadcast %188 : vector<5x1xf32> to vector<5x5xf32>
    %190 = arith.divf %186, %189 : vector<5x5xf32>
    %cst_75 = arith.constant dense<0.000000e+00> : vector<5x8xf32>
    %191 = tpu.matmul %190, %178, %cst_75 {dimension_numbers = #tpu.dot_dimension_numbers<[1], [0], [0], [1], [0, 0, 1, 1], [], []>} : vector<5x5xf32>, vector<5x8xf32>, vector<5x8xf32> -> vector<5x8xf32>
    %192 = vector.extract_strided_slice %38 {offsets = [3, 0, 0], sizes = [1, 8, 32], strides = [1, 1, 1]} : vector<4x8x32xf32> to vector<1x8x32xf32>
    %193 = vector.shape_cast %192 : vector<1x8x32xf32> to vector<8x32xf32>
    %cst_76 = arith.constant dense<0.000000e+00> : vector<5x32xf32>
    %194 = tpu.matmul %191, %193, %cst_76 {dimension_numbers = #tpu.dot_dimension_numbers<[1], [0], [0], [1], [0, 0, 1, 1], [], []>} : vector<5x8xf32>, vector<8x32xf32>, vector<5x32xf32> -> vector<5x32xf32>
    %195 = arith.addf %157, %194 : vector<5x32xf32>
    %196 = arith.addf %4, %195 : vector<5x32xf32>
    %c0_77 = arith.constant 0 : index
    %c0_78 = arith.constant 0 : index
    %c0_79 = arith.constant 0 : index
    %197 = vector.load %arg16[%c0_77, %c0_78, %c0_79] : memref<1x1x32xf32, #tpu.memory_space<vmem>>, vector<1x1x32xf32>
    %198 = vector.shape_cast %197 : vector<1x1x32xf32> to vector<1x32xf32>
    %199 = vector.broadcast %198 : vector<1x32xf32> to vector<5x32xf32>
    %200 = arith.addf %196, %199 : vector<5x32xf32>
    %c0_80 = arith.constant 0 : index
    %c0_81 = arith.constant 0 : index
    %c0_82 = arith.constant 0 : index
    %201 = vector.load %arg17[%c0_80, %c0_81, %c0_82] : memref<1x1x32xf32, #tpu.memory_space<vmem>>, vector<1x1x32xf32>
    %202 = vector.shape_cast %201 : vector<1x1x32xf32> to vector<1x32xf32>
    %c0_83 = arith.constant 0 : index
    %c0_84 = arith.constant 0 : index
    %c0_85 = arith.constant 0 : index
    %203 = vector.load %arg18[%c0_83, %c0_84, %c0_85] : memref<1x1x32xf32, #tpu.memory_space<vmem>>, vector<1x1x32xf32>
    %204 = vector.shape_cast %203 : vector<1x1x32xf32> to vector<1x32xf32>
    %cst_86 = arith.constant dense<0.000000e+00> : vector<5xf32>
    %205 = vector.multi_reduction <add>, %200, %cst_86 [1] : vector<5x32xf32> to vector<5xf32>
    %206 = vector.shape_cast %205 : vector<5xf32> to vector<5x1xf32>
    %cst_87 = arith.constant 3.200000e+01 : f32
    %207 = vector.broadcast %cst_87 : f32 to vector<5x1xf32>
    %208 = arith.divf %206, %207 : vector<5x1xf32>
    %209 = vector.broadcast %208 : vector<5x1xf32> to vector<5x32xf32>
    %210 = arith.subf %200, %209 : vector<5x32xf32>
    %211 = arith.mulf %210, %210 : vector<5x32xf32>
    %cst_88 = arith.constant dense<0.000000e+00> : vector<5xf32>
    %212 = vector.multi_reduction <add>, %211, %cst_88 [1] : vector<5x32xf32> to vector<5xf32>
    %213 = vector.shape_cast %212 : vector<5xf32> to vector<5x1xf32>
    %cst_89 = arith.constant 3.200000e+01 : f32
    %214 = vector.broadcast %cst_89 : f32 to vector<5x1xf32>
    %215 = arith.divf %213, %214 : vector<5x1xf32>
    %216 = vector.broadcast %208 : vector<5x1xf32> to vector<5x32xf32>
    %217 = arith.subf %200, %216 : vector<5x32xf32>
    %cst_90 = arith.constant 9.99999997E-7 : f32
    %218 = vector.broadcast %cst_90 : f32 to vector<5x1xf32>
    %219 = arith.addf %215, %218 : vector<5x1xf32>
    %220 = math.rsqrt %219 : vector<5x1xf32>
    %221 = vector.broadcast %220 : vector<5x1xf32> to vector<5x32xf32>
    %222 = arith.mulf %217, %221 : vector<5x32xf32>
    %223 = vector.broadcast %202 : vector<1x32xf32> to vector<5x32xf32>
    %224 = arith.mulf %222, %223 : vector<5x32xf32>
    %225 = vector.broadcast %204 : vector<1x32xf32> to vector<5x32xf32>
    %226 = arith.addf %224, %225 : vector<5x32xf32>
    %c0_91 = arith.constant 0 : index
    %c0_92 = arith.constant 0 : index
    %c0_93 = arith.constant 0 : index
    %227 = vector.load %arg19[%c0_91, %c0_92, %c0_93] : memref<1x32x128xf32, #tpu.memory_space<vmem>>, vector<1x32x128xf32>
    %228 = vector.shape_cast %227 : vector<1x32x128xf32> to vector<32x128xf32>
    %cst_94 = arith.constant dense<0.000000e+00> : vector<5x128xf32>
    %229 = tpu.matmul %226, %228, %cst_94 {dimension_numbers = #tpu.dot_dimension_numbers<[1], [0], [0], [1], [0, 0, 1, 1], [], []>} : vector<5x32xf32>, vector<32x128xf32>, vector<5x128xf32> -> vector<5x128xf32>
    %c0_95 = arith.constant 0 : index
    %c0_96 = arith.constant 0 : index
    %c0_97 = arith.constant 0 : index
    %230 = vector.load %arg20[%c0_95, %c0_96, %c0_97] : memref<1x1x128xf32, #tpu.memory_space<vmem>>, vector<1x1x128xf32>
    %231 = vector.shape_cast %230 : vector<1x1x128xf32> to vector<1x128xf32>
    %232 = vector.broadcast %231 : vector<1x128xf32> to vector<5x128xf32>
    %233 = arith.addf %229, %232 : vector<5x128xf32>
    %cst_98 = arith.constant 5.000000e-01 : f32
    %234 = vector.broadcast %cst_98 : f32 to vector<5x128xf32>
    %235 = arith.mulf %234, %233 : vector<5x128xf32>
    %cst_99 = arith.constant 0.707106769 : f32
    %236 = vector.broadcast %cst_99 : f32 to vector<5x128xf32>
    %237 = arith.mulf %233, %236 : vector<5x128xf32>
    %238 = math.erf %237 : vector<5x128xf32>
    %cst_100 = arith.constant 1.000000e+00 : f32
    %239 = vector.broadcast %cst_100 : f32 to vector<5x128xf32>
    %240 = arith.addf %239, %238 : vector<5x128xf32>
    %241 = arith.mulf %235, %240 : vector<5x128xf32>
    %c0_101 = arith.constant 0 : index
    %c0_102 = arith.constant 0 : index
    %c0_103 = arith.constant 0 : index
    %242 = vector.load %arg21[%c0_101, %c0_102, %c0_103] : memref<1x128x32xf32, #tpu.memory_space<vmem>>, vector<1x128x32xf32>
    %243 = vector.shape_cast %242 : vector<1x128x32xf32> to vector<128x32xf32>
    %cst_104 = arith.constant dense<0.000000e+00> : vector<5x32xf32>
    %244 = tpu.matmul %241, %243, %cst_104 {dimension_numbers = #tpu.dot_dimension_numbers<[1], [0], [0], [1], [0, 0, 1, 1], [], []>} : vector<5x128xf32>, vector<128x32xf32>, vector<5x32xf32> -> vector<5x32xf32>
    %245 = arith.addf %200, %244 : vector<5x32xf32>
    %c0_105 = arith.constant 0 : index
    %c0_106 = arith.constant 0 : index
    %c0_107 = arith.constant 0 : index
    %246 = vector.load %arg22[%c0_105, %c0_106, %c0_107] : memref<1x1x32xf32, #tpu.memory_space<vmem>>, vector<1x1x32xf32>
    %247 = vector.shape_cast %246 : vector<1x1x32xf32> to vector<1x32xf32>
    %248 = vector.broadcast %247 : vector<1x32xf32> to vector<5x32xf32>
    %249 = arith.addf %245, %248 : vector<5x32xf32>
    %c0_108 = arith.constant 0 : index
    %c0_109 = arith.constant 0 : index
    %c0_110 = arith.constant 0 : index
    %250 = vector.load %arg25[%c0_108, %c0_109, %c0_110] : memref<1x5x32xf32, #tpu.memory_space<vmem>>, vector<1x5x32xf32>
    %251 = vector.shape_cast %250 : vector<1x5x32xf32> to vector<5x32xf32>
    %252 = vector.shape_cast %249 : vector<5x32xf32> to vector<1x5x32xf32>
    tpu.vector_store %arg25[%c0_108, %c0_109, %c0_110], %252 {strides = array<i32>} : memref<1x5x32xf32, #tpu.memory_space<vmem>>, vector<1x5x32xf32>,
    %c1_i32 = arith.constant 1 : i32
    %253 = arith.cmpi eq, %arg1, %c1_i32 : i32
    %254 = arith.extui %253 : i1 to i32
    %c0_i32_111 = arith.constant 0 : i32
    %255 = arith.cmpi ne, %254, %c0_i32_111 : i32
    scf.if %255 {
      %c0_112 = arith.constant 0 : index
      %c0_113 = arith.constant 0 : index
      %256 = vector.load %arg23[%c0_112, %c0_113] : memref<1x32xf32, #tpu.memory_space<vmem>>, vector<1x32xf32>
      %c0_114 = arith.constant 0 : index
      %c0_115 = arith.constant 0 : index
      %257 = vector.load %arg24[%c0_114, %c0_115] : memref<1x32xf32, #tpu.memory_space<vmem>>, vector<1x32xf32>
      %cst_116 = arith.constant dense<0.000000e+00> : vector<5xf32>
      %258 = vector.multi_reduction <add>, %249, %cst_116 [1] : vector<5x32xf32> to vector<5xf32>
      %259 = vector.shape_cast %258 : vector<5xf32> to vector<5x1xf32>
      %cst_117 = arith.constant 3.200000e+01 : f32
      %260 = vector.broadcast %cst_117 : f32 to vector<5x1xf32>
      %261 = arith.divf %259, %260 : vector<5x1xf32>
      %262 = vector.broadcast %261 : vector<5x1xf32> to vector<5x32xf32>
      %263 = arith.subf %249, %262 : vector<5x32xf32>
      %264 = arith.mulf %263, %263 : vector<5x32xf32>
      %cst_118 = arith.constant dense<0.000000e+00> : vector<5xf32>
      %265 = vector.multi_reduction <add>, %264, %cst_118 [1] : vector<5x32xf32> to vector<5xf32>
      %266 = vector.shape_cast %265 : vector<5xf32> to vector<5x1xf32>
      %cst_119 = arith.constant 3.200000e+01 : f32
      %267 = vector.broadcast %cst_119 : f32 to vector<5x1xf32>
      %268 = arith.divf %266, %267 : vector<5x1xf32>
      %269 = vector.broadcast %261 : vector<5x1xf32> to vector<5x32xf32>
      %270 = arith.subf %249, %269 : vector<5x32xf32>
      %cst_120 = arith.constant 9.99999997E-7 : f32
      %271 = vector.broadcast %cst_120 : f32 to vector<5x1xf32>
      %272 = arith.addf %268, %271 : vector<5x1xf32>
      %273 = math.rsqrt %272 : vector<5x1xf32>
      %274 = vector.broadcast %273 : vector<5x1xf32> to vector<5x32xf32>
      %275 = arith.mulf %270, %274 : vector<5x32xf32>
      %276 = vector.broadcast %256 : vector<1x32xf32> to vector<5x32xf32>
      %277 = arith.mulf %275, %276 : vector<5x32xf32>
      %278 = vector.broadcast %257 : vector<1x32xf32> to vector<5x32xf32>
      %279 = arith.addf %277, %278 : vector<5x32xf32>
      %c0_121 = arith.constant 0 : index
      %c0_122 = arith.constant 0 : index
      %c0_123 = arith.constant 0 : index
      %280 = vector.load %arg25[%c0_121, %c0_122, %c0_123] : memref<1x5x32xf32, #tpu.memory_space<vmem>>, vector<1x5x32xf32>
      %281 = vector.shape_cast %280 : vector<1x5x32xf32> to vector<5x32xf32>
      %282 = vector.shape_cast %279 : vector<5x32xf32> to vector<1x5x32xf32>
      tpu.vector_store %arg25[%c0_121, %c0_122, %c0_123], %282 {strides = array<i32>} : memref<1x5x32xf32, #tpu.memory_space<vmem>>, vector<1x5x32xf32>,
    } else {
    }
    return
  }
  func.func @transform_0(%arg0: i32, %arg1: i32) -> (i32, i32, i32) {
    %c0_i32 = arith.constant 0 : i32
    %c0_i32_0 = arith.constant 0 : i32
    %c0_i32_1 = arith.constant 0 : i32
    return %arg0, %c0_i32, %c0_i32_0 : i32, i32, i32
  }
  func.func @transform_1(%arg0: i32, %arg1: i32) -> (i32, i32, i32) {
    %c0_i32 = arith.constant 0 : i32
    %c0_i32_0 = arith.constant 0 : i32
    %c0_i32_1 = arith.constant 0 : i32
    return %arg0, %c0_i32, %c0_i32_0 : i32, i32, i32
  }
  func.func @transform_2(%arg0: i32, %arg1: i32) -> (i32, i32) {
    %c0_i32 = arith.constant 0 : i32
    %c0_i32_0 = arith.constant 0 : i32
    %c0_i32_1 = arith.constant 0 : i32
    return %c0_i32, %c0_i32_0 : i32, i32
  }
  func.func @transform_3(%arg0: i32, %arg1: i32) -> (i32, i32) {
    %c0_i32 = arith.constant 0 : i32
    %c0_i32_0 = arith.constant 0 : i32
    %c0_i32_1 = arith.constant 0 : i32
    return %c0_i32, %c0_i32_0 : i32, i32
  }
  func.func @transform_4(%arg0: i32, %arg1: i32) -> (i32, i32) {
    %c0_i32 = arith.constant 0 : i32
    %c0_i32_0 = arith.constant 0 : i32
    %c0_i32_1 = arith.constant 0 : i32
    return %c0_i32, %c0_i32_0 : i32, i32
  }
  func.func @transform_5(%arg0: i32, %arg1: i32) -> (i32, i32, i32) {
    %c0_i32 = arith.constant 0 : i32
    %c0_i32_0 = arith.constant 0 : i32
    %c0_i32_1 = arith.constant 0 : i32
    return %arg1, %c0_i32, %c0_i32_0 : i32, i32, i32
  }
  func.func @transform_6(%arg0: i32, %arg1: i32) -> (i32, i32, i32) {
    %c0_i32 = arith.constant 0 : i32
    %c0_i32_0 = arith.constant 0 : i32
    %c0_i32_1 = arith.constant 0 : i32
    return %arg1, %c0_i32, %c0_i32_0 : i32, i32, i32
  }
  func.func @transform_7(%arg0: i32, %arg1: i32) -> (i32, i32, i32, i32) {
    %c0_i32 = arith.constant 0 : i32
    %c0_i32_0 = arith.constant 0 : i32
    %c0_i32_1 = arith.constant 0 : i32
    %c0_i32_2 = arith.constant 0 : i32
    return %arg1, %c0_i32, %c0_i32_0, %c0_i32_1 : i32, i32, i32, i32
  }
  func.func @transform_8(%arg0: i32, %arg1: i32) -> (i32, i32, i32, i32) {
    %c0_i32 = arith.constant 0 : i32
    %c0_i32_0 = arith.constant 0 : i32
    %c0_i32_1 = arith.constant 0 : i32
    %c0_i32_2 = arith.constant 0 : i32
    return %arg1, %c0_i32, %c0_i32_0, %c0_i32_1 : i32, i32, i32, i32
  }
  func.func @transform_9(%arg0: i32, %arg1: i32) -> (i32, i32, i32, i32) {
    %c0_i32 = arith.constant 0 : i32
    %c0_i32_0 = arith.constant 0 : i32
    %c0_i32_1 = arith.constant 0 : i32
    %c0_i32_2 = arith.constant 0 : i32
    return %arg1, %c0_i32, %c0_i32_0, %c0_i32_1 : i32, i32, i32, i32
  }
  func.func @transform_10(%arg0: i32, %arg1: i32) -> (i32, i32, i32, i32) {
    %c0_i32 = arith.constant 0 : i32
    %c0_i32_0 = arith.constant 0 : i32
    %c0_i32_1 = arith.constant 0 : i32
    %c0_i32_2 = arith.constant 0 : i32
    return %arg1, %c0_i32, %c0_i32_0, %c0_i32_1 : i32, i32, i32, i32
  }
  func.func @transform_11(%arg0: i32, %arg1: i32) -> (i32, i32, i32, i32) {
    %c0_i32 = arith.constant 0 : i32
    %c0_i32_0 = arith.constant 0 : i32
    %c0_i32_1 = arith.constant 0 : i32
    %c0_i32_2 = arith.constant 0 : i32
    return %arg1, %c0_i32, %c0_i32_0, %c0_i32_1 : i32, i32, i32, i32
  }
  func.func @transform_12(%arg0: i32, %arg1: i32) -> (i32, i32, i32, i32) {
    %c0_i32 = arith.constant 0 : i32
    %c0_i32_0 = arith.constant 0 : i32
    %c0_i32_1 = arith.constant 0 : i32
    %c0_i32_2 = arith.constant 0 : i32
    return %arg1, %c0_i32, %c0_i32_0, %c0_i32_1 : i32, i32, i32, i32
  }
  func.func @transform_13(%arg0: i32, %arg1: i32) -> (i32, i32, i32, i32) {
    %c0_i32 = arith.constant 0 : i32
    %c0_i32_0 = arith.constant 0 : i32
    %c0_i32_1 = arith.constant 0 : i32
    %c0_i32_2 = arith.constant 0 : i32
    return %arg1, %c0_i32, %c0_i32_0, %c0_i32_1 : i32, i32, i32, i32
  }
  func.func @transform_14(%arg0: i32, %arg1: i32) -> (i32, i32, i32) {
    %c0_i32 = arith.constant 0 : i32
    %c0_i32_0 = arith.constant 0 : i32
    %c0_i32_1 = arith.constant 0 : i32
    return %arg1, %c0_i32, %c0_i32_0 : i32, i32, i32
  }
  func.func @transform_15(%arg0: i32, %arg1: i32) -> (i32, i32, i32) {
    %c0_i32 = arith.constant 0 : i32
    %c0_i32_0 = arith.constant 0 : i32
    %c0_i32_1 = arith.constant 0 : i32
    return %arg1, %c0_i32, %c0_i32_0 : i32, i32, i32
  }
  func.func @transform_16(%arg0: i32, %arg1: i32) -> (i32, i32, i32) {
    %c0_i32 = arith.constant 0 : i32
    %c0_i32_0 = arith.constant 0 : i32
    %c0_i32_1 = arith.constant 0 : i32
    return %arg1, %c0_i32, %c0_i32_0 : i32, i32, i32
  }
  func.func @transform_17(%arg0: i32, %arg1: i32) -> (i32, i32, i32) {
    %c0_i32 = arith.constant 0 : i32
    %c0_i32_0 = arith.constant 0 : i32
    %c0_i32_1 = arith.constant 0 : i32
    return %arg1, %c0_i32, %c0_i32_0 : i32, i32, i32
  }
  func.func @transform_18(%arg0: i32, %arg1: i32) -> (i32, i32, i32) {
    %c0_i32 = arith.constant 0 : i32
    %c0_i32_0 = arith.constant 0 : i32
    %c0_i32_1 = arith.constant 0 : i32
    return %arg1, %c0_i32, %c0_i32_0 : i32, i32, i32
  }
  func.func @transform_19(%arg0: i32, %arg1: i32) -> (i32, i32, i32) {
    %c0_i32 = arith.constant 0 : i32
    %c0_i32_0 = arith.constant 0 : i32
    %c0_i32_1 = arith.constant 0 : i32
    return %arg1, %c0_i32, %c0_i32_0 : i32, i32, i32
  }
  func.func @transform_20(%arg0: i32, %arg1: i32) -> (i32, i32, i32) {
    %c0_i32 = arith.constant 0 : i32
    %c0_i32_0 = arith.constant 0 : i32
    %c0_i32_1 = arith.constant 0 : i32
    return %arg1, %c0_i32, %c0_i32_0 : i32, i32, i32
  }
  func.func @transform_21(%arg0: i32, %arg1: i32) -> (i32, i32) {
    %c0_i32 = arith.constant 0 : i32
    %c0_i32_0 = arith.constant 0 : i32
    %c0_i32_1 = arith.constant 0 : i32
    return %c0_i32, %c0_i32_0 : i32, i32
  }
  func.func @transform_22(%arg0: i32, %arg1: i32) -> (i32, i32) {
    %c0_i32 = arith.constant 0 : i32
    %c0_i32_0 = arith.constant 0 : i32
    %c0_i32_1 = arith.constant 0 : i32
    return %c0_i32, %c0_i32_0 : i32, i32
  }
  func.func @transform_23(%arg0: i32, %arg1: i32) -> (i32, i32, i32) {
    %c0_i32 = arith.constant 0 : i32
    %c0_i32_0 = arith.constant 0 : i32
    %c0_i32_1 = arith.constant 0 : i32
    return %arg0, %c0_i32, %c0_i32_0 : i32, i32, i32
  }
}

module attributes {stable_mosaic.version = 11 : i64} {
  func.func @_cross_attn_kernel(%arg0: i32, %arg1: memref<1x8x32xf32, #tpu.memory_space<vmem>>, %arg2: memref<4x32x8xf32, #tpu.memory_space<vmem>>, %arg3: memref<4x32x8xf32, #tpu.memory_space<vmem>>, %arg4: memref<4x32x8xf32, #tpu.memory_space<vmem>>, %arg5: memref<4x8x32xf32, #tpu.memory_space<vmem>>, %arg6: memref<1x32xf32, #tpu.memory_space<vmem>>, %arg7: memref<1x32xf32, #tpu.memory_space<vmem>>, %arg8: memref<1x32xf32, #tpu.memory_space<vmem>>, %arg9: memref<1x32xf32, #tpu.memory_space<vmem>>, %arg10: memref<1x32xf32, #tpu.memory_space<vmem>>, %arg11: memref<1x8x32xf32, #tpu.memory_space<vmem>>) attributes {dimension_semantics = [#tpu.dimension_semantics<parallel>], iteration_bounds = array<i64: 4>, scalar_prefetch = 0 : i64, scratch_operands = 0 : i64, tpu.core_type = #tpu.core_type<tc>, window_params = [{transform_indices = @transform_0, window_bounds = array<i64: 1, 8, 32>}, {pipeline_mode = #tpu.pipeline_mode<synchronous>, transform_indices = @transform_1, window_bounds = array<i64: 4, 32, 8>}, {pipeline_mode = #tpu.pipeline_mode<synchronous>, transform_indices = @transform_2, window_bounds = array<i64: 4, 32, 8>}, {pipeline_mode = #tpu.pipeline_mode<synchronous>, transform_indices = @transform_3, window_bounds = array<i64: 4, 32, 8>}, {pipeline_mode = #tpu.pipeline_mode<synchronous>, transform_indices = @transform_4, window_bounds = array<i64: 4, 8, 32>}, {pipeline_mode = #tpu.pipeline_mode<synchronous>, transform_indices = @transform_5, window_bounds = array<i64: 1, 32>}, {pipeline_mode = #tpu.pipeline_mode<synchronous>, transform_indices = @transform_6, window_bounds = array<i64: 1, 32>}, {pipeline_mode = #tpu.pipeline_mode<synchronous>, transform_indices = @transform_7, window_bounds = array<i64: 1, 32>}, {pipeline_mode = #tpu.pipeline_mode<synchronous>, transform_indices = @transform_8, window_bounds = array<i64: 1, 32>}, {pipeline_mode = #tpu.pipeline_mode<synchronous>, transform_indices = @transform_9, window_bounds = array<i64: 1, 32>}, {transform_indices = @transform_10, window_bounds = array<i64: 1, 8, 32>}]} {
    %c0 = arith.constant 0 : index
    %c0_0 = arith.constant 0 : index
    %c0_1 = arith.constant 0 : index
    %0 = vector.load %arg1[%c0, %c0_0, %c0_1] : memref<1x8x32xf32, #tpu.memory_space<vmem>>, vector<1x8x32xf32>
    %1 = vector.shape_cast %0 : vector<1x8x32xf32> to vector<8x32xf32>
    %c0_2 = arith.constant 0 : index
    %c0_3 = arith.constant 0 : index
    %2 = vector.load %arg7[%c0_2, %c0_3] : memref<1x32xf32, #tpu.memory_space<vmem>>, vector<1x32xf32>
    %c0_4 = arith.constant 0 : index
    %c0_5 = arith.constant 0 : index
    %3 = vector.load %arg8[%c0_4, %c0_5] : memref<1x32xf32, #tpu.memory_space<vmem>>, vector<1x32xf32>
    %cst = arith.constant dense<0.000000e+00> : vector<8xf32>
    %4 = vector.multi_reduction <add>, %1, %cst [1] : vector<8x32xf32> to vector<8xf32>
    %5 = vector.shape_cast %4 : vector<8xf32> to vector<8x1xf32>
    %cst_6 = arith.constant 3.200000e+01 : f32
    %6 = vector.broadcast %cst_6 : f32 to vector<8x1xf32>
    %7 = arith.divf %5, %6 : vector<8x1xf32>
    %8 = vector.broadcast %7 : vector<8x1xf32> to vector<8x32xf32>
    %9 = arith.subf %1, %8 : vector<8x32xf32>
    %10 = arith.mulf %9, %9 : vector<8x32xf32>
    %cst_7 = arith.constant dense<0.000000e+00> : vector<8xf32>
    %11 = vector.multi_reduction <add>, %10, %cst_7 [1] : vector<8x32xf32> to vector<8xf32>
    %12 = vector.shape_cast %11 : vector<8xf32> to vector<8x1xf32>
    %cst_8 = arith.constant 3.200000e+01 : f32
    %13 = vector.broadcast %cst_8 : f32 to vector<8x1xf32>
    %14 = arith.divf %12, %13 : vector<8x1xf32>
    %15 = vector.broadcast %7 : vector<8x1xf32> to vector<8x32xf32>
    %16 = arith.subf %1, %15 : vector<8x32xf32>
    %cst_9 = arith.constant 9.99999997E-7 : f32
    %17 = vector.broadcast %cst_9 : f32 to vector<8x1xf32>
    %18 = arith.addf %14, %17 : vector<8x1xf32>
    %19 = math.rsqrt %18 : vector<8x1xf32>
    %20 = vector.broadcast %19 : vector<8x1xf32> to vector<8x32xf32>
    %21 = arith.mulf %16, %20 : vector<8x32xf32>
    %22 = vector.broadcast %2 : vector<1x32xf32> to vector<8x32xf32>
    %23 = arith.mulf %21, %22 : vector<8x32xf32>
    %24 = vector.broadcast %3 : vector<1x32xf32> to vector<8x32xf32>
    %25 = arith.addf %23, %24 : vector<8x32xf32>
    %c0_10 = arith.constant 0 : index
    %c0_11 = arith.constant 0 : index
    %c0_12 = arith.constant 0 : index
    %26 = vector.load %arg2[%c0_10, %c0_11, %c0_12] : memref<4x32x8xf32, #tpu.memory_space<vmem>>, vector<4x32x8xf32>
    %c0_13 = arith.constant 0 : index
    %c0_14 = arith.constant 0 : index
    %c0_15 = arith.constant 0 : index
    %27 = vector.load %arg3[%c0_13, %c0_14, %c0_15] : memref<4x32x8xf32, #tpu.memory_space<vmem>>, vector<4x32x8xf32>
    %c0_16 = arith.constant 0 : index
    %c0_17 = arith.constant 0 : index
    %c0_18 = arith.constant 0 : index
    %28 = vector.load %arg4[%c0_16, %c0_17, %c0_18] : memref<4x32x8xf32, #tpu.memory_space<vmem>>, vector<4x32x8xf32>
    %c0_19 = arith.constant 0 : index
    %c0_20 = arith.constant 0 : index
    %c0_21 = arith.constant 0 : index
    %29 = vector.load %arg5[%c0_19, %c0_20, %c0_21] : memref<4x8x32xf32, #tpu.memory_space<vmem>>, vector<4x8x32xf32>
    %30 = vector.extract_strided_slice %26 {offsets = [0, 0, 0], sizes = [1, 32, 8], strides = [1, 1, 1]} : vector<4x32x8xf32> to vector<1x32x8xf32>
    %31 = vector.shape_cast %30 : vector<1x32x8xf32> to vector<32x8xf32>
    %cst_22 = arith.constant dense<0.000000e+00> : vector<8x8xf32>
    %32 = tpu.matmul %1, %31, %cst_22 {dimension_numbers = #tpu.dot_dimension_numbers<[1], [0], [0], [1], [0, 0, 1, 1], [], []>} : vector<8x32xf32>, vector<32x8xf32>, vector<8x8xf32> -> vector<8x8xf32>
    %33 = vector.extract_strided_slice %27 {offsets = [0, 0, 0], sizes = [1, 32, 8], strides = [1, 1, 1]} : vector<4x32x8xf32> to vector<1x32x8xf32>
    %34 = vector.shape_cast %33 : vector<1x32x8xf32> to vector<32x8xf32>
    %cst_23 = arith.constant dense<0.000000e+00> : vector<8x8xf32>
    %35 = tpu.matmul %25, %34, %cst_23 {dimension_numbers = #tpu.dot_dimension_numbers<[1], [0], [0], [1], [0, 0, 1, 1], [], []>} : vector<8x32xf32>, vector<32x8xf32>, vector<8x8xf32> -> vector<8x8xf32>
    %36 = vector.extract_strided_slice %28 {offsets = [0, 0, 0], sizes = [1, 32, 8], strides = [1, 1, 1]} : vector<4x32x8xf32> to vector<1x32x8xf32>
    %37 = vector.shape_cast %36 : vector<1x32x8xf32> to vector<32x8xf32>
    %cst_24 = arith.constant dense<0.000000e+00> : vector<8x8xf32>
    %38 = tpu.matmul %25, %37, %cst_24 {dimension_numbers = #tpu.dot_dimension_numbers<[1], [0], [0], [1], [0, 0, 1, 1], [], []>} : vector<8x32xf32>, vector<32x8xf32>, vector<8x8xf32> -> vector<8x8xf32>
    %cst_25 = arith.constant dense<0.000000e+00> : vector<8x8xf32>
    %39 = tpu.matmul %32, %35, %cst_25 {dimension_numbers = #tpu.dot_dimension_numbers<[1], [1], [0], [0], [0, 0, 1, 0], [], []>} : vector<8x8xf32>, vector<8x8xf32>, vector<8x8xf32> -> vector<8x8xf32>
    %cst_26 = arith.constant 0.353553385 : f32
    %40 = vector.broadcast %cst_26 : f32 to vector<8x8xf32>
    %41 = arith.mulf %39, %40 : vector<8x8xf32>
    %cst_27 = arith.constant dense<0xFF800000> : vector<8xf32>
    %42 = vector.multi_reduction <maximumf>, %41, %cst_27 [1] : vector<8x8xf32> to vector<8xf32>
    %43 = vector.shape_cast %42 : vector<8xf32> to vector<8x1xf32>
    %44 = vector.broadcast %43 : vector<8x1xf32> to vector<8x8xf32>
    %45 = arith.subf %41, %44 : vector<8x8xf32>
    %46 = math.exp %45 : vector<8x8xf32>
    %cst_28 = arith.constant dense<0.000000e+00> : vector<8xf32>
    %47 = vector.multi_reduction <add>, %46, %cst_28 [1] : vector<8x8xf32> to vector<8xf32>
    %48 = vector.shape_cast %47 : vector<8xf32> to vector<8x1xf32>
    %49 = vector.broadcast %48 : vector<8x1xf32> to vector<8x8xf32>
    %50 = arith.divf %46, %49 : vector<8x8xf32>
    %cst_29 = arith.constant dense<0.000000e+00> : vector<8x8xf32>
    %51 = tpu.matmul %50, %38, %cst_29 {dimension_numbers = #tpu.dot_dimension_numbers<[1], [0], [0], [1], [0, 0, 1, 1], [], []>} : vector<8x8xf32>, vector<8x8xf32>, vector<8x8xf32> -> vector<8x8xf32>
    %52 = vector.extract_strided_slice %29 {offsets = [0, 0, 0], sizes = [1, 8, 32], strides = [1, 1, 1]} : vector<4x8x32xf32> to vector<1x8x32xf32>
    %53 = vector.shape_cast %52 : vector<1x8x32xf32> to vector<8x32xf32>
    %cst_30 = arith.constant dense<0.000000e+00> : vector<8x32xf32>
    %54 = tpu.matmul %51, %53, %cst_30 {dimension_numbers = #tpu.dot_dimension_numbers<[1], [0], [0], [1], [0, 0, 1, 1], [], []>} : vector<8x8xf32>, vector<8x32xf32>, vector<8x32xf32> -> vector<8x32xf32>
    %55 = vector.extract_strided_slice %26 {offsets = [1, 0, 0], sizes = [1, 32, 8], strides = [1, 1, 1]} : vector<4x32x8xf32> to vector<1x32x8xf32>
    %56 = vector.shape_cast %55 : vector<1x32x8xf32> to vector<32x8xf32>
    %cst_31 = arith.constant dense<0.000000e+00> : vector<8x8xf32>
    %57 = tpu.matmul %1, %56, %cst_31 {dimension_numbers = #tpu.dot_dimension_numbers<[1], [0], [0], [1], [0, 0, 1, 1], [], []>} : vector<8x32xf32>, vector<32x8xf32>, vector<8x8xf32> -> vector<8x8xf32>
    %58 = vector.extract_strided_slice %27 {offsets = [1, 0, 0], sizes = [1, 32, 8], strides = [1, 1, 1]} : vector<4x32x8xf32> to vector<1x32x8xf32>
    %59 = vector.shape_cast %58 : vector<1x32x8xf32> to vector<32x8xf32>
    %cst_32 = arith.constant dense<0.000000e+00> : vector<8x8xf32>
    %60 = tpu.matmul %25, %59, %cst_32 {dimension_numbers = #tpu.dot_dimension_numbers<[1], [0], [0], [1], [0, 0, 1, 1], [], []>} : vector<8x32xf32>, vector<32x8xf32>, vector<8x8xf32> -> vector<8x8xf32>
    %61 = vector.extract_strided_slice %28 {offsets = [1, 0, 0], sizes = [1, 32, 8], strides = [1, 1, 1]} : vector<4x32x8xf32> to vector<1x32x8xf32>
    %62 = vector.shape_cast %61 : vector<1x32x8xf32> to vector<32x8xf32>
    %cst_33 = arith.constant dense<0.000000e+00> : vector<8x8xf32>
    %63 = tpu.matmul %25, %62, %cst_33 {dimension_numbers = #tpu.dot_dimension_numbers<[1], [0], [0], [1], [0, 0, 1, 1], [], []>} : vector<8x32xf32>, vector<32x8xf32>, vector<8x8xf32> -> vector<8x8xf32>
    %cst_34 = arith.constant dense<0.000000e+00> : vector<8x8xf32>
    %64 = tpu.matmul %57, %60, %cst_34 {dimension_numbers = #tpu.dot_dimension_numbers<[1], [1], [0], [0], [0, 0, 1, 0], [], []>} : vector<8x8xf32>, vector<8x8xf32>, vector<8x8xf32> -> vector<8x8xf32>
    %cst_35 = arith.constant 0.353553385 : f32
    %65 = vector.broadcast %cst_35 : f32 to vector<8x8xf32>
    %66 = arith.mulf %64, %65 : vector<8x8xf32>
    %cst_36 = arith.constant dense<0xFF800000> : vector<8xf32>
    %67 = vector.multi_reduction <maximumf>, %66, %cst_36 [1] : vector<8x8xf32> to vector<8xf32>
    %68 = vector.shape_cast %67 : vector<8xf32> to vector<8x1xf32>
    %69 = vector.broadcast %68 : vector<8x1xf32> to vector<8x8xf32>
    %70 = arith.subf %66, %69 : vector<8x8xf32>
    %71 = math.exp %70 : vector<8x8xf32>
    %cst_37 = arith.constant dense<0.000000e+00> : vector<8xf32>
    %72 = vector.multi_reduction <add>, %71, %cst_37 [1] : vector<8x8xf32> to vector<8xf32>
    %73 = vector.shape_cast %72 : vector<8xf32> to vector<8x1xf32>
    %74 = vector.broadcast %73 : vector<8x1xf32> to vector<8x8xf32>
    %75 = arith.divf %71, %74 : vector<8x8xf32>
    %cst_38 = arith.constant dense<0.000000e+00> : vector<8x8xf32>
    %76 = tpu.matmul %75, %63, %cst_38 {dimension_numbers = #tpu.dot_dimension_numbers<[1], [0], [0], [1], [0, 0, 1, 1], [], []>} : vector<8x8xf32>, vector<8x8xf32>, vector<8x8xf32> -> vector<8x8xf32>
    %77 = vector.extract_strided_slice %29 {offsets = [1, 0, 0], sizes = [1, 8, 32], strides = [1, 1, 1]} : vector<4x8x32xf32> to vector<1x8x32xf32>
    %78 = vector.shape_cast %77 : vector<1x8x32xf32> to vector<8x32xf32>
    %cst_39 = arith.constant dense<0.000000e+00> : vector<8x32xf32>
    %79 = tpu.matmul %76, %78, %cst_39 {dimension_numbers = #tpu.dot_dimension_numbers<[1], [0], [0], [1], [0, 0, 1, 1], [], []>} : vector<8x8xf32>, vector<8x32xf32>, vector<8x32xf32> -> vector<8x32xf32>
    %80 = arith.addf %54, %79 : vector<8x32xf32>
    %81 = vector.extract_strided_slice %26 {offsets = [2, 0, 0], sizes = [1, 32, 8], strides = [1, 1, 1]} : vector<4x32x8xf32> to vector<1x32x8xf32>
    %82 = vector.shape_cast %81 : vector<1x32x8xf32> to vector<32x8xf32>
    %cst_40 = arith.constant dense<0.000000e+00> : vector<8x8xf32>
    %83 = tpu.matmul %1, %82, %cst_40 {dimension_numbers = #tpu.dot_dimension_numbers<[1], [0], [0], [1], [0, 0, 1, 1], [], []>} : vector<8x32xf32>, vector<32x8xf32>, vector<8x8xf32> -> vector<8x8xf32>
    %84 = vector.extract_strided_slice %27 {offsets = [2, 0, 0], sizes = [1, 32, 8], strides = [1, 1, 1]} : vector<4x32x8xf32> to vector<1x32x8xf32>
    %85 = vector.shape_cast %84 : vector<1x32x8xf32> to vector<32x8xf32>
    %cst_41 = arith.constant dense<0.000000e+00> : vector<8x8xf32>
    %86 = tpu.matmul %25, %85, %cst_41 {dimension_numbers = #tpu.dot_dimension_numbers<[1], [0], [0], [1], [0, 0, 1, 1], [], []>} : vector<8x32xf32>, vector<32x8xf32>, vector<8x8xf32> -> vector<8x8xf32>
    %87 = vector.extract_strided_slice %28 {offsets = [2, 0, 0], sizes = [1, 32, 8], strides = [1, 1, 1]} : vector<4x32x8xf32> to vector<1x32x8xf32>
    %88 = vector.shape_cast %87 : vector<1x32x8xf32> to vector<32x8xf32>
    %cst_42 = arith.constant dense<0.000000e+00> : vector<8x8xf32>
    %89 = tpu.matmul %25, %88, %cst_42 {dimension_numbers = #tpu.dot_dimension_numbers<[1], [0], [0], [1], [0, 0, 1, 1], [], []>} : vector<8x32xf32>, vector<32x8xf32>, vector<8x8xf32> -> vector<8x8xf32>
    %cst_43 = arith.constant dense<0.000000e+00> : vector<8x8xf32>
    %90 = tpu.matmul %83, %86, %cst_43 {dimension_numbers = #tpu.dot_dimension_numbers<[1], [1], [0], [0], [0, 0, 1, 0], [], []>} : vector<8x8xf32>, vector<8x8xf32>, vector<8x8xf32> -> vector<8x8xf32>
    %cst_44 = arith.constant 0.353553385 : f32
    %91 = vector.broadcast %cst_44 : f32 to vector<8x8xf32>
    %92 = arith.mulf %90, %91 : vector<8x8xf32>
    %cst_45 = arith.constant dense<0xFF800000> : vector<8xf32>
    %93 = vector.multi_reduction <maximumf>, %92, %cst_45 [1] : vector<8x8xf32> to vector<8xf32>
    %94 = vector.shape_cast %93 : vector<8xf32> to vector<8x1xf32>
    %95 = vector.broadcast %94 : vector<8x1xf32> to vector<8x8xf32>
    %96 = arith.subf %92, %95 : vector<8x8xf32>
    %97 = math.exp %96 : vector<8x8xf32>
    %cst_46 = arith.constant dense<0.000000e+00> : vector<8xf32>
    %98 = vector.multi_reduction <add>, %97, %cst_46 [1] : vector<8x8xf32> to vector<8xf32>
    %99 = vector.shape_cast %98 : vector<8xf32> to vector<8x1xf32>
    %100 = vector.broadcast %99 : vector<8x1xf32> to vector<8x8xf32>
    %101 = arith.divf %97, %100 : vector<8x8xf32>
    %cst_47 = arith.constant dense<0.000000e+00> : vector<8x8xf32>
    %102 = tpu.matmul %101, %89, %cst_47 {dimension_numbers = #tpu.dot_dimension_numbers<[1], [0], [0], [1], [0, 0, 1, 1], [], []>} : vector<8x8xf32>, vector<8x8xf32>, vector<8x8xf32> -> vector<8x8xf32>
    %103 = vector.extract_strided_slice %29 {offsets = [2, 0, 0], sizes = [1, 8, 32], strides = [1, 1, 1]} : vector<4x8x32xf32> to vector<1x8x32xf32>
    %104 = vector.shape_cast %103 : vector<1x8x32xf32> to vector<8x32xf32>
    %cst_48 = arith.constant dense<0.000000e+00> : vector<8x32xf32>
    %105 = tpu.matmul %102, %104, %cst_48 {dimension_numbers = #tpu.dot_dimension_numbers<[1], [0], [0], [1], [0, 0, 1, 1], [], []>} : vector<8x8xf32>, vector<8x32xf32>, vector<8x32xf32> -> vector<8x32xf32>
    %106 = arith.addf %80, %105 : vector<8x32xf32>
    %107 = vector.extract_strided_slice %26 {offsets = [3, 0, 0], sizes = [1, 32, 8], strides = [1, 1, 1]} : vector<4x32x8xf32> to vector<1x32x8xf32>
    %108 = vector.shape_cast %107 : vector<1x32x8xf32> to vector<32x8xf32>
    %cst_49 = arith.constant dense<0.000000e+00> : vector<8x8xf32>
    %109 = tpu.matmul %1, %108, %cst_49 {dimension_numbers = #tpu.dot_dimension_numbers<[1], [0], [0], [1], [0, 0, 1, 1], [], []>} : vector<8x32xf32>, vector<32x8xf32>, vector<8x8xf32> -> vector<8x8xf32>
    %110 = vector.extract_strided_slice %27 {offsets = [3, 0, 0], sizes = [1, 32, 8], strides = [1, 1, 1]} : vector<4x32x8xf32> to vector<1x32x8xf32>
    %111 = vector.shape_cast %110 : vector<1x32x8xf32> to vector<32x8xf32>
    %cst_50 = arith.constant dense<0.000000e+00> : vector<8x8xf32>
    %112 = tpu.matmul %25, %111, %cst_50 {dimension_numbers = #tpu.dot_dimension_numbers<[1], [0], [0], [1], [0, 0, 1, 1], [], []>} : vector<8x32xf32>, vector<32x8xf32>, vector<8x8xf32> -> vector<8x8xf32>
    %113 = vector.extract_strided_slice %28 {offsets = [3, 0, 0], sizes = [1, 32, 8], strides = [1, 1, 1]} : vector<4x32x8xf32> to vector<1x32x8xf32>
    %114 = vector.shape_cast %113 : vector<1x32x8xf32> to vector<32x8xf32>
    %cst_51 = arith.constant dense<0.000000e+00> : vector<8x8xf32>
    %115 = tpu.matmul %25, %114, %cst_51 {dimension_numbers = #tpu.dot_dimension_numbers<[1], [0], [0], [1], [0, 0, 1, 1], [], []>} : vector<8x32xf32>, vector<32x8xf32>, vector<8x8xf32> -> vector<8x8xf32>
    %cst_52 = arith.constant dense<0.000000e+00> : vector<8x8xf32>
    %116 = tpu.matmul %109, %112, %cst_52 {dimension_numbers = #tpu.dot_dimension_numbers<[1], [1], [0], [0], [0, 0, 1, 0], [], []>} : vector<8x8xf32>, vector<8x8xf32>, vector<8x8xf32> -> vector<8x8xf32>
    %cst_53 = arith.constant 0.353553385 : f32
    %117 = vector.broadcast %cst_53 : f32 to vector<8x8xf32>
    %118 = arith.mulf %116, %117 : vector<8x8xf32>
    %cst_54 = arith.constant dense<0xFF800000> : vector<8xf32>
    %119 = vector.multi_reduction <maximumf>, %118, %cst_54 [1] : vector<8x8xf32> to vector<8xf32>
    %120 = vector.shape_cast %119 : vector<8xf32> to vector<8x1xf32>
    %121 = vector.broadcast %120 : vector<8x1xf32> to vector<8x8xf32>
    %122 = arith.subf %118, %121 : vector<8x8xf32>
    %123 = math.exp %122 : vector<8x8xf32>
    %cst_55 = arith.constant dense<0.000000e+00> : vector<8xf32>
    %124 = vector.multi_reduction <add>, %123, %cst_55 [1] : vector<8x8xf32> to vector<8xf32>
    %125 = vector.shape_cast %124 : vector<8xf32> to vector<8x1xf32>
    %126 = vector.broadcast %125 : vector<8x1xf32> to vector<8x8xf32>
    %127 = arith.divf %123, %126 : vector<8x8xf32>
    %cst_56 = arith.constant dense<0.000000e+00> : vector<8x8xf32>
    %128 = tpu.matmul %127, %115, %cst_56 {dimension_numbers = #tpu.dot_dimension_numbers<[1], [0], [0], [1], [0, 0, 1, 1], [], []>} : vector<8x8xf32>, vector<8x8xf32>, vector<8x8xf32> -> vector<8x8xf32>
    %129 = vector.extract_strided_slice %29 {offsets = [3, 0, 0], sizes = [1, 8, 32], strides = [1, 1, 1]} : vector<4x8x32xf32> to vector<1x8x32xf32>
    %130 = vector.shape_cast %129 : vector<1x8x32xf32> to vector<8x32xf32>
    %cst_57 = arith.constant dense<0.000000e+00> : vector<8x32xf32>
    %131 = tpu.matmul %128, %130, %cst_57 {dimension_numbers = #tpu.dot_dimension_numbers<[1], [0], [0], [1], [0, 0, 1, 1], [], []>} : vector<8x8xf32>, vector<8x32xf32>, vector<8x32xf32> -> vector<8x32xf32>
    %132 = arith.addf %106, %131 : vector<8x32xf32>
    %c0_58 = arith.constant 0 : index
    %c0_59 = arith.constant 0 : index
    %133 = vector.load %arg6[%c0_58, %c0_59] : memref<1x32xf32, #tpu.memory_space<vmem>>, vector<1x32xf32>
    %134 = vector.broadcast %133 : vector<1x32xf32> to vector<8x32xf32>
    %135 = arith.addf %132, %134 : vector<8x32xf32>
    %c0_60 = arith.constant 0 : index
    %c0_61 = arith.constant 0 : index
    %136 = vector.load %arg9[%c0_60, %c0_61] : memref<1x32xf32, #tpu.memory_space<vmem>>, vector<1x32xf32>
    %c0_62 = arith.constant 0 : index
    %c0_63 = arith.constant 0 : index
    %137 = vector.load %arg10[%c0_62, %c0_63] : memref<1x32xf32, #tpu.memory_space<vmem>>, vector<1x32xf32>
    %cst_64 = arith.constant dense<0.000000e+00> : vector<8xf32>
    %138 = vector.multi_reduction <add>, %135, %cst_64 [1] : vector<8x32xf32> to vector<8xf32>
    %139 = vector.shape_cast %138 : vector<8xf32> to vector<8x1xf32>
    %cst_65 = arith.constant 3.200000e+01 : f32
    %140 = vector.broadcast %cst_65 : f32 to vector<8x1xf32>
    %141 = arith.divf %139, %140 : vector<8x1xf32>
    %142 = vector.broadcast %141 : vector<8x1xf32> to vector<8x32xf32>
    %143 = arith.subf %135, %142 : vector<8x32xf32>
    %144 = arith.mulf %143, %143 : vector<8x32xf32>
    %cst_66 = arith.constant dense<0.000000e+00> : vector<8xf32>
    %145 = vector.multi_reduction <add>, %144, %cst_66 [1] : vector<8x32xf32> to vector<8xf32>
    %146 = vector.shape_cast %145 : vector<8xf32> to vector<8x1xf32>
    %cst_67 = arith.constant 3.200000e+01 : f32
    %147 = vector.broadcast %cst_67 : f32 to vector<8x1xf32>
    %148 = arith.divf %146, %147 : vector<8x1xf32>
    %149 = vector.broadcast %141 : vector<8x1xf32> to vector<8x32xf32>
    %150 = arith.subf %135, %149 : vector<8x32xf32>
    %cst_68 = arith.constant 9.99999997E-7 : f32
    %151 = vector.broadcast %cst_68 : f32 to vector<8x1xf32>
    %152 = arith.addf %148, %151 : vector<8x1xf32>
    %153 = math.rsqrt %152 : vector<8x1xf32>
    %154 = vector.broadcast %153 : vector<8x1xf32> to vector<8x32xf32>
    %155 = arith.mulf %150, %154 : vector<8x32xf32>
    %156 = vector.broadcast %136 : vector<1x32xf32> to vector<8x32xf32>
    %157 = arith.mulf %155, %156 : vector<8x32xf32>
    %158 = vector.broadcast %137 : vector<1x32xf32> to vector<8x32xf32>
    %159 = arith.addf %157, %158 : vector<8x32xf32>
    %c0_69 = arith.constant 0 : index
    %c0_70 = arith.constant 0 : index
    %c0_71 = arith.constant 0 : index
    %160 = vector.load %arg11[%c0_69, %c0_70, %c0_71] : memref<1x8x32xf32, #tpu.memory_space<vmem>>, vector<1x8x32xf32>
    %161 = vector.shape_cast %160 : vector<1x8x32xf32> to vector<8x32xf32>
    %162 = vector.shape_cast %159 : vector<8x32xf32> to vector<1x8x32xf32>
    tpu.vector_store %arg11[%c0_69, %c0_70, %c0_71], %162 {strides = array<i32>} : memref<1x8x32xf32, #tpu.memory_space<vmem>>, vector<1x8x32xf32>,
    return
  }
  func.func @transform_0(%arg0: i32) -> (i32, i32, i32) {
    %c0_i32 = arith.constant 0 : i32
    %c0_i32_0 = arith.constant 0 : i32
    %c0_i32_1 = arith.constant 0 : i32
    return %arg0, %c0_i32, %c0_i32_0 : i32, i32, i32
  }
  func.func @transform_1(%arg0: i32) -> (i32, i32, i32) {
    %c0_i32 = arith.constant 0 : i32
    %c0_i32_0 = arith.constant 0 : i32
    %c0_i32_1 = arith.constant 0 : i32
    %c0_i32_2 = arith.constant 0 : i32
    return %c0_i32, %c0_i32_0, %c0_i32_1 : i32, i32, i32
  }
  func.func @transform_2(%arg0: i32) -> (i32, i32, i32) {
    %c0_i32 = arith.constant 0 : i32
    %c0_i32_0 = arith.constant 0 : i32
    %c0_i32_1 = arith.constant 0 : i32
    %c0_i32_2 = arith.constant 0 : i32
    return %c0_i32, %c0_i32_0, %c0_i32_1 : i32, i32, i32
  }
  func.func @transform_3(%arg0: i32) -> (i32, i32, i32) {
    %c0_i32 = arith.constant 0 : i32
    %c0_i32_0 = arith.constant 0 : i32
    %c0_i32_1 = arith.constant 0 : i32
    %c0_i32_2 = arith.constant 0 : i32
    return %c0_i32, %c0_i32_0, %c0_i32_1 : i32, i32, i32
  }
  func.func @transform_4(%arg0: i32) -> (i32, i32, i32) {
    %c0_i32 = arith.constant 0 : i32
    %c0_i32_0 = arith.constant 0 : i32
    %c0_i32_1 = arith.constant 0 : i32
    %c0_i32_2 = arith.constant 0 : i32
    return %c0_i32, %c0_i32_0, %c0_i32_1 : i32, i32, i32
  }
  func.func @transform_5(%arg0: i32) -> (i32, i32) {
    %c0_i32 = arith.constant 0 : i32
    %c0_i32_0 = arith.constant 0 : i32
    %c0_i32_1 = arith.constant 0 : i32
    return %c0_i32, %c0_i32_0 : i32, i32
  }
  func.func @transform_6(%arg0: i32) -> (i32, i32) {
    %c0_i32 = arith.constant 0 : i32
    %c0_i32_0 = arith.constant 0 : i32
    %c0_i32_1 = arith.constant 0 : i32
    return %c0_i32, %c0_i32_0 : i32, i32
  }
  func.func @transform_7(%arg0: i32) -> (i32, i32) {
    %c0_i32 = arith.constant 0 : i32
    %c0_i32_0 = arith.constant 0 : i32
    %c0_i32_1 = arith.constant 0 : i32
    return %c0_i32, %c0_i32_0 : i32, i32
  }
  func.func @transform_8(%arg0: i32) -> (i32, i32) {
    %c0_i32 = arith.constant 0 : i32
    %c0_i32_0 = arith.constant 0 : i32
    %c0_i32_1 = arith.constant 0 : i32
    return %c0_i32, %c0_i32_0 : i32, i32
  }
  func.func @transform_9(%arg0: i32) -> (i32, i32) {
    %c0_i32 = arith.constant 0 : i32
    %c0_i32_0 = arith.constant 0 : i32
    %c0_i32_1 = arith.constant 0 : i32
    return %c0_i32, %c0_i32_0 : i32, i32
  }
  func.func @transform_10(%arg0: i32) -> (i32, i32, i32) {
    %c0_i32 = arith.constant 0 : i32
    %c0_i32_0 = arith.constant 0 : i32
    %c0_i32_1 = arith.constant 0 : i32
    return %arg0, %c0_i32, %c0_i32_0 : i32, i32, i32
  }
}

module attributes {stable_mosaic.version = 11 : i64} {
  func.func @_tail_kernel(%arg0: i32, %arg1: memref<1x8x32xf32, #tpu.memory_space<vmem>>, %arg2: memref<1x8x32xf32, #tpu.memory_space<vmem>>, %arg3: memref<4x32x8xf32, #tpu.memory_space<vmem>>, %arg4: memref<4x32x8xf32, #tpu.memory_space<vmem>>, %arg5: memref<4x32x8xf32, #tpu.memory_space<vmem>>, %arg6: memref<4x8x32xf32, #tpu.memory_space<vmem>>, %arg7: memref<1x32xf32, #tpu.memory_space<vmem>>, %arg8: memref<1x32xf32, #tpu.memory_space<vmem>>, %arg9: memref<1x32xf32, #tpu.memory_space<vmem>>, %arg10: memref<64x32xf32, #tpu.memory_space<vmem>>, %arg11: memref<1x32xf32, #tpu.memory_space<vmem>>, %arg12: memref<32x3xf32, #tpu.memory_space<vmem>>, %arg13: memref<1x3xf32, #tpu.memory_space<vmem>>, %arg14: memref<1x1x3xf32, #tpu.memory_space<vmem>>) attributes {dimension_semantics = [#tpu.dimension_semantics<parallel>], iteration_bounds = array<i64: 2>, scalar_prefetch = 0 : i64, scratch_operands = 0 : i64, tpu.core_type = #tpu.core_type<tc>, window_params = [{transform_indices = @transform_0, window_bounds = array<i64: 1, 8, 32>}, {transform_indices = @transform_1, window_bounds = array<i64: 1, 8, 32>}, {pipeline_mode = #tpu.pipeline_mode<synchronous>, transform_indices = @transform_2, window_bounds = array<i64: 4, 32, 8>}, {pipeline_mode = #tpu.pipeline_mode<synchronous>, transform_indices = @transform_3, window_bounds = array<i64: 4, 32, 8>}, {pipeline_mode = #tpu.pipeline_mode<synchronous>, transform_indices = @transform_4, window_bounds = array<i64: 4, 32, 8>}, {pipeline_mode = #tpu.pipeline_mode<synchronous>, transform_indices = @transform_5, window_bounds = array<i64: 4, 8, 32>}, {pipeline_mode = #tpu.pipeline_mode<synchronous>, transform_indices = @transform_6, window_bounds = array<i64: 1, 32>}, {pipeline_mode = #tpu.pipeline_mode<synchronous>, transform_indices = @transform_7, window_bounds = array<i64: 1, 32>}, {pipeline_mode = #tpu.pipeline_mode<synchronous>, transform_indices = @transform_8, window_bounds = array<i64: 1, 32>}, {pipeline_mode = #tpu.pipeline_mode<synchronous>, transform_indices = @transform_9, window_bounds = array<i64: 64, 32>}, {pipeline_mode = #tpu.pipeline_mode<synchronous>, transform_indices = @transform_10, window_bounds = array<i64: 1, 32>}, {pipeline_mode = #tpu.pipeline_mode<synchronous>, transform_indices = @transform_11, window_bounds = array<i64: 32, 3>}, {pipeline_mode = #tpu.pipeline_mode<synchronous>, transform_indices = @transform_12, window_bounds = array<i64: 1, 3>}, {transform_indices = @transform_13, window_bounds = array<i64: 1, 1, 3>}]} {
    %c0 = arith.constant 0 : index
    %c0_0 = arith.constant 0 : index
    %c0_1 = arith.constant 0 : index
    %0 = vector.load %arg1[%c0, %c0_0, %c0_1] : memref<1x8x32xf32, #tpu.memory_space<vmem>>, vector<1x8x32xf32>
    %1 = vector.shape_cast %0 : vector<1x8x32xf32> to vector<8x32xf32>
    %c0_2 = arith.constant 0 : index
    %c0_3 = arith.constant 0 : index
    %c0_4 = arith.constant 0 : index
    %2 = vector.load %arg2[%c0_2, %c0_3, %c0_4] : memref<1x8x32xf32, #tpu.memory_space<vmem>>, vector<1x8x32xf32>
    %3 = vector.shape_cast %2 : vector<1x8x32xf32> to vector<8x32xf32>
    %c0_5 = arith.constant 0 : index
    %c0_6 = arith.constant 0 : index
    %c0_7 = arith.constant 0 : index
    %4 = vector.load %arg3[%c0_5, %c0_6, %c0_7] : memref<4x32x8xf32, #tpu.memory_space<vmem>>, vector<4x32x8xf32>
    %c0_8 = arith.constant 0 : index
    %c0_9 = arith.constant 0 : index
    %c0_10 = arith.constant 0 : index
    %5 = vector.load %arg4[%c0_8, %c0_9, %c0_10] : memref<4x32x8xf32, #tpu.memory_space<vmem>>, vector<4x32x8xf32>
    %c0_11 = arith.constant 0 : index
    %c0_12 = arith.constant 0 : index
    %c0_13 = arith.constant 0 : index
    %6 = vector.load %arg5[%c0_11, %c0_12, %c0_13] : memref<4x32x8xf32, #tpu.memory_space<vmem>>, vector<4x32x8xf32>
    %c0_14 = arith.constant 0 : index
    %c0_15 = arith.constant 0 : index
    %c0_16 = arith.constant 0 : index
    %7 = vector.load %arg6[%c0_14, %c0_15, %c0_16] : memref<4x8x32xf32, #tpu.memory_space<vmem>>, vector<4x8x32xf32>
    %8 = vector.extract_strided_slice %4 {offsets = [0, 0, 0], sizes = [1, 32, 8], strides = [1, 1, 1]} : vector<4x32x8xf32> to vector<1x32x8xf32>
    %9 = vector.shape_cast %8 : vector<1x32x8xf32> to vector<32x8xf32>
    %cst = arith.constant dense<0.000000e+00> : vector<8x8xf32>
    %10 = tpu.matmul %1, %9, %cst {dimension_numbers = #tpu.dot_dimension_numbers<[1], [0], [0], [1], [0, 0, 1, 1], [], []>} : vector<8x32xf32>, vector<32x8xf32>, vector<8x8xf32> -> vector<8x8xf32>
    %11 = vector.extract_strided_slice %5 {offsets = [0, 0, 0], sizes = [1, 32, 8], strides = [1, 1, 1]} : vector<4x32x8xf32> to vector<1x32x8xf32>
    %12 = vector.shape_cast %11 : vector<1x32x8xf32> to vector<32x8xf32>
    %cst_17 = arith.constant dense<0.000000e+00> : vector<8x8xf32>
    %13 = tpu.matmul %3, %12, %cst_17 {dimension_numbers = #tpu.dot_dimension_numbers<[1], [0], [0], [1], [0, 0, 1, 1], [], []>} : vector<8x32xf32>, vector<32x8xf32>, vector<8x8xf32> -> vector<8x8xf32>
    %14 = vector.extract_strided_slice %6 {offsets = [0, 0, 0], sizes = [1, 32, 8], strides = [1, 1, 1]} : vector<4x32x8xf32> to vector<1x32x8xf32>
    %15 = vector.shape_cast %14 : vector<1x32x8xf32> to vector<32x8xf32>
    %cst_18 = arith.constant dense<0.000000e+00> : vector<8x8xf32>
    %16 = tpu.matmul %3, %15, %cst_18 {dimension_numbers = #tpu.dot_dimension_numbers<[1], [0], [0], [1], [0, 0, 1, 1], [], []>} : vector<8x32xf32>, vector<32x8xf32>, vector<8x8xf32> -> vector<8x8xf32>
    %cst_19 = arith.constant dense<0.000000e+00> : vector<8x8xf32>
    %17 = tpu.matmul %10, %13, %cst_19 {dimension_numbers = #tpu.dot_dimension_numbers<[1], [1], [0], [0], [0, 0, 1, 0], [], []>} : vector<8x8xf32>, vector<8x8xf32>, vector<8x8xf32> -> vector<8x8xf32>
    %cst_20 = arith.constant 0.353553385 : f32
    %18 = vector.broadcast %cst_20 : f32 to vector<8x8xf32>
    %19 = arith.mulf %17, %18 : vector<8x8xf32>
    %cst_21 = arith.constant dense<0xFF800000> : vector<8xf32>
    %20 = vector.multi_reduction <maximumf>, %19, %cst_21 [1] : vector<8x8xf32> to vector<8xf32>
    %21 = vector.shape_cast %20 : vector<8xf32> to vector<8x1xf32>
    %22 = vector.broadcast %21 : vector<8x1xf32> to vector<8x8xf32>
    %23 = arith.subf %19, %22 : vector<8x8xf32>
    %24 = math.exp %23 : vector<8x8xf32>
    %cst_22 = arith.constant dense<0.000000e+00> : vector<8xf32>
    %25 = vector.multi_reduction <add>, %24, %cst_22 [1] : vector<8x8xf32> to vector<8xf32>
    %26 = vector.shape_cast %25 : vector<8xf32> to vector<8x1xf32>
    %27 = vector.broadcast %26 : vector<8x1xf32> to vector<8x8xf32>
    %28 = arith.divf %24, %27 : vector<8x8xf32>
    %cst_23 = arith.constant dense<0.000000e+00> : vector<8x8xf32>
    %29 = tpu.matmul %28, %16, %cst_23 {dimension_numbers = #tpu.dot_dimension_numbers<[1], [0], [0], [1], [0, 0, 1, 1], [], []>} : vector<8x8xf32>, vector<8x8xf32>, vector<8x8xf32> -> vector<8x8xf32>
    %30 = vector.extract_strided_slice %7 {offsets = [0, 0, 0], sizes = [1, 8, 32], strides = [1, 1, 1]} : vector<4x8x32xf32> to vector<1x8x32xf32>
    %31 = vector.shape_cast %30 : vector<1x8x32xf32> to vector<8x32xf32>
    %cst_24 = arith.constant dense<0.000000e+00> : vector<8x32xf32>
    %32 = tpu.matmul %29, %31, %cst_24 {dimension_numbers = #tpu.dot_dimension_numbers<[1], [0], [0], [1], [0, 0, 1, 1], [], []>} : vector<8x8xf32>, vector<8x32xf32>, vector<8x32xf32> -> vector<8x32xf32>
    %33 = vector.extract_strided_slice %4 {offsets = [1, 0, 0], sizes = [1, 32, 8], strides = [1, 1, 1]} : vector<4x32x8xf32> to vector<1x32x8xf32>
    %34 = vector.shape_cast %33 : vector<1x32x8xf32> to vector<32x8xf32>
    %cst_25 = arith.constant dense<0.000000e+00> : vector<8x8xf32>
    %35 = tpu.matmul %1, %34, %cst_25 {dimension_numbers = #tpu.dot_dimension_numbers<[1], [0], [0], [1], [0, 0, 1, 1], [], []>} : vector<8x32xf32>, vector<32x8xf32>, vector<8x8xf32> -> vector<8x8xf32>
    %36 = vector.extract_strided_slice %5 {offsets = [1, 0, 0], sizes = [1, 32, 8], strides = [1, 1, 1]} : vector<4x32x8xf32> to vector<1x32x8xf32>
    %37 = vector.shape_cast %36 : vector<1x32x8xf32> to vector<32x8xf32>
    %cst_26 = arith.constant dense<0.000000e+00> : vector<8x8xf32>
    %38 = tpu.matmul %3, %37, %cst_26 {dimension_numbers = #tpu.dot_dimension_numbers<[1], [0], [0], [1], [0, 0, 1, 1], [], []>} : vector<8x32xf32>, vector<32x8xf32>, vector<8x8xf32> -> vector<8x8xf32>
    %39 = vector.extract_strided_slice %6 {offsets = [1, 0, 0], sizes = [1, 32, 8], strides = [1, 1, 1]} : vector<4x32x8xf32> to vector<1x32x8xf32>
    %40 = vector.shape_cast %39 : vector<1x32x8xf32> to vector<32x8xf32>
    %cst_27 = arith.constant dense<0.000000e+00> : vector<8x8xf32>
    %41 = tpu.matmul %3, %40, %cst_27 {dimension_numbers = #tpu.dot_dimension_numbers<[1], [0], [0], [1], [0, 0, 1, 1], [], []>} : vector<8x32xf32>, vector<32x8xf32>, vector<8x8xf32> -> vector<8x8xf32>
    %cst_28 = arith.constant dense<0.000000e+00> : vector<8x8xf32>
    %42 = tpu.matmul %35, %38, %cst_28 {dimension_numbers = #tpu.dot_dimension_numbers<[1], [1], [0], [0], [0, 0, 1, 0], [], []>} : vector<8x8xf32>, vector<8x8xf32>, vector<8x8xf32> -> vector<8x8xf32>
    %cst_29 = arith.constant 0.353553385 : f32
    %43 = vector.broadcast %cst_29 : f32 to vector<8x8xf32>
    %44 = arith.mulf %42, %43 : vector<8x8xf32>
    %cst_30 = arith.constant dense<0xFF800000> : vector<8xf32>
    %45 = vector.multi_reduction <maximumf>, %44, %cst_30 [1] : vector<8x8xf32> to vector<8xf32>
    %46 = vector.shape_cast %45 : vector<8xf32> to vector<8x1xf32>
    %47 = vector.broadcast %46 : vector<8x1xf32> to vector<8x8xf32>
    %48 = arith.subf %44, %47 : vector<8x8xf32>
    %49 = math.exp %48 : vector<8x8xf32>
    %cst_31 = arith.constant dense<0.000000e+00> : vector<8xf32>
    %50 = vector.multi_reduction <add>, %49, %cst_31 [1] : vector<8x8xf32> to vector<8xf32>
    %51 = vector.shape_cast %50 : vector<8xf32> to vector<8x1xf32>
    %52 = vector.broadcast %51 : vector<8x1xf32> to vector<8x8xf32>
    %53 = arith.divf %49, %52 : vector<8x8xf32>
    %cst_32 = arith.constant dense<0.000000e+00> : vector<8x8xf32>
    %54 = tpu.matmul %53, %41, %cst_32 {dimension_numbers = #tpu.dot_dimension_numbers<[1], [0], [0], [1], [0, 0, 1, 1], [], []>} : vector<8x8xf32>, vector<8x8xf32>, vector<8x8xf32> -> vector<8x8xf32>
    %55 = vector.extract_strided_slice %7 {offsets = [1, 0, 0], sizes = [1, 8, 32], strides = [1, 1, 1]} : vector<4x8x32xf32> to vector<1x8x32xf32>
    %56 = vector.shape_cast %55 : vector<1x8x32xf32> to vector<8x32xf32>
    %cst_33 = arith.constant dense<0.000000e+00> : vector<8x32xf32>
    %57 = tpu.matmul %54, %56, %cst_33 {dimension_numbers = #tpu.dot_dimension_numbers<[1], [0], [0], [1], [0, 0, 1, 1], [], []>} : vector<8x8xf32>, vector<8x32xf32>, vector<8x32xf32> -> vector<8x32xf32>
    %58 = arith.addf %32, %57 : vector<8x32xf32>
    %59 = vector.extract_strided_slice %4 {offsets = [2, 0, 0], sizes = [1, 32, 8], strides = [1, 1, 1]} : vector<4x32x8xf32> to vector<1x32x8xf32>
    %60 = vector.shape_cast %59 : vector<1x32x8xf32> to vector<32x8xf32>
    %cst_34 = arith.constant dense<0.000000e+00> : vector<8x8xf32>
    %61 = tpu.matmul %1, %60, %cst_34 {dimension_numbers = #tpu.dot_dimension_numbers<[1], [0], [0], [1], [0, 0, 1, 1], [], []>} : vector<8x32xf32>, vector<32x8xf32>, vector<8x8xf32> -> vector<8x8xf32>
    %62 = vector.extract_strided_slice %5 {offsets = [2, 0, 0], sizes = [1, 32, 8], strides = [1, 1, 1]} : vector<4x32x8xf32> to vector<1x32x8xf32>
    %63 = vector.shape_cast %62 : vector<1x32x8xf32> to vector<32x8xf32>
    %cst_35 = arith.constant dense<0.000000e+00> : vector<8x8xf32>
    %64 = tpu.matmul %3, %63, %cst_35 {dimension_numbers = #tpu.dot_dimension_numbers<[1], [0], [0], [1], [0, 0, 1, 1], [], []>} : vector<8x32xf32>, vector<32x8xf32>, vector<8x8xf32> -> vector<8x8xf32>
    %65 = vector.extract_strided_slice %6 {offsets = [2, 0, 0], sizes = [1, 32, 8], strides = [1, 1, 1]} : vector<4x32x8xf32> to vector<1x32x8xf32>
    %66 = vector.shape_cast %65 : vector<1x32x8xf32> to vector<32x8xf32>
    %cst_36 = arith.constant dense<0.000000e+00> : vector<8x8xf32>
    %67 = tpu.matmul %3, %66, %cst_36 {dimension_numbers = #tpu.dot_dimension_numbers<[1], [0], [0], [1], [0, 0, 1, 1], [], []>} : vector<8x32xf32>, vector<32x8xf32>, vector<8x8xf32> -> vector<8x8xf32>
    %cst_37 = arith.constant dense<0.000000e+00> : vector<8x8xf32>
    %68 = tpu.matmul %61, %64, %cst_37 {dimension_numbers = #tpu.dot_dimension_numbers<[1], [1], [0], [0], [0, 0, 1, 0], [], []>} : vector<8x8xf32>, vector<8x8xf32>, vector<8x8xf32> -> vector<8x8xf32>
    %cst_38 = arith.constant 0.353553385 : f32
    %69 = vector.broadcast %cst_38 : f32 to vector<8x8xf32>
    %70 = arith.mulf %68, %69 : vector<8x8xf32>
    %cst_39 = arith.constant dense<0xFF800000> : vector<8xf32>
    %71 = vector.multi_reduction <maximumf>, %70, %cst_39 [1] : vector<8x8xf32> to vector<8xf32>
    %72 = vector.shape_cast %71 : vector<8xf32> to vector<8x1xf32>
    %73 = vector.broadcast %72 : vector<8x1xf32> to vector<8x8xf32>
    %74 = arith.subf %70, %73 : vector<8x8xf32>
    %75 = math.exp %74 : vector<8x8xf32>
    %cst_40 = arith.constant dense<0.000000e+00> : vector<8xf32>
    %76 = vector.multi_reduction <add>, %75, %cst_40 [1] : vector<8x8xf32> to vector<8xf32>
    %77 = vector.shape_cast %76 : vector<8xf32> to vector<8x1xf32>
    %78 = vector.broadcast %77 : vector<8x1xf32> to vector<8x8xf32>
    %79 = arith.divf %75, %78 : vector<8x8xf32>
    %cst_41 = arith.constant dense<0.000000e+00> : vector<8x8xf32>
    %80 = tpu.matmul %79, %67, %cst_41 {dimension_numbers = #tpu.dot_dimension_numbers<[1], [0], [0], [1], [0, 0, 1, 1], [], []>} : vector<8x8xf32>, vector<8x8xf32>, vector<8x8xf32> -> vector<8x8xf32>
    %81 = vector.extract_strided_slice %7 {offsets = [2, 0, 0], sizes = [1, 8, 32], strides = [1, 1, 1]} : vector<4x8x32xf32> to vector<1x8x32xf32>
    %82 = vector.shape_cast %81 : vector<1x8x32xf32> to vector<8x32xf32>
    %cst_42 = arith.constant dense<0.000000e+00> : vector<8x32xf32>
    %83 = tpu.matmul %80, %82, %cst_42 {dimension_numbers = #tpu.dot_dimension_numbers<[1], [0], [0], [1], [0, 0, 1, 1], [], []>} : vector<8x8xf32>, vector<8x32xf32>, vector<8x32xf32> -> vector<8x32xf32>
    %84 = arith.addf %58, %83 : vector<8x32xf32>
    %85 = vector.extract_strided_slice %4 {offsets = [3, 0, 0], sizes = [1, 32, 8], strides = [1, 1, 1]} : vector<4x32x8xf32> to vector<1x32x8xf32>
    %86 = vector.shape_cast %85 : vector<1x32x8xf32> to vector<32x8xf32>
    %cst_43 = arith.constant dense<0.000000e+00> : vector<8x8xf32>
    %87 = tpu.matmul %1, %86, %cst_43 {dimension_numbers = #tpu.dot_dimension_numbers<[1], [0], [0], [1], [0, 0, 1, 1], [], []>} : vector<8x32xf32>, vector<32x8xf32>, vector<8x8xf32> -> vector<8x8xf32>
    %88 = vector.extract_strided_slice %5 {offsets = [3, 0, 0], sizes = [1, 32, 8], strides = [1, 1, 1]} : vector<4x32x8xf32> to vector<1x32x8xf32>
    %89 = vector.shape_cast %88 : vector<1x32x8xf32> to vector<32x8xf32>
    %cst_44 = arith.constant dense<0.000000e+00> : vector<8x8xf32>
    %90 = tpu.matmul %3, %89, %cst_44 {dimension_numbers = #tpu.dot_dimension_numbers<[1], [0], [0], [1], [0, 0, 1, 1], [], []>} : vector<8x32xf32>, vector<32x8xf32>, vector<8x8xf32> -> vector<8x8xf32>
    %91 = vector.extract_strided_slice %6 {offsets = [3, 0, 0], sizes = [1, 32, 8], strides = [1, 1, 1]} : vector<4x32x8xf32> to vector<1x32x8xf32>
    %92 = vector.shape_cast %91 : vector<1x32x8xf32> to vector<32x8xf32>
    %cst_45 = arith.constant dense<0.000000e+00> : vector<8x8xf32>
    %93 = tpu.matmul %3, %92, %cst_45 {dimension_numbers = #tpu.dot_dimension_numbers<[1], [0], [0], [1], [0, 0, 1, 1], [], []>} : vector<8x32xf32>, vector<32x8xf32>, vector<8x8xf32> -> vector<8x8xf32>
    %cst_46 = arith.constant dense<0.000000e+00> : vector<8x8xf32>
    %94 = tpu.matmul %87, %90, %cst_46 {dimension_numbers = #tpu.dot_dimension_numbers<[1], [1], [0], [0], [0, 0, 1, 0], [], []>} : vector<8x8xf32>, vector<8x8xf32>, vector<8x8xf32> -> vector<8x8xf32>
    %cst_47 = arith.constant 0.353553385 : f32
    %95 = vector.broadcast %cst_47 : f32 to vector<8x8xf32>
    %96 = arith.mulf %94, %95 : vector<8x8xf32>
    %cst_48 = arith.constant dense<0xFF800000> : vector<8xf32>
    %97 = vector.multi_reduction <maximumf>, %96, %cst_48 [1] : vector<8x8xf32> to vector<8xf32>
    %98 = vector.shape_cast %97 : vector<8xf32> to vector<8x1xf32>
    %99 = vector.broadcast %98 : vector<8x1xf32> to vector<8x8xf32>
    %100 = arith.subf %96, %99 : vector<8x8xf32>
    %101 = math.exp %100 : vector<8x8xf32>
    %cst_49 = arith.constant dense<0.000000e+00> : vector<8xf32>
    %102 = vector.multi_reduction <add>, %101, %cst_49 [1] : vector<8x8xf32> to vector<8xf32>
    %103 = vector.shape_cast %102 : vector<8xf32> to vector<8x1xf32>
    %104 = vector.broadcast %103 : vector<8x1xf32> to vector<8x8xf32>
    %105 = arith.divf %101, %104 : vector<8x8xf32>
    %cst_50 = arith.constant dense<0.000000e+00> : vector<8x8xf32>
    %106 = tpu.matmul %105, %93, %cst_50 {dimension_numbers = #tpu.dot_dimension_numbers<[1], [0], [0], [1], [0, 0, 1, 1], [], []>} : vector<8x8xf32>, vector<8x8xf32>, vector<8x8xf32> -> vector<8x8xf32>
    %107 = vector.extract_strided_slice %7 {offsets = [3, 0, 0], sizes = [1, 8, 32], strides = [1, 1, 1]} : vector<4x8x32xf32> to vector<1x8x32xf32>
    %108 = vector.shape_cast %107 : vector<1x8x32xf32> to vector<8x32xf32>
    %cst_51 = arith.constant dense<0.000000e+00> : vector<8x32xf32>
    %109 = tpu.matmul %106, %108, %cst_51 {dimension_numbers = #tpu.dot_dimension_numbers<[1], [0], [0], [1], [0, 0, 1, 1], [], []>} : vector<8x8xf32>, vector<8x32xf32>, vector<8x32xf32> -> vector<8x32xf32>
    %110 = arith.addf %84, %109 : vector<8x32xf32>
    %c0_52 = arith.constant 0 : index
    %c0_53 = arith.constant 0 : index
    %111 = vector.load %arg7[%c0_52, %c0_53] : memref<1x32xf32, #tpu.memory_space<vmem>>, vector<1x32xf32>
    %112 = vector.broadcast %111 : vector<1x32xf32> to vector<8x32xf32>
    %113 = arith.addf %110, %112 : vector<8x32xf32>
    %c0_54 = arith.constant 0 : index
    %c0_55 = arith.constant 0 : index
    %c0_56 = arith.constant 0 : index
    %114 = vector.load %arg3[%c0_54, %c0_55, %c0_56] : memref<4x32x8xf32, #tpu.memory_space<vmem>>, vector<4x32x8xf32>
    %c0_57 = arith.constant 0 : index
    %c0_58 = arith.constant 0 : index
    %c0_59 = arith.constant 0 : index
    %115 = vector.load %arg4[%c0_57, %c0_58, %c0_59] : memref<4x32x8xf32, #tpu.memory_space<vmem>>, vector<4x32x8xf32>
    %c0_60 = arith.constant 0 : index
    %c0_61 = arith.constant 0 : index
    %c0_62 = arith.constant 0 : index
    %116 = vector.load %arg5[%c0_60, %c0_61, %c0_62] : memref<4x32x8xf32, #tpu.memory_space<vmem>>, vector<4x32x8xf32>
    %c0_63 = arith.constant 0 : index
    %c0_64 = arith.constant 0 : index
    %c0_65 = arith.constant 0 : index
    %117 = vector.load %arg6[%c0_63, %c0_64, %c0_65] : memref<4x8x32xf32, #tpu.memory_space<vmem>>, vector<4x8x32xf32>
    %118 = vector.extract_strided_slice %114 {offsets = [0, 0, 0], sizes = [1, 32, 8], strides = [1, 1, 1]} : vector<4x32x8xf32> to vector<1x32x8xf32>
    %119 = vector.shape_cast %118 : vector<1x32x8xf32> to vector<32x8xf32>
    %cst_66 = arith.constant dense<0.000000e+00> : vector<8x8xf32>
    %120 = tpu.matmul %3, %119, %cst_66 {dimension_numbers = #tpu.dot_dimension_numbers<[1], [0], [0], [1], [0, 0, 1, 1], [], []>} : vector<8x32xf32>, vector<32x8xf32>, vector<8x8xf32> -> vector<8x8xf32>
    %121 = vector.extract_strided_slice %115 {offsets = [0, 0, 0], sizes = [1, 32, 8], strides = [1, 1, 1]} : vector<4x32x8xf32> to vector<1x32x8xf32>
    %122 = vector.shape_cast %121 : vector<1x32x8xf32> to vector<32x8xf32>
    %cst_67 = arith.constant dense<0.000000e+00> : vector<8x8xf32>
    %123 = tpu.matmul %1, %122, %cst_67 {dimension_numbers = #tpu.dot_dimension_numbers<[1], [0], [0], [1], [0, 0, 1, 1], [], []>} : vector<8x32xf32>, vector<32x8xf32>, vector<8x8xf32> -> vector<8x8xf32>
    %124 = vector.extract_strided_slice %116 {offsets = [0, 0, 0], sizes = [1, 32, 8], strides = [1, 1, 1]} : vector<4x32x8xf32> to vector<1x32x8xf32>
    %125 = vector.shape_cast %124 : vector<1x32x8xf32> to vector<32x8xf32>
    %cst_68 = arith.constant dense<0.000000e+00> : vector<8x8xf32>
    %126 = tpu.matmul %1, %125, %cst_68 {dimension_numbers = #tpu.dot_dimension_numbers<[1], [0], [0], [1], [0, 0, 1, 1], [], []>} : vector<8x32xf32>, vector<32x8xf32>, vector<8x8xf32> -> vector<8x8xf32>
    %cst_69 = arith.constant dense<0.000000e+00> : vector<8x8xf32>
    %127 = tpu.matmul %120, %123, %cst_69 {dimension_numbers = #tpu.dot_dimension_numbers<[1], [1], [0], [0], [0, 0, 1, 0], [], []>} : vector<8x8xf32>, vector<8x8xf32>, vector<8x8xf32> -> vector<8x8xf32>
    %cst_70 = arith.constant 0.353553385 : f32
    %128 = vector.broadcast %cst_70 : f32 to vector<8x8xf32>
    %129 = arith.mulf %127, %128 : vector<8x8xf32>
    %cst_71 = arith.constant dense<0xFF800000> : vector<8xf32>
    %130 = vector.multi_reduction <maximumf>, %129, %cst_71 [1] : vector<8x8xf32> to vector<8xf32>
    %131 = vector.shape_cast %130 : vector<8xf32> to vector<8x1xf32>
    %132 = vector.broadcast %131 : vector<8x1xf32> to vector<8x8xf32>
    %133 = arith.subf %129, %132 : vector<8x8xf32>
    %134 = math.exp %133 : vector<8x8xf32>
    %cst_72 = arith.constant dense<0.000000e+00> : vector<8xf32>
    %135 = vector.multi_reduction <add>, %134, %cst_72 [1] : vector<8x8xf32> to vector<8xf32>
    %136 = vector.shape_cast %135 : vector<8xf32> to vector<8x1xf32>
    %137 = vector.broadcast %136 : vector<8x1xf32> to vector<8x8xf32>
    %138 = arith.divf %134, %137 : vector<8x8xf32>
    %cst_73 = arith.constant dense<0.000000e+00> : vector<8x8xf32>
    %139 = tpu.matmul %138, %126, %cst_73 {dimension_numbers = #tpu.dot_dimension_numbers<[1], [0], [0], [1], [0, 0, 1, 1], [], []>} : vector<8x8xf32>, vector<8x8xf32>, vector<8x8xf32> -> vector<8x8xf32>
    %140 = vector.extract_strided_slice %117 {offsets = [0, 0, 0], sizes = [1, 8, 32], strides = [1, 1, 1]} : vector<4x8x32xf32> to vector<1x8x32xf32>
    %141 = vector.shape_cast %140 : vector<1x8x32xf32> to vector<8x32xf32>
    %cst_74 = arith.constant dense<0.000000e+00> : vector<8x32xf32>
    %142 = tpu.matmul %139, %141, %cst_74 {dimension_numbers = #tpu.dot_dimension_numbers<[1], [0], [0], [1], [0, 0, 1, 1], [], []>} : vector<8x8xf32>, vector<8x32xf32>, vector<8x32xf32> -> vector<8x32xf32>
    %143 = vector.extract_strided_slice %114 {offsets = [1, 0, 0], sizes = [1, 32, 8], strides = [1, 1, 1]} : vector<4x32x8xf32> to vector<1x32x8xf32>
    %144 = vector.shape_cast %143 : vector<1x32x8xf32> to vector<32x8xf32>
    %cst_75 = arith.constant dense<0.000000e+00> : vector<8x8xf32>
    %145 = tpu.matmul %3, %144, %cst_75 {dimension_numbers = #tpu.dot_dimension_numbers<[1], [0], [0], [1], [0, 0, 1, 1], [], []>} : vector<8x32xf32>, vector<32x8xf32>, vector<8x8xf32> -> vector<8x8xf32>
    %146 = vector.extract_strided_slice %115 {offsets = [1, 0, 0], sizes = [1, 32, 8], strides = [1, 1, 1]} : vector<4x32x8xf32> to vector<1x32x8xf32>
    %147 = vector.shape_cast %146 : vector<1x32x8xf32> to vector<32x8xf32>
    %cst_76 = arith.constant dense<0.000000e+00> : vector<8x8xf32>
    %148 = tpu.matmul %1, %147, %cst_76 {dimension_numbers = #tpu.dot_dimension_numbers<[1], [0], [0], [1], [0, 0, 1, 1], [], []>} : vector<8x32xf32>, vector<32x8xf32>, vector<8x8xf32> -> vector<8x8xf32>
    %149 = vector.extract_strided_slice %116 {offsets = [1, 0, 0], sizes = [1, 32, 8], strides = [1, 1, 1]} : vector<4x32x8xf32> to vector<1x32x8xf32>
    %150 = vector.shape_cast %149 : vector<1x32x8xf32> to vector<32x8xf32>
    %cst_77 = arith.constant dense<0.000000e+00> : vector<8x8xf32>
    %151 = tpu.matmul %1, %150, %cst_77 {dimension_numbers = #tpu.dot_dimension_numbers<[1], [0], [0], [1], [0, 0, 1, 1], [], []>} : vector<8x32xf32>, vector<32x8xf32>, vector<8x8xf32> -> vector<8x8xf32>
    %cst_78 = arith.constant dense<0.000000e+00> : vector<8x8xf32>
    %152 = tpu.matmul %145, %148, %cst_78 {dimension_numbers = #tpu.dot_dimension_numbers<[1], [1], [0], [0], [0, 0, 1, 0], [], []>} : vector<8x8xf32>, vector<8x8xf32>, vector<8x8xf32> -> vector<8x8xf32>
    %cst_79 = arith.constant 0.353553385 : f32
    %153 = vector.broadcast %cst_79 : f32 to vector<8x8xf32>
    %154 = arith.mulf %152, %153 : vector<8x8xf32>
    %cst_80 = arith.constant dense<0xFF800000> : vector<8xf32>
    %155 = vector.multi_reduction <maximumf>, %154, %cst_80 [1] : vector<8x8xf32> to vector<8xf32>
    %156 = vector.shape_cast %155 : vector<8xf32> to vector<8x1xf32>
    %157 = vector.broadcast %156 : vector<8x1xf32> to vector<8x8xf32>
    %158 = arith.subf %154, %157 : vector<8x8xf32>
    %159 = math.exp %158 : vector<8x8xf32>
    %cst_81 = arith.constant dense<0.000000e+00> : vector<8xf32>
    %160 = vector.multi_reduction <add>, %159, %cst_81 [1] : vector<8x8xf32> to vector<8xf32>
    %161 = vector.shape_cast %160 : vector<8xf32> to vector<8x1xf32>
    %162 = vector.broadcast %161 : vector<8x1xf32> to vector<8x8xf32>
    %163 = arith.divf %159, %162 : vector<8x8xf32>
    %cst_82 = arith.constant dense<0.000000e+00> : vector<8x8xf32>
    %164 = tpu.matmul %163, %151, %cst_82 {dimension_numbers = #tpu.dot_dimension_numbers<[1], [0], [0], [1], [0, 0, 1, 1], [], []>} : vector<8x8xf32>, vector<8x8xf32>, vector<8x8xf32> -> vector<8x8xf32>
    %165 = vector.extract_strided_slice %117 {offsets = [1, 0, 0], sizes = [1, 8, 32], strides = [1, 1, 1]} : vector<4x8x32xf32> to vector<1x8x32xf32>
    %166 = vector.shape_cast %165 : vector<1x8x32xf32> to vector<8x32xf32>
    %cst_83 = arith.constant dense<0.000000e+00> : vector<8x32xf32>
    %167 = tpu.matmul %164, %166, %cst_83 {dimension_numbers = #tpu.dot_dimension_numbers<[1], [0], [0], [1], [0, 0, 1, 1], [], []>} : vector<8x8xf32>, vector<8x32xf32>, vector<8x32xf32> -> vector<8x32xf32>
    %168 = arith.addf %142, %167 : vector<8x32xf32>
    %169 = vector.extract_strided_slice %114 {offsets = [2, 0, 0], sizes = [1, 32, 8], strides = [1, 1, 1]} : vector<4x32x8xf32> to vector<1x32x8xf32>
    %170 = vector.shape_cast %169 : vector<1x32x8xf32> to vector<32x8xf32>
    %cst_84 = arith.constant dense<0.000000e+00> : vector<8x8xf32>
    %171 = tpu.matmul %3, %170, %cst_84 {dimension_numbers = #tpu.dot_dimension_numbers<[1], [0], [0], [1], [0, 0, 1, 1], [], []>} : vector<8x32xf32>, vector<32x8xf32>, vector<8x8xf32> -> vector<8x8xf32>
    %172 = vector.extract_strided_slice %115 {offsets = [2, 0, 0], sizes = [1, 32, 8], strides = [1, 1, 1]} : vector<4x32x8xf32> to vector<1x32x8xf32>
    %173 = vector.shape_cast %172 : vector<1x32x8xf32> to vector<32x8xf32>
    %cst_85 = arith.constant dense<0.000000e+00> : vector<8x8xf32>
    %174 = tpu.matmul %1, %173, %cst_85 {dimension_numbers = #tpu.dot_dimension_numbers<[1], [0], [0], [1], [0, 0, 1, 1], [], []>} : vector<8x32xf32>, vector<32x8xf32>, vector<8x8xf32> -> vector<8x8xf32>
    %175 = vector.extract_strided_slice %116 {offsets = [2, 0, 0], sizes = [1, 32, 8], strides = [1, 1, 1]} : vector<4x32x8xf32> to vector<1x32x8xf32>
    %176 = vector.shape_cast %175 : vector<1x32x8xf32> to vector<32x8xf32>
    %cst_86 = arith.constant dense<0.000000e+00> : vector<8x8xf32>
    %177 = tpu.matmul %1, %176, %cst_86 {dimension_numbers = #tpu.dot_dimension_numbers<[1], [0], [0], [1], [0, 0, 1, 1], [], []>} : vector<8x32xf32>, vector<32x8xf32>, vector<8x8xf32> -> vector<8x8xf32>
    %cst_87 = arith.constant dense<0.000000e+00> : vector<8x8xf32>
    %178 = tpu.matmul %171, %174, %cst_87 {dimension_numbers = #tpu.dot_dimension_numbers<[1], [1], [0], [0], [0, 0, 1, 0], [], []>} : vector<8x8xf32>, vector<8x8xf32>, vector<8x8xf32> -> vector<8x8xf32>
    %cst_88 = arith.constant 0.353553385 : f32
    %179 = vector.broadcast %cst_88 : f32 to vector<8x8xf32>
    %180 = arith.mulf %178, %179 : vector<8x8xf32>
    %cst_89 = arith.constant dense<0xFF800000> : vector<8xf32>
    %181 = vector.multi_reduction <maximumf>, %180, %cst_89 [1] : vector<8x8xf32> to vector<8xf32>
    %182 = vector.shape_cast %181 : vector<8xf32> to vector<8x1xf32>
    %183 = vector.broadcast %182 : vector<8x1xf32> to vector<8x8xf32>
    %184 = arith.subf %180, %183 : vector<8x8xf32>
    %185 = math.exp %184 : vector<8x8xf32>
    %cst_90 = arith.constant dense<0.000000e+00> : vector<8xf32>
    %186 = vector.multi_reduction <add>, %185, %cst_90 [1] : vector<8x8xf32> to vector<8xf32>
    %187 = vector.shape_cast %186 : vector<8xf32> to vector<8x1xf32>
    %188 = vector.broadcast %187 : vector<8x1xf32> to vector<8x8xf32>
    %189 = arith.divf %185, %188 : vector<8x8xf32>
    %cst_91 = arith.constant dense<0.000000e+00> : vector<8x8xf32>
    %190 = tpu.matmul %189, %177, %cst_91 {dimension_numbers = #tpu.dot_dimension_numbers<[1], [0], [0], [1], [0, 0, 1, 1], [], []>} : vector<8x8xf32>, vector<8x8xf32>, vector<8x8xf32> -> vector<8x8xf32>
    %191 = vector.extract_strided_slice %117 {offsets = [2, 0, 0], sizes = [1, 8, 32], strides = [1, 1, 1]} : vector<4x8x32xf32> to vector<1x8x32xf32>
    %192 = vector.shape_cast %191 : vector<1x8x32xf32> to vector<8x32xf32>
    %cst_92 = arith.constant dense<0.000000e+00> : vector<8x32xf32>
    %193 = tpu.matmul %190, %192, %cst_92 {dimension_numbers = #tpu.dot_dimension_numbers<[1], [0], [0], [1], [0, 0, 1, 1], [], []>} : vector<8x8xf32>, vector<8x32xf32>, vector<8x32xf32> -> vector<8x32xf32>
    %194 = arith.addf %168, %193 : vector<8x32xf32>
    %195 = vector.extract_strided_slice %114 {offsets = [3, 0, 0], sizes = [1, 32, 8], strides = [1, 1, 1]} : vector<4x32x8xf32> to vector<1x32x8xf32>
    %196 = vector.shape_cast %195 : vector<1x32x8xf32> to vector<32x8xf32>
    %cst_93 = arith.constant dense<0.000000e+00> : vector<8x8xf32>
    %197 = tpu.matmul %3, %196, %cst_93 {dimension_numbers = #tpu.dot_dimension_numbers<[1], [0], [0], [1], [0, 0, 1, 1], [], []>} : vector<8x32xf32>, vector<32x8xf32>, vector<8x8xf32> -> vector<8x8xf32>
    %198 = vector.extract_strided_slice %115 {offsets = [3, 0, 0], sizes = [1, 32, 8], strides = [1, 1, 1]} : vector<4x32x8xf32> to vector<1x32x8xf32>
    %199 = vector.shape_cast %198 : vector<1x32x8xf32> to vector<32x8xf32>
    %cst_94 = arith.constant dense<0.000000e+00> : vector<8x8xf32>
    %200 = tpu.matmul %1, %199, %cst_94 {dimension_numbers = #tpu.dot_dimension_numbers<[1], [0], [0], [1], [0, 0, 1, 1], [], []>} : vector<8x32xf32>, vector<32x8xf32>, vector<8x8xf32> -> vector<8x8xf32>
    %201 = vector.extract_strided_slice %116 {offsets = [3, 0, 0], sizes = [1, 32, 8], strides = [1, 1, 1]} : vector<4x32x8xf32> to vector<1x32x8xf32>
    %202 = vector.shape_cast %201 : vector<1x32x8xf32> to vector<32x8xf32>
    %cst_95 = arith.constant dense<0.000000e+00> : vector<8x8xf32>
    %203 = tpu.matmul %1, %202, %cst_95 {dimension_numbers = #tpu.dot_dimension_numbers<[1], [0], [0], [1], [0, 0, 1, 1], [], []>} : vector<8x32xf32>, vector<32x8xf32>, vector<8x8xf32> -> vector<8x8xf32>
    %cst_96 = arith.constant dense<0.000000e+00> : vector<8x8xf32>
    %204 = tpu.matmul %197, %200, %cst_96 {dimension_numbers = #tpu.dot_dimension_numbers<[1], [1], [0], [0], [0, 0, 1, 0], [], []>} : vector<8x8xf32>, vector<8x8xf32>, vector<8x8xf32> -> vector<8x8xf32>
    %cst_97 = arith.constant 0.353553385 : f32
    %205 = vector.broadcast %cst_97 : f32 to vector<8x8xf32>
    %206 = arith.mulf %204, %205 : vector<8x8xf32>
    %cst_98 = arith.constant dense<0xFF800000> : vector<8xf32>
    %207 = vector.multi_reduction <maximumf>, %206, %cst_98 [1] : vector<8x8xf32> to vector<8xf32>
    %208 = vector.shape_cast %207 : vector<8xf32> to vector<8x1xf32>
    %209 = vector.broadcast %208 : vector<8x1xf32> to vector<8x8xf32>
    %210 = arith.subf %206, %209 : vector<8x8xf32>
    %211 = math.exp %210 : vector<8x8xf32>
    %cst_99 = arith.constant dense<0.000000e+00> : vector<8xf32>
    %212 = vector.multi_reduction <add>, %211, %cst_99 [1] : vector<8x8xf32> to vector<8xf32>
    %213 = vector.shape_cast %212 : vector<8xf32> to vector<8x1xf32>
    %214 = vector.broadcast %213 : vector<8x1xf32> to vector<8x8xf32>
    %215 = arith.divf %211, %214 : vector<8x8xf32>
    %cst_100 = arith.constant dense<0.000000e+00> : vector<8x8xf32>
    %216 = tpu.matmul %215, %203, %cst_100 {dimension_numbers = #tpu.dot_dimension_numbers<[1], [0], [0], [1], [0, 0, 1, 1], [], []>} : vector<8x8xf32>, vector<8x8xf32>, vector<8x8xf32> -> vector<8x8xf32>
    %217 = vector.extract_strided_slice %117 {offsets = [3, 0, 0], sizes = [1, 8, 32], strides = [1, 1, 1]} : vector<4x8x32xf32> to vector<1x8x32xf32>
    %218 = vector.shape_cast %217 : vector<1x8x32xf32> to vector<8x32xf32>
    %cst_101 = arith.constant dense<0.000000e+00> : vector<8x32xf32>
    %219 = tpu.matmul %216, %218, %cst_101 {dimension_numbers = #tpu.dot_dimension_numbers<[1], [0], [0], [1], [0, 0, 1, 1], [], []>} : vector<8x8xf32>, vector<8x32xf32>, vector<8x32xf32> -> vector<8x32xf32>
    %220 = arith.addf %194, %219 : vector<8x32xf32>
    %c0_102 = arith.constant 0 : index
    %c0_103 = arith.constant 0 : index
    %221 = vector.load %arg7[%c0_102, %c0_103] : memref<1x32xf32, #tpu.memory_space<vmem>>, vector<1x32xf32>
    %222 = vector.broadcast %221 : vector<1x32xf32> to vector<8x32xf32>
    %223 = arith.addf %220, %222 : vector<8x32xf32>
    %cst_104 = arith.constant dense<0.000000e+00> : vector<32xf32>
    %224 = vector.multi_reduction <add>, %113, %cst_104 [0] : vector<8x32xf32> to vector<32xf32>
    %225 = vector.shape_cast %224 : vector<32xf32> to vector<1x32xf32>
    %cst_105 = arith.constant 8.000000e+00 : f32
    %226 = vector.broadcast %cst_105 : f32 to vector<1x32xf32>
    %227 = arith.divf %225, %226 : vector<1x32xf32>
    %c0_106 = arith.constant 0 : index
    %c0_107 = arith.constant 0 : index
    %228 = vector.load %arg8[%c0_106, %c0_107] : memref<1x32xf32, #tpu.memory_space<vmem>>, vector<1x32xf32>
    %c0_108 = arith.constant 0 : index
    %c0_109 = arith.constant 0 : index
    %229 = vector.load %arg9[%c0_108, %c0_109] : memref<1x32xf32, #tpu.memory_space<vmem>>, vector<1x32xf32>
    %cst_110 = arith.constant dense<0.000000e+00> : vector<1xf32>
    %230 = vector.multi_reduction <add>, %227, %cst_110 [1] : vector<1x32xf32> to vector<1xf32>
    %231 = vector.shape_cast %230 : vector<1xf32> to vector<1x1xf32>
    %cst_111 = arith.constant 3.200000e+01 : f32
    %232 = vector.broadcast %cst_111 : f32 to vector<1x1xf32>
    %233 = arith.divf %231, %232 : vector<1x1xf32>
    %234 = vector.broadcast %233 : vector<1x1xf32> to vector<1x32xf32>
    %235 = arith.subf %227, %234 : vector<1x32xf32>
    %236 = arith.mulf %235, %235 : vector<1x32xf32>
    %cst_112 = arith.constant dense<0.000000e+00> : vector<1xf32>
    %237 = vector.multi_reduction <add>, %236, %cst_112 [1] : vector<1x32xf32> to vector<1xf32>
    %238 = vector.shape_cast %237 : vector<1xf32> to vector<1x1xf32>
    %cst_113 = arith.constant 3.200000e+01 : f32
    %239 = vector.broadcast %cst_113 : f32 to vector<1x1xf32>
    %240 = arith.divf %238, %239 : vector<1x1xf32>
    %241 = vector.broadcast %233 : vector<1x1xf32> to vector<1x32xf32>
    %242 = arith.subf %227, %241 : vector<1x32xf32>
    %cst_114 = arith.constant 9.99999997E-7 : f32
    %243 = vector.broadcast %cst_114 : f32 to vector<1x1xf32>
    %244 = arith.addf %240, %243 : vector<1x1xf32>
    %245 = math.rsqrt %244 : vector<1x1xf32>
    %246 = vector.broadcast %245 : vector<1x1xf32> to vector<1x32xf32>
    %247 = arith.mulf %242, %246 : vector<1x32xf32>
    %248 = arith.mulf %247, %228 : vector<1x32xf32>
    %249 = arith.addf %248, %229 : vector<1x32xf32>
    %cst_115 = arith.constant dense<0.000000e+00> : vector<32xf32>
    %250 = vector.multi_reduction <add>, %223, %cst_115 [0] : vector<8x32xf32> to vector<32xf32>
    %251 = vector.shape_cast %250 : vector<32xf32> to vector<1x32xf32>
    %cst_116 = arith.constant 8.000000e+00 : f32
    %252 = vector.broadcast %cst_116 : f32 to vector<1x32xf32>
    %253 = arith.divf %251, %252 : vector<1x32xf32>
    %c0_117 = arith.constant 0 : index
    %c0_118 = arith.constant 0 : index
    %254 = vector.load %arg8[%c0_117, %c0_118] : memref<1x32xf32, #tpu.memory_space<vmem>>, vector<1x32xf32>
    %c0_119 = arith.constant 0 : index
    %c0_120 = arith.constant 0 : index
    %255 = vector.load %arg9[%c0_119, %c0_120] : memref<1x32xf32, #tpu.memory_space<vmem>>, vector<1x32xf32>
    %cst_121 = arith.constant dense<0.000000e+00> : vector<1xf32>
    %256 = vector.multi_reduction <add>, %253, %cst_121 [1] : vector<1x32xf32> to vector<1xf32>
    %257 = vector.shape_cast %256 : vector<1xf32> to vector<1x1xf32>
    %cst_122 = arith.constant 3.200000e+01 : f32
    %258 = vector.broadcast %cst_122 : f32 to vector<1x1xf32>
    %259 = arith.divf %257, %258 : vector<1x1xf32>
    %260 = vector.broadcast %259 : vector<1x1xf32> to vector<1x32xf32>
    %261 = arith.subf %253, %260 : vector<1x32xf32>
    %262 = arith.mulf %261, %261 : vector<1x32xf32>
    %cst_123 = arith.constant dense<0.000000e+00> : vector<1xf32>
    %263 = vector.multi_reduction <add>, %262, %cst_123 [1] : vector<1x32xf32> to vector<1xf32>
    %264 = vector.shape_cast %263 : vector<1xf32> to vector<1x1xf32>
    %cst_124 = arith.constant 3.200000e+01 : f32
    %265 = vector.broadcast %cst_124 : f32 to vector<1x1xf32>
    %266 = arith.divf %264, %265 : vector<1x1xf32>
    %267 = vector.broadcast %259 : vector<1x1xf32> to vector<1x32xf32>
    %268 = arith.subf %253, %267 : vector<1x32xf32>
    %cst_125 = arith.constant 9.99999997E-7 : f32
    %269 = vector.broadcast %cst_125 : f32 to vector<1x1xf32>
    %270 = arith.addf %266, %269 : vector<1x1xf32>
    %271 = math.rsqrt %270 : vector<1x1xf32>
    %272 = vector.broadcast %271 : vector<1x1xf32> to vector<1x32xf32>
    %273 = arith.mulf %268, %272 : vector<1x32xf32>
    %274 = arith.mulf %273, %254 : vector<1x32xf32>
    %275 = arith.addf %274, %255 : vector<1x32xf32>
    %c0_126 = arith.constant 0 : index
    %c0_127 = arith.constant 0 : index
    %276 = vector.load %arg10[%c0_126, %c0_127] : memref<64x32xf32, #tpu.memory_space<vmem>>, vector<32x32xf32>
    %cst_128 = arith.constant dense<0.000000e+00> : vector<1x32xf32>
    %277 = tpu.matmul %249, %276, %cst_128 {dimension_numbers = #tpu.dot_dimension_numbers<[1], [0], [0], [1], [0, 0, 1, 1], [], []>} : vector<1x32xf32>, vector<32x32xf32>, vector<1x32xf32> -> vector<1x32xf32>
    %c32 = arith.constant 32 : index
    %c0_129 = arith.constant 0 : index
    %278 = vector.load %arg10[%c32, %c0_129] : memref<64x32xf32, #tpu.memory_space<vmem>>, vector<32x32xf32>
    %cst_130 = arith.constant dense<0.000000e+00> : vector<1x32xf32>
    %279 = tpu.matmul %275, %278, %cst_130 {dimension_numbers = #tpu.dot_dimension_numbers<[1], [0], [0], [1], [0, 0, 1, 1], [], []>} : vector<1x32xf32>, vector<32x32xf32>, vector<1x32xf32> -> vector<1x32xf32>
    %280 = arith.addf %277, %279 : vector<1x32xf32>
    %c0_131 = arith.constant 0 : index
    %c0_132 = arith.constant 0 : index
    %281 = vector.load %arg11[%c0_131, %c0_132] : memref<1x32xf32, #tpu.memory_space<vmem>>, vector<1x32xf32>
    %282 = arith.addf %280, %281 : vector<1x32xf32>
    %cst_133 = arith.constant 5.000000e-01 : f32
    %283 = vector.broadcast %cst_133 : f32 to vector<1x32xf32>
    %284 = arith.mulf %283, %282 : vector<1x32xf32>
    %cst_134 = arith.constant 0.707106769 : f32
    %285 = vector.broadcast %cst_134 : f32 to vector<1x32xf32>
    %286 = arith.mulf %282, %285 : vector<1x32xf32>
    %287 = math.erf %286 : vector<1x32xf32>
    %cst_135 = arith.constant 1.000000e+00 : f32
    %288 = vector.broadcast %cst_135 : f32 to vector<1x32xf32>
    %289 = arith.addf %288, %287 : vector<1x32xf32>
    %290 = arith.mulf %284, %289 : vector<1x32xf32>
    %c0_136 = arith.constant 0 : index
    %c0_137 = arith.constant 0 : index
    %291 = vector.load %arg12[%c0_136, %c0_137] : memref<32x3xf32, #tpu.memory_space<vmem>>, vector<32x3xf32>
    %cst_138 = arith.constant dense<0.000000e+00> : vector<1x3xf32>
    %292 = tpu.matmul %290, %291, %cst_138 {dimension_numbers = #tpu.dot_dimension_numbers<[1], [0], [0], [1], [0, 0, 1, 1], [], []>} : vector<1x32xf32>, vector<32x3xf32>, vector<1x3xf32> -> vector<1x3xf32>
    %c0_139 = arith.constant 0 : index
    %c0_140 = arith.constant 0 : index
    %293 = vector.load %arg13[%c0_139, %c0_140] : memref<1x3xf32, #tpu.memory_space<vmem>>, vector<1x3xf32>
    %294 = arith.addf %292, %293 : vector<1x3xf32>
    %c0_141 = arith.constant 0 : index
    %c0_142 = arith.constant 0 : index
    %c0_143 = arith.constant 0 : index
    %295 = vector.load %arg14[%c0_141, %c0_142, %c0_143] : memref<1x1x3xf32, #tpu.memory_space<vmem>>, vector<1x1x3xf32>
    %296 = vector.shape_cast %295 : vector<1x1x3xf32> to vector<1x3xf32>
    %297 = vector.shape_cast %294 : vector<1x3xf32> to vector<1x1x3xf32>
    tpu.vector_store %arg14[%c0_141, %c0_142, %c0_143], %297 {strides = array<i32>} : memref<1x1x3xf32, #tpu.memory_space<vmem>>, vector<1x1x3xf32>,
    return
  }
  func.func @transform_0(%arg0: i32) -> (i32, i32, i32) {
    %c0_i32 = arith.constant 0 : i32
    %c0_i32_0 = arith.constant 0 : i32
    %c0_i32_1 = arith.constant 0 : i32
    return %arg0, %c0_i32, %c0_i32_0 : i32, i32, i32
  }
  func.func @transform_1(%arg0: i32) -> (i32, i32, i32) {
    %c0_i32 = arith.constant 0 : i32
    %c0_i32_0 = arith.constant 0 : i32
    %c0_i32_1 = arith.constant 0 : i32
    return %arg0, %c0_i32, %c0_i32_0 : i32, i32, i32
  }
  func.func @transform_2(%arg0: i32) -> (i32, i32, i32) {
    %c0_i32 = arith.constant 0 : i32
    %c0_i32_0 = arith.constant 0 : i32
    %c0_i32_1 = arith.constant 0 : i32
    %c0_i32_2 = arith.constant 0 : i32
    return %c0_i32, %c0_i32_0, %c0_i32_1 : i32, i32, i32
  }
  func.func @transform_3(%arg0: i32) -> (i32, i32, i32) {
    %c0_i32 = arith.constant 0 : i32
    %c0_i32_0 = arith.constant 0 : i32
    %c0_i32_1 = arith.constant 0 : i32
    %c0_i32_2 = arith.constant 0 : i32
    return %c0_i32, %c0_i32_0, %c0_i32_1 : i32, i32, i32
  }
  func.func @transform_4(%arg0: i32) -> (i32, i32, i32) {
    %c0_i32 = arith.constant 0 : i32
    %c0_i32_0 = arith.constant 0 : i32
    %c0_i32_1 = arith.constant 0 : i32
    %c0_i32_2 = arith.constant 0 : i32
    return %c0_i32, %c0_i32_0, %c0_i32_1 : i32, i32, i32
  }
  func.func @transform_5(%arg0: i32) -> (i32, i32, i32) {
    %c0_i32 = arith.constant 0 : i32
    %c0_i32_0 = arith.constant 0 : i32
    %c0_i32_1 = arith.constant 0 : i32
    %c0_i32_2 = arith.constant 0 : i32
    return %c0_i32, %c0_i32_0, %c0_i32_1 : i32, i32, i32
  }
  func.func @transform_6(%arg0: i32) -> (i32, i32) {
    %c0_i32 = arith.constant 0 : i32
    %c0_i32_0 = arith.constant 0 : i32
    %c0_i32_1 = arith.constant 0 : i32
    return %c0_i32, %c0_i32_0 : i32, i32
  }
  func.func @transform_7(%arg0: i32) -> (i32, i32) {
    %c0_i32 = arith.constant 0 : i32
    %c0_i32_0 = arith.constant 0 : i32
    %c0_i32_1 = arith.constant 0 : i32
    return %c0_i32, %c0_i32_0 : i32, i32
  }
  func.func @transform_8(%arg0: i32) -> (i32, i32) {
    %c0_i32 = arith.constant 0 : i32
    %c0_i32_0 = arith.constant 0 : i32
    %c0_i32_1 = arith.constant 0 : i32
    return %c0_i32, %c0_i32_0 : i32, i32
  }
  func.func @transform_9(%arg0: i32) -> (i32, i32) {
    %c0_i32 = arith.constant 0 : i32
    %c0_i32_0 = arith.constant 0 : i32
    %c0_i32_1 = arith.constant 0 : i32
    return %c0_i32, %c0_i32_0 : i32, i32
  }
  func.func @transform_10(%arg0: i32) -> (i32, i32) {
    %c0_i32 = arith.constant 0 : i32
    %c0_i32_0 = arith.constant 0 : i32
    %c0_i32_1 = arith.constant 0 : i32
    return %c0_i32, %c0_i32_0 : i32, i32
  }
  func.func @transform_11(%arg0: i32) -> (i32, i32) {
    %c0_i32 = arith.constant 0 : i32
    %c0_i32_0 = arith.constant 0 : i32
    %c0_i32_1 = arith.constant 0 : i32
    return %c0_i32, %c0_i32_0 : i32, i32
  }
  func.func @transform_12(%arg0: i32) -> (i32, i32) {
    %c0_i32 = arith.constant 0 : i32
    %c0_i32_0 = arith.constant 0 : i32
    %c0_i32_1 = arith.constant 0 : i32
    return %c0_i32, %c0_i32_0 : i32, i32
  }
  func.func @transform_13(%arg0: i32) -> (i32, i32, i32) {
    %c0_i32 = arith.constant 0 : i32
    %c0_i32_0 = arith.constant 0 : i32
    %c0_i32_1 = arith.constant 0 : i32
    return %arg0, %c0_i32, %c0_i32_0 : i32, i32, i32
  }
}

</mosaic_0001>

<bundles_post_ra>
// kernel: _lambda_.6
= control target key start
LH: loop header
LB: loop body
LE: loop exit
PB: predicated region body
PF: predicated region fallthrough
CT: control target
= control target key end

     0   :  { %s2728_s13 = smov 0   ;;  %s3096_s0 = inlined_call_operand.vmem [shape: f32[4,8,32], index: 0, kind: input, shape index: {}]   ;;  %s3097_s1 = inlined_call_operand.vmem [shape: f32[4,32,8], index: 1, kind: input, shape index: {}]   ;;  %s3098_s2 = inlined_call_operand.vmem [shape: f32[4,32,8], index: 2, kind: input, shape index: {}]   ;;  %s3099_s3 = inlined_call_operand.vmem [shape: f32[4,32,8], index: 3, kind: input, shape index: {}]   ;;  %s3100_s4 = inlined_call_operand.vmem [shape: f32[4,8,32], index: 4, kind: input, shape index: {}]   ;;  %s3101_s5 = inlined_call_operand.vmem [shape: f32[1,32], index: 5, kind: input, shape index: {}]   ;;  %s3102_s6 = inlined_call_operand.vmem [shape: f32[1,32], index: 6, kind: input, shape index: {}]   ;;  %s3103_s7 = inlined_call_operand.vmem [shape: f32[1,32], index: 7, kind: input, shape index: {}]   ;;  %s3104_s8 = inlined_call_operand.vmem [shape: f32[1,32], index: 8, kind: input, shape index: {}]   ;;  %s3105_s9 = inlined_call_operand.vmem [shape: f32[1,32], index: 9, kind: input, shape index: {}]   ;;  %s3106_s10 = inlined_call_operand.vmem [shape: f32[4,8,32], index: 10, kind: output, shape index: {}]  }
   0x1 LB: > { %s2315_s14 = sadd.s32 4294967295, %s2669_s13   ;;  %p2319_p0 = scmp.ge.s32.totalorder %s2669_s13, 1  ;;  %s2669_s13 = sphi %s2728_s13, %s20_s13  }
   0x2   : > { %p311_p1 = scmp.lt.s32.totalorder %s2669_s13, 5 }
   0x4   : > { %p312_p2 = pnand %p2319_p0, %p311_p1 }
   0x5   : > { %p347_p3 = scmp.lt.s32.totalorder (!%p312_p2), %s2315_s14, 3 }
   0x6   : > { %315 = sbr.rel (%p312_p2) target bundleno = 4241 (0x1091), region = 60 }
   0xb   : > { %s3108_s14 = smov (!%p347_p3, %s2315_s14), 3  ;;  %vm358_vm0 = vcmask 261120   ;;  %v2671_v7 = vmov 0.0   ;;  %v390_v8 = vld [vmem:[%s3097_s1 + $0x18] sm:$0xff]  ;;  %v389_v9 = vld [vmem:[%s3097_s1 + $0x10] sm:$0xff]  ;;  %v388_v10 = vld [vmem:[%s3097_s1 + $0x8] sm:$0xff] }
   0xc   : > { %s2320_s15 = sshll.u32 %s3108_s14, 3  ;;  %2441 = vmatprep.subr.mxu0 %v2671_v7  ;;  %2452 = vmatprep.subr.mxu1 %v2671_v7  ;;  %v387_v11 = vld [vmem:[%s3097_s1] sm:$0xff]  ;;  %vm2672_vm1 = vmmov 0   ;;  %v422_v12 = vld [vmem:[%s3099_s3 + $0x18] sm:$0xff]  ;;  %v421_v14 = vld [vmem:[%s3099_s3 + $0x10] sm:$0xff]  ;;  %vm655_vm2 = vcmask 64512  }
   0xd   : > { %s350_s18 = scalar_lea.vmem %s3096_s0, %s2320_s15  ;;  %2442 = vmatpush3.msra.mxu0 %v390_v8  ;;  %2449 = vmatprep.mubr.msk.f32.mxu0 %vm2672_vm1, %v2671_v7  ;;  %v406_v13 = vld [vmem:[%s3098_s2 + $0x18] sm:$0xff]  ;;  %v405_v15 = vld [vmem:[%s3098_s2 + $0x10] sm:$0xff]  ;;  %v420_v16 = vld [vmem:[%s3099_s3 + $0x8] sm:$0xff]  ;;  %s354_s16 = scalar_lea.vmem %s3106_s10, %s2320_s15 }
   0xe   : > { %v2744_v0 = vld [vmem:[%s350_s18] sm:$0xff]  ;;  %2443 = vmatprep.subr.mxu0 %v2671_v7  ;;  %2460 = vmatprep.mubr.msk.f32.mxu1 %vm2672_vm1, %v2671_v7  ;;  %v404_v17 = vld [vmem:[%s3098_s2 + $0x8] sm:$0xff]  ;;  %v394_v29 = vld [vmem:[%s3097_s1 + $0x38] sm:$0xff] }
   0xf   : > { %v359_v1 = vsel %vm358_vm0, %v2744_v0, 0.0  ;;  %2444 = vmatpush3.msra.mxu0 %v389_v9  ;;  %2453 = vmatpush3.msra.mxu1 %v406_v13  ;;  %v419_v18 = vld [vmem:[%s3099_s3] sm:$0xff]  ;;  %v393_v30 = vld [vmem:[%s3097_s1 + $0x30] sm:$0xff]  ;;  %v392_v31 = vld [vmem:[%s3097_s1 + $0x28] sm:$0xff] }
  0x10   : > { %360 = vadd.xlane.f32.xlu0 %v359_v1  ;;  %2445 = vmatprep.subr.mxu0 %v2671_v7  ;;  %v403_v19 = vld [vmem:[%s3098_s2] sm:$0xff]  ;;  %v426_v33 = vld [vmem:[%s3099_s3 + $0x38] sm:$0xff]  ;;  %v425_v34 = vld [vmem:[%s3099_s3 + $0x30] sm:$0xff] }
  0x11   : > { %2446 = vmatpush3.msra.mxu0 %v388_v10  ;;  %2454 = vmatprep.subr.mxu1 %v2671_v7  ;;  %v2322_v24 = vld [vmem:[%s3102_s6] ss:$0 sm:$0xff]  ;;  %v424_v35 = vld [vmem:[%s3099_s3 + $0x28] sm:$0xff]  ;;  %v410_v59 = vld [vmem:[%s3098_s2 + $0x38] sm:$0xff] }
  0x12   : > { %2447 = vmatprep.subr.mxu0 %v2671_v7  ;;  %2455 = vmatpush3.msra.mxu1 %v405_v15  ;;  %v2323_v26 = vld [vmem:[%s3103_s7] ss:$0 sm:$0xff]  ;;  %v409_v60 = vld [vmem:[%s3098_s2 + $0x30] sm:$0xff]  ;;  %v408_v61 = vld [vmem:[%s3098_s2 + $0x28] sm:$0xff] }
  0x13   : > { %2448 = vmatpush3.msra.mxu0 %v387_v11  ;;  %2456 = vmatprep.subr.mxu1 %v2671_v7  ;;  %v391_v32 = vld [vmem:[%s3097_s1 + $0x20] sm:$0xff] }
  0x14   : > { %2463 = vmatprep.subr.mxu0 %v2671_v7  ;;  %2450 = vmatmul.mubr.msk.f32.vlgmr.msra.gmra.mxu0 %vm358_vm0, %v2744_v0  ;;  %v423_v36 = vld [vmem:[%s3099_s3 + $0x20] sm:$0xff] }
  0x15   : > { %2464 = vmatpush3.msra.mxu0 %v422_v12  ;;  %2457 = vmatpush3.msra.mxu1 %v404_v17  ;;  %v407_v62 = vld [vmem:[%s3098_s2 + $0x20] sm:$0xff] }
  0x16   : > { %2465 = vmatprep.subr.mxu0 %v2671_v7  ;;  %2458 = vmatprep.subr.mxu1 %v2671_v7 }
  0x17   : > { %2466 = vmatpush3.msra.mxu0 %v421_v14  ;;  %2459 = vmatpush3.msra.mxu1 %v403_v19  ;;  %v436_v14 = vld [vmem:[%s3100_s4 + $0x8] sm:$0xff]  ;;  %v414_v19 = vld [vmem:[%s3098_s2 + $0x58] sm:$0xff] }
  0x18   : > { %2467 = vmatprep.subr.mxu0 %v2671_v7  ;;  %2471 = vmatprep.mubr.msk.f32.mxu0 %vm2672_vm1, %v2671_v7 }
  0x19   : > { %2468 = vmatpush3.msra.mxu0 %v420_v16  ;;  %2474 = vmatprep.subr.mxu1 %v2671_v7 }
  0x1a   : > { %2469 = vmatprep.subr.mxu0 %v2671_v7 }
  0x1b   : > { %2470 = vmatpush3.msra.mxu0 %v419_v18  ;;  %v435_v18 = vld [vmem:[%s3100_s4] sm:$0xff] }
  0x1c   : > { %2484 = vmatprep.subr.mxu0 %v2671_v7 }
  0x99   : > { %v361_v2 = vpop.xlane.xlu0 %360 }
  0x9a   : > { %v363_v3 = vmul.f32 0.03125, %v361_v2 }
  0x9c   : > { %v364_v4 = vsub.f32 %v2744_v0, %v363_v3 }
  0x9e   : > { %v365_v5 = vmul.f32 %v364_v4, %v364_v4 }
  0xa0   : > { %v366_v6 = vsel %vm358_vm0, %v365_v5, 0.0 }
  0xa1   : > { %367 = vadd.xlane.f32.xlu0 %v366_v6 }
  0xd4   : > { %v508_v37 = vpop.f32.mrf.mxu0 }
  0xd6   : > { %v2451_v38 = vpop.f32.mrf.mxu0 }
 0x12a   : > { %v368_v20 = vpop.xlane.xlu0 %367 }
 0x12b   : > { %v369_v21 = vmul.f32 0.03125, %v368_v20  ;;  %v413_v20 = vld [vmem:[%s3098_s2 + $0x50] sm:$0xff] }
 0x12d   : > { %v370_v22 = vadd.f32 1e-06, %v369_v21  ;;  %v412_v21 = vld [vmem:[%s3098_s2 + $0x48] sm:$0xff] }
 0x12f   : > { %2643 = vrsqrt.f32 %v370_v22  ;;  %v411_v22 = vld [vmem:[%s3098_s2 + $0x40] sm:$0xff] }
 0x13c   : > { %v2644_v23 = vpop.eup %2643 }
 0x13d   : > { %v372_v25 = vmul.f32 %v2644_v23, %v364_v4  ;;  %v398_v23 = vld [vmem:[%s3097_s1 + $0x58] sm:$0xff] }
 0x13f   : > { %v379_v27 = vmul.f32 %v2322_v24, %v372_v25  ;;  %v397_v25 = vld [vmem:[%s3097_s1 + $0x50] sm:$0xff] }
 0x141   : > { %v2814_v28 = vadd.f32 %v2323_v26, %v379_v27  ;;  %v396_v27 = vld [vmem:[%s3097_s1 + $0x48] sm:$0xff] }
 0x143   : > { %2461 = vmatmul.mubr.msk.f32.vlgmr.msra.gmra.mxu1 %vm358_vm0, %v2814_v28  ;;  %2472 = vmatmul.mubr.msk.f32.vlgmr.msra.gmra.mxu0 %vm358_vm0, %v2814_v28 }
 0x144   : > { %2485 = vmatpush3.msra.mxu0 %v394_v29  ;;  %2492 = vmatprep.mubr.msk.f32.mxu0 %vm2672_vm1, %v2671_v7 }
 0x145   : > { %2486 = vmatprep.subr.mxu0 %v2671_v7  ;;  %2476 = vmatprep.mubr.msk.f32.mxu1 %vm2672_vm1, %v2671_v7 }
 0x146   : > { %2487 = vmatpush3.msra.mxu0 %v393_v30  ;;  %v395_v30 = vld [vmem:[%s3097_s1 + $0x40] sm:$0xff] }
 0x147   : > { %2488 = vmatprep.subr.mxu0 %v2671_v7 }
 0x148   : > { %2489 = vmatpush3.msra.mxu0 %v392_v31 }
 0x149   : > { %2490 = vmatprep.subr.mxu0 %v2671_v7 }
 0x14a   : > { %2491 = vmatpush3.msra.mxu0 %v391_v32  ;;  %v430_v32 = vld [vmem:[%s3099_s3 + $0x58] sm:$0xff] }
 0x14b   : > { %2506 = vmatprep.subr.mxu0 %v2671_v7  ;;  %2493 = vmatmul.mubr.msk.f32.vlgmr.msra.gmra.mxu0 %vm358_vm0, %v2744_v0 }
 0x14c   : > { %2507 = vmatpush3.msra.mxu0 %v426_v33  ;;  %2514 = vmatprep.mubr.msk.f32.mxu0 %vm2672_vm1, %v2671_v7  ;;  %v429_v33 = vld [vmem:[%s3099_s3 + $0x50] sm:$0xff] }
 0x14d   : > { %2508 = vmatprep.subr.mxu0 %v2671_v7 }
 0x14e   : > { %2509 = vmatpush3.msra.mxu0 %v425_v34  ;;  %v428_v34 = vld [vmem:[%s3099_s3 + $0x48] sm:$0xff] }
 0x14f   : > { %2510 = vmatprep.subr.mxu0 %v2671_v7 }
 0x150   : > { %2511 = vmatpush3.msra.mxu0 %v424_v35 }
 0x151   : > { %2512 = vmatprep.subr.mxu0 %v2671_v7 }
 0x152   : > { %2513 = vmatpush3.msra.mxu0 %v423_v36  ;;  %v427_v36 = vld [vmem:[%s3099_s3 + $0x40] sm:$0xff] }
 0x153   : > { %2515 = vmatmul.mubr.msk.f32.vlgmr.msra.gmra.mxu0 %vm358_vm0, %v2814_v28  ;;  %2527 = vmatprep.subr.mxu0 %v2671_v7 }
 0x154   : > { %2529 = vmatprep.mubr.msk.f32.mxu0 %vm2672_vm1, %v2671_v7  ;;  %2528 = vmatpush3.msra.mxu0 %v436_v14 }
 0x155   : > { %2537 = vmatprep.subr.mxu0 %v2671_v7 }
 0x203   : > { %v581_v39 = vpop.f32.mrf.mxu1  ;;  %v651_v40 = vpop.f32.mrf.mxu0 }
 0x204   : > { %2475 = vmatpush3.xpose.msk.msra.mxu1 %vm655_vm2, %v581_v39 }
 0x205   : > { %v2462_v41 = vpop.f32.mrf.mxu1  ;;  %v2473_v42 = vpop.f32.mrf.mxu0  ;;  %2479 = vmatprep.subr.mxu1 %v2671_v7 }
 0x207   : > { %2477 = vmatmul.mubr.msk.f32.vlgmr.msra.gmra.mxu1 %vm655_vm2, %v508_v37 }
 0x208   : > { %2480 = vmatpush3.msra.mxu1 %v651_v40  ;;  %2481 = vmatprep.mubr.msk.f32.mxu1 %vm2672_vm1, %v2671_v7 }
 0x209   : > { %2495 = vmatprep.subr.mxu1 %v2671_v7 }
 0x20b   : > { %v883_v43 = vpop.f32.mrf.mxu0 }
 0x20d   : > { %v2494_v44 = vpop.f32.mrf.mxu0 }
 0x213   : > { %v1023_v45 = vpop.f32.mrf.mxu0 }
 0x215   : > { %v2516_v46 = vpop.f32.mrf.mxu0 }
 0x2c7   : > { %v728_v47 = vpop.f32.mrf.mxu1 }
 0x2c8   : > { %v732_v48 = vmul.f32 0.35355338, %v728_v47 }
 0x2c9   : > { %v2478_v49 = vpop.f32.mrf.mxu1 }
 0x2ca   : > { %v733_v50 = vsel %vm655_vm2, %v732_v48, -inf }
 0x2cb   : > { %734 = vmax.xlane.f32.xlu1 %v733_v50 }
 0x354   : > { %v735_v51 = vpop.xlane.xlu1 %734 }
 0x355   : > { %v736_v52 = vsub.f32 %v732_v48, %v735_v51 }
 0x357   : > { %v737_v53 = vmul.f32 1.442695, %v736_v52 }
 0x359   : > { %2645 = vpow2.f32 %v737_v53  ;;  %v437_v53 = vld [vmem:[%s3100_s4 + $0x10] sm:$0xff] }
 0x366   : > { %v2646_v54 = vpop.eup %2645 }
 0x367   : > { %v739_v55 = vsel %vm655_vm2, %v2646_v54, 0.0 }
 0x368   : > { %740 = vadd.xlane.f32.xlu1 %v739_v55 }
 0x3f1   : > { %v741_v56 = vpop.xlane.xlu1 %740 }
 0x3f2   : > { %2647 = vrcp.f32 %v741_v56 }
 0x3ff   : > { %v2648_v57 = vpop.eup %2647 }
 0x400   : > { %v743_v58 = vmul.f32 %v2648_v57, %v2646_v54  ;;  %v402_v57 = vld [vmem:[%s3097_s1 + $0x78] sm:$0xff] }
 0x402   : > { %2482 = vmatmul.mubr.msk.f32.vlgmr.msra.gmra.mxu1 %vm655_vm2, %v743_v58  ;;  %v401_v58 = vld [vmem:[%s3097_s1 + $0x70] sm:$0xff] }
 0x403   : > { %2496 = vmatpush3.msra.mxu1 %v410_v59  ;;  %2503 = vmatprep.mubr.msk.f32.mxu1 %vm2672_vm1, %v2671_v7  ;;  %v400_v59 = vld [vmem:[%s3097_s1 + $0x68] sm:$0xff] }
 0x404   : > { %2497 = vmatprep.subr.mxu1 %v2671_v7 }
 0x405   : > { %2498 = vmatpush3.msra.mxu1 %v409_v60  ;;  %v399_v60 = vld [vmem:[%s3097_s1 + $0x60] sm:$0xff] }
 0x406   : > { %2499 = vmatprep.subr.mxu1 %v2671_v7 }
 0x407   : > { %2500 = vmatpush3.msra.mxu1 %v408_v61  ;;  %v434_v61 = vld [vmem:[%s3099_s3 + $0x78] sm:$0xff] }
 0x408   : > { %2501 = vmatprep.subr.mxu1 %v2671_v7 }
 0x409   : > { %2502 = vmatpush3.msra.mxu1 %v407_v62  ;;  %v433_v62 = vld [vmem:[%s3099_s3 + $0x70] sm:$0xff] }
 0x40a   : > { %2504 = vmatmul.mubr.msk.f32.vlgmr.msra.gmra.mxu1 %vm358_vm0, %v2814_v28  ;;  %2517 = vmatprep.subr.mxu1 %v2671_v7 }
 0x40b   : > { %2519 = vmatprep.mubr.msk.f32.mxu1 %vm2672_vm1, %v2671_v7 }
 0x4c2   : > { %v813_v63 = vpop.f32.mrf.mxu1 }
 0x4c4   : > { %v2483_v1 = vpop.f32.mrf.mxu1 }
 0x4c5   : > { %v418_v1 = vld [vmem:[%s3098_s2 + $0x78] sm:$0xff] }
 0x4ca   : > { %v953_v2 = vpop.f32.mrf.mxu1 }
 0x4cb   : > { %2518 = vmatpush3.xpose.msk.msra.mxu1 %vm655_vm2, %v953_v2 }
 0x4cc   : > { %v2505_v3 = vpop.f32.mrf.mxu1  ;;  %2522 = vmatprep.subr.mxu1 %v2671_v7 }
 0x4cd   : > { %v417_v3 = vld [vmem:[%s3098_s2 + $0x70] sm:$0xff] }
 0x4ce   : > { %2520 = vmatmul.mubr.msk.f32.vlgmr.msra.gmra.mxu1 %vm655_vm2, %v883_v43 }
 0x4cf   : > { %2523 = vmatpush3.msra.mxu1 %v1023_v45  ;;  %2524 = vmatprep.mubr.msk.f32.mxu1 %vm2672_vm1, %v2671_v7 }
 0x4d0   : > { %2532 = vmatprep.subr.mxu1 %v2671_v7 }
 0x58e   : > { %v1099_v4 = vpop.f32.mrf.mxu1 }
 0x58f   : > { %v1103_v5 = vmul.f32 0.35355338, %v1099_v4 }
 0x590   : > { %v2521_v6 = vpop.f32.mrf.mxu1 }
 0x591   : > { %v1104_v8 = vsel %vm655_vm2, %v1103_v5, -inf  ;;  %v415_v6 = vld [vmem:[%s3098_s2 + $0x60] sm:$0xff] }
 0x592   : > { %1105 = vmax.xlane.f32.xlu0 %v1104_v8 }
 0x61b   : > { %v1106_v9 = vpop.xlane.xlu0 %1105 }
 0x61c   : > { %v1107_v10 = vsub.f32 %v1103_v5, %v1106_v9  ;;  %v416_v5 = vld [vmem:[%s3098_s2 + $0x68] sm:$0xff] }
 0x61e   : > { %v1108_v11 = vmul.f32 1.442695, %v1107_v10 }
 0x620   : > { %2649 = vpow2.f32 %v1108_v11 }
 0x62d   : > { %v2650_v12 = vpop.eup %2649 }
 0x62e   : > { %v1110_v13 = vsel %vm655_vm2, %v2650_v12, 0.0 }
 0x62f   : > { %1111 = vadd.xlane.f32.xlu1 %v1110_v13 }
 0x6b8   : > { %v1112_v15 = vpop.xlane.xlu1 %1111 }
 0x6b9   : > { %2651 = vrcp.f32 %v1112_v15 }
 0x6c6   : > { %v2652_v16 = vpop.eup %2651 }
 0x6c7   : > { %v1114_v17 = vmul.f32 %v2652_v16, %v2650_v12 }
 0x6c9   : > { %2525 = vmatmul.mubr.msk.f32.vlgmr.msra.gmra.mxu1 %vm655_vm2, %v1114_v17 }
 0x6ca   : > { %2533 = vmatpush3.msra.mxu1 %v435_v18  ;;  %2534 = vmatprep.mubr.msk.f32.mxu1 %vm2672_vm1, %v2671_v7 }
 0x6cb   : > { %2548 = vmatprep.subr.mxu1 %v2671_v7 }
 0x6cd   : > { %2535 = vmatmul.mubr.msk.f32.vlgmr.msra.gmra.mxu1 %vm655_vm2, %v813_v63  ;;  %v432_v63 = vld [vmem:[%s3099_s3 + $0x68] sm:$0xff] }
 0x6ce   : > { %2549 = vmatpush3.msra.mxu1 %v414_v19  ;;  %2556 = vmatprep.mubr.msk.f32.mxu1 %vm2672_vm1, %v2671_v7 }
 0x6cf   : > { %2550 = vmatprep.subr.mxu1 %v2671_v7 }
 0x6d0   : > { %2551 = vmatpush3.msra.mxu1 %v413_v20 }
 0x6d1   : > { %2552 = vmatprep.subr.mxu1 %v2671_v7 }
 0x6d2   : > { %2553 = vmatpush3.msra.mxu1 %v412_v21 }
 0x6d3   : > { %2554 = vmatprep.subr.mxu1 %v2671_v7 }
 0x6d4   : > { %2555 = vmatpush3.msra.mxu1 %v411_v22 }
 0x6d5   : > { %2557 = vmatmul.mubr.msk.f32.vlgmr.msra.gmra.mxu1 %vm358_vm0, %v2814_v28  ;;  %2570 = vmatprep.subr.mxu1 %v2671_v7 }
 0x6d6   : > { %2572 = vmatprep.mubr.msk.f32.mxu1 %vm2672_vm1, %v2671_v7 }
 0x789   : > { %v1184_v24 = vpop.f32.mrf.mxu1 }
 0x78a   : > { %2530 = vmatmul.mubr.msk.f32.vlgmr.msra.gmra.mxu0 %vm655_vm2, %v1184_v24 }
 0x78b   : > { %2538 = vmatpush3.msra.mxu0 %v398_v23  ;;  %v2526_v26 = vpop.f32.mrf.mxu1  ;;  %2545 = vmatprep.mubr.msk.f32.mxu0 %vm2672_vm1, %v2671_v7 }
 0x78c   : > { %2539 = vmatprep.subr.mxu0 %v2671_v7  ;;  %v438_v26 = vld [vmem:[%s3100_s4 + $0x18] sm:$0xff] }
 0x78d   : > { %2540 = vmatpush3.msra.mxu0 %v397_v25  ;;  %v2950_v29 = vpop.f32.mrf.mxu1 }
 0x78e   : > { %2541 = vmatprep.subr.mxu0 %v2671_v7 }
 0x78f   : > { %2542 = vmatpush3.msra.mxu0 %v396_v27  ;;  %v2536_v31 = vpop.f32.mrf.mxu1 }
 0x790   : > { %2543 = vmatprep.subr.mxu0 %v2671_v7 }
 0x791   : > { %2544 = vmatpush3.msra.mxu0 %v395_v30 }
 0x792   : > { %2546 = vmatmul.mubr.msk.f32.vlgmr.msra.gmra.mxu0 %vm358_vm0, %v2744_v0  ;;  %2559 = vmatprep.subr.mxu0 %v2671_v7 }
 0x793   : > { %2560 = vmatpush3.msra.mxu0 %v430_v32  ;;  %2567 = vmatprep.mubr.msk.f32.mxu0 %vm2672_vm1, %v2671_v7 }
 0x794   : > { %2561 = vmatprep.subr.mxu0 %v2671_v7 }
 0x795   : > { %v1470_v35 = vpop.f32.mrf.mxu1  ;;  %2562 = vmatpush3.msra.mxu0 %v429_v33  ;;  %v2352_v33 = vld [vmem:[%s3101_s5] ss:$0 sm:$0xff] }
 0x796   : > { %2563 = vmatprep.subr.mxu0 %v2671_v7  ;;  %2571 = vmatpush3.xpose.msk.msra.mxu1 %vm655_vm2, %v1470_v35 }
 0x797   : > { %v2558_v37 = vpop.f32.mrf.mxu1  ;;  %2564 = vmatpush3.msra.mxu0 %v428_v34  ;;  %2575 = vmatprep.subr.mxu1 %v2671_v7 }
 0x798   : > { %2565 = vmatprep.subr.mxu0 %v2671_v7 }
 0x799   : > { %2566 = vmatpush3.msra.mxu0 %v427_v36 }
 0x79a   : > { %2568 = vmatmul.mubr.msk.f32.vlgmr.msra.gmra.mxu0 %vm358_vm0, %v2814_v28  ;;  %2580 = vmatprep.subr.mxu0 %v2671_v7 }
 0x79b   : > { %2582 = vmatprep.mubr.msk.f32.mxu0 %vm2672_vm1, %v2671_v7  ;;  %2581 = vmatpush3.msra.mxu0 %v437_v53 }
 0x79c   : > { %2596 = vmatprep.subr.mxu0 %v2671_v7 }
 0x84a   : > { %v2984_v38 = vpop.f32.mrf.mxu0 }
 0x84b   : > { %v1331_v12 = vadd.f32 %v2950_v29, %v2984_v38 }
 0x84c   : > { %v2531_v39 = vpop.f32.mrf.mxu0 }
 0x852   : > { %v1400_v40 = vpop.f32.mrf.mxu0 }
 0x853   : > { %2573 = vmatmul.mubr.msk.f32.vlgmr.msra.gmra.mxu1 %vm655_vm2, %v1400_v40 }
 0x854   : > { %v2547_v41 = vpop.f32.mrf.mxu0  ;;  %2577 = vmatprep.mubr.msk.f32.mxu1 %vm2672_vm1, %v2671_v7 }
 0x85a   : > { %v1540_v42 = vpop.f32.mrf.mxu0 }
 0x85b   : > { %2576 = vmatpush3.msra.mxu1 %v1540_v42 }
 0x85c   : > { %v2569_v43 = vpop.f32.mrf.mxu0  ;;  %2585 = vmatprep.subr.mxu1 %v2671_v7 }
 0x913   : > { %v1616_v44 = vpop.f32.mrf.mxu1 }
 0x914   : > { %v1620_v45 = vmul.f32 0.35355338, %v1616_v44 }
 0x915   : > { %v2574_v46 = vpop.f32.mrf.mxu1 }
 0x916   : > { %v1621_v47 = vsel %vm655_vm2, %v1620_v45, -inf }
 0x917   : > { %1622 = vmax.xlane.f32.xlu0 %v1621_v47  ;;  %v2353_v47 = vld [vmem:[%s3104_s8] ss:$0 sm:$0xff] }
 0x9a0   : > { %v1623_v48 = vpop.xlane.xlu0 %1622 }
 0x9a1   : > { %v1624_v49 = vsub.f32 %v1620_v45, %v1623_v48 }
 0x9a3   : > { %v1625_v50 = vmul.f32 1.442695, %v1624_v49  ;;  %v2354_v49 = vld [vmem:[%s3105_s9] ss:$0 sm:$0xff] }
 0x9a5   : > { %2653 = vpow2.f32 %v1625_v50 }
 0x9b2   : > { %v2654_v51 = vpop.eup %2653 }
 0x9b3   : > { %v1627_v52 = vsel %vm655_vm2, %v2654_v51, 0.0 }
 0x9b4   : > { %1628 = vadd.xlane.f32.xlu1 %v1627_v52 }
 0xa3d   : > { %v1629_v54 = vpop.xlane.xlu1 %1628 }
 0xa3e   : > { %2655 = vrcp.f32 %v1629_v54 }
 0xa4b   : > { %v2656_v55 = vpop.eup %2655 }
 0xa4c   : > { %v1631_v56 = vmul.f32 %v2656_v55, %v2654_v51 }
 0xa4e   : > { %2578 = vmatmul.mubr.msk.f32.vlgmr.msra.gmra.mxu1 %vm655_vm2, %v1631_v56 }
 0xa4f   : > { %2586 = vmatpush3.msra.mxu1 %v402_v57  ;;  %2593 = vmatprep.mubr.msk.f32.mxu1 %vm2672_vm1, %v2671_v7 }
 0xa50   : > { %2587 = vmatprep.subr.mxu1 %v2671_v7 }
 0xa51   : > { %2588 = vmatpush3.msra.mxu1 %v401_v58 }
 0xa52   : > { %2589 = vmatprep.subr.mxu1 %v2671_v7 }
 0xa53   : > { %2590 = vmatpush3.msra.mxu1 %v400_v59 }
 0xa54   : > { %2591 = vmatprep.subr.mxu1 %v2671_v7 }
 0xa55   : > { %2592 = vmatpush3.msra.mxu1 %v399_v60 }
 0xa56   : > { %2607 = vmatprep.subr.mxu1 %v2671_v7  ;;  %2594 = vmatmul.mubr.msk.f32.vlgmr.msra.gmra.mxu1 %vm358_vm0, %v2744_v0  ;;  %v431_v0 = vld [vmem:[%s3099_s3 + $0x60] sm:$0xff] }
 0xa57   : > { %2608 = vmatpush3.msra.mxu1 %v434_v61  ;;  %2615 = vmatprep.mubr.msk.f32.mxu1 %vm2672_vm1, %v2671_v7 }
 0xa58   : > { %2609 = vmatprep.subr.mxu1 %v2671_v7 }
 0xa59   : > { %2610 = vmatpush3.msra.mxu1 %v433_v62 }
 0xa5a   : > { %2611 = vmatprep.subr.mxu1 %v2671_v7 }
 0xa5b   : > { %2612 = vmatpush3.msra.mxu1 %v432_v63 }
 0xa5c   : > { %2613 = vmatprep.subr.mxu1 %v2671_v7 }
 0xa5d   : > { %2614 = vmatpush3.msra.mxu1 %v431_v0 }
 0xa5e   : > { %2616 = vmatmul.mubr.msk.f32.vlgmr.msra.gmra.mxu1 %vm358_vm0, %v2814_v28  ;;  %2628 = vmatprep.subr.mxu1 %v2671_v7 }
 0xa5f   : > { %2630 = vmatprep.mubr.msk.f32.mxu1 %vm2672_vm1, %v2671_v7  ;;  %2629 = vmatpush3.msra.mxu1 %v438_v26 }
 0xb0e   : > { %v1701_v2 = vpop.f32.mrf.mxu1 }
 0xb0f   : > { %2583 = vmatmul.mubr.msk.f32.vlgmr.msra.gmra.mxu0 %vm655_vm2, %v1701_v2 }
 0xb10   : > { %2597 = vmatpush3.msra.mxu0 %v418_v1  ;;  %v2579_v4 = vpop.f32.mrf.mxu1  ;;  %2604 = vmatprep.mubr.msk.f32.mxu0 %vm2672_vm1, %v2671_v7 }
 0xb11   : > { %2598 = vmatprep.subr.mxu0 %v2671_v7 }
 0xb12   : > { %2599 = vmatpush3.msra.mxu0 %v417_v3 }
 0xb13   : > { %2600 = vmatprep.subr.mxu0 %v2671_v7 }
 0xb14   : > { %2601 = vmatpush3.msra.mxu0 %v416_v5 }
 0xb15   : > { %2602 = vmatprep.subr.mxu0 %v2671_v7 }
 0xb16   : > { %2603 = vmatpush3.msra.mxu0 %v415_v6  ;;  %v1845_v8 = vpop.f32.mrf.mxu1 }
 0xb17   : > { %2605 = vmatmul.mubr.msk.f32.vlgmr.msra.gmra.mxu0 %vm358_vm0, %v2814_v28  ;;  %2618 = vmatprep.subr.mxu0 %v2671_v7 }
 0xb18   : > { %v2595_v9 = vpop.f32.mrf.mxu1  ;;  %2620 = vmatprep.mubr.msk.f32.mxu0 %vm2672_vm1, %v2671_v7 }
 0xb1e   : > { %v1985_v10 = vpop.f32.mrf.mxu1 }
 0xb20   : > { %v2617_v11 = vpop.f32.mrf.mxu1 }
 0xbcf   : > { %v1774_v13 = vpop.f32.mrf.mxu0 }
 0xbd0   : > { %v1778_v14 = vadd.f32 %v1774_v13, %v1331_v12 }
 0xbd1   : > { %v2584_v15 = vpop.f32.mrf.mxu0 }
 0xbd7   : > { %v1915_v16 = vpop.f32.mrf.mxu0 }
 0xbd8   : > { %2619 = vmatpush3.xpose.msk.msra.mxu0 %vm655_vm2, %v1915_v16 }
 0xbd9   : > { %v2606_v17 = vpop.f32.mrf.mxu0  ;;  %2623 = vmatprep.subr.mxu0 %v2671_v7 }
 0xbdb   : > { %2621 = vmatmul.mubr.msk.f32.vlgmr.msra.gmra.mxu0 %vm655_vm2, %v1845_v8 }
 0xbdc   : > { %2624 = vmatpush3.msra.mxu0 %v1985_v10  ;;  %2625 = vmatprep.mubr.msk.f32.mxu0 %vm2672_vm1, %v2671_v7 }
 0xc9b   : > { %v2061_v28 = vpop.f32.mrf.mxu0 }
 0xc9c   : > { %v2065_v18 = vmul.f32 0.35355338, %v2061_v28 }
 0xc9d   : > { %v2622_v19 = vpop.f32.mrf.mxu0 }
 0xc9e   : > { %v2066_v20 = vsel %vm655_vm2, %v2065_v18, -inf }
 0xc9f   : > { %2067 = vmax.xlane.f32.xlu0 %v2066_v20 }
 0xd28   : > { %v2068_v21 = vpop.xlane.xlu0 %2067 }
 0xd29   : > { %v2069_v22 = vsub.f32 %v2065_v18, %v2068_v21 }
 0xd2b   : > { %v2070_v23 = vmul.f32 1.442695, %v2069_v22 }
 0xd2d   : > { %2657 = vpow2.f32 %v2070_v23 }
 0xd3a   : > { %v2658_v24 = vpop.eup %2657 }
 0xd3b   : > { %v2072_v25 = vsel %vm655_vm2, %v2658_v24, 0.0 }
 0xd3c   : > { %2073 = vadd.xlane.f32.xlu1 %v2072_v25 }
 0xdc5   : > { %v2074_v7 = vpop.xlane.xlu1 %2073 }
 0xdc6   : > { %2659 = vrcp.f32 %v2074_v7 }
 0xdd3   : > { %v2660_v27 = vpop.eup %2659 }
 0xdd4   : > { %v2076_v29 = vmul.f32 %v2660_v27, %v2658_v24 }
 0xdd6   : > { %2626 = vmatmul.mubr.msk.f32.vlgmr.msra.gmra.mxu0 %vm655_vm2, %v2076_v29 }
 0xe96   : > { %v2146_v30 = vpop.f32.mrf.mxu0 }
 0xe97   : > { %2631 = vmatmul.mubr.msk.f32.vlgmr.msra.gmra.mxu1 %vm655_vm2, %v2146_v30 }
 0xe98   : > { %v2627_v31 = vpop.f32.mrf.mxu0 }
 0xf57   : > { %v2219_v32 = vpop.f32.mrf.mxu1 }
 0xf58   : > { %v2223_v34 = vadd.f32 %v2219_v32, %v1778_v14 }
 0xf59   : > { %v2632_v35 = vpop.f32.mrf.mxu1 }
 0xf5a   : > { %v2231_v36 = vadd.f32 %v2352_v33, %v2223_v34 }
 0xf5c   : > { %v2234_v37 = vsel %vm358_vm0, %v2231_v36, 0.0 }
 0xf5d   : > { %2235 = vadd.xlane.f32.xlu0 %v2234_v37 }
 0xfe6   : > { %v2236_v38 = vpop.xlane.xlu0 %2235 }
 0xfe7   : > { %v2237_v39 = vmul.f32 0.03125, %v2236_v38 }
 0xfe9   : > { %v2238_v40 = vsub.f32 %v2231_v36, %v2237_v39 }
 0xfeb   : > { %v2239_v41 = vmul.f32 %v2238_v40, %v2238_v40 }
 0xfed   : > { %v2240_v42 = vsel %vm358_vm0, %v2239_v41, 0.0 }
 0xfee   : > { %2241 = vadd.xlane.f32.xlu1 %v2240_v42 }
0x1077   : > { %v2242_v43 = vpop.xlane.xlu1 %2241 }
0x1078   : > { %v2243_v44 = vmul.f32 0.03125, %v2242_v43 }
0x107a   : > { %v2244_v45 = vadd.f32 1e-06, %v2243_v44 }
0x107c   : > { %2661 = vrsqrt.f32 %v2244_v45 }
0x1089   : > { %v2662_v46 = vpop.eup %2661 }
0x108a   : > { %v2246_v48 = vmul.f32 %v2662_v46, %v2238_v40 }
0x108c   : > { %v2253_v50 = vmul.f32 %v2353_v47, %v2246_v48 }
0x108e   : > { %v2260_v51 = vadd.f32 %v2354_v49, %v2253_v50 }
0x1090   : > { %2261 = vst.msk [vmem:[%s354_s16] sm:$0xff] %vm358_vm0, %v2260_v51 }
0x1091 PF: > { %s20_s13 = sadd.s32 1, %s2669_s13  }
0x1092   : > { %p17_p4 = scmp.ge.s32.totalorder %s20_s13, 6  }
0x1094   :  { %19 = sbr.rel (!%p17_p4) target bundleno = 1 (0x1), region = 90 }

// kernel: _lambda_.5
= control target key start
LH: loop header
LB: loop body
LE: loop exit
PB: predicated region body
PF: predicated region fallthrough
CT: control target
= control target key end

     0   :  { %s4263_s30 = smov 0   ;;  %s4265_s24 = smov 0   ;;  %s4850_s0 = inlined_call_operand.vmem [shape: f32[4,4,192], index: 0, kind: input, shape index: {}]   ;;  %s4851_s1 = inlined_call_operand.vmem [shape: f32[4,4,32], index: 1, kind: input, shape index: {}]   ;;  %s4852_s2 = inlined_call_operand.vmem [shape: f32[1,32], index: 2, kind: input, shape index: {}]   ;;  %s4853_s3 = inlined_call_operand.vmem [shape: f32[192,32], index: 3, kind: input, shape index: {}]   ;;  %s4854_s4 = inlined_call_operand.vmem [shape: f32[1,32], index: 4, kind: input, shape index: {}]   ;;  %s4855_s5 = inlined_call_operand.vmem [shape: f32[2,1,32], index: 5, kind: input, shape index: {}]   ;;  %s4856_s6 = inlined_call_operand.vmem [shape: f32[2,1,32], index: 6, kind: input, shape index: {}]   ;;  %s4857_s7 = inlined_call_operand.vmem [shape: f32[2,4,32,8], index: 7, kind: input, shape index: {}]   ;;  %s4858_s8 = inlined_call_operand.vmem [shape: f32[2,4,32,8], index: 8, kind: input, shape index: {}]   ;;  %s4859_s9 = inlined_call_operand.vmem [shape: f32[2,4,32,8], index: 9, kind: input, shape index: {}]   ;;  %s4860_s10 = inlined_call_operand.vmem [shape: f32[2,4,1,8], index: 10, kind: input, shape index: {}]   ;;  %s4861_s11 = inlined_call_operand.vmem [shape: f32[2,4,1,8], index: 11, kind: input, shape index: {}]   ;;  %s4862_s12 = inlined_call_operand.vmem [shape: f32[2,4,1,8], index: 12, kind: input, shape index: {}]   ;;  %s4863_s13 = inlined_call_operand.vmem [shape: f32[2,4,8,32], index: 13, kind: input, shape index: {}]   ;;  %s4864_s14 = inlined_call_operand.vmem [shape: f32[2,1,32], index: 14, kind: input, shape index: {}]   ;;  %s4865_s15 = inlined_call_operand.vmem [shape: f32[2,1,32], index: 15, kind: input, shape index: {}]   ;;  %s4866_s16 = inlined_call_operand.vmem [shape: f32[2,1,32], index: 16, kind: input, shape index: {}]   ;;  %s4867_s17 = inlined_call_operand.vmem [shape: f32[2,32,128], index: 17, kind: input, shape index: {}]   ;;  %s4868_s18 = inlined_call_operand.vmem [shape: f32[2,1,128], index: 18, kind: input, shape index: {}]   ;;  %s4869_s19 = inlined_call_operand.vmem [shape: f32[2,128,32], index: 19, kind: input, shape index: {}]   ;;  %s4870_s20 = inlined_call_operand.vmem [shape: f32[2,1,32], index: 20, kind: input, shape index: {}]   ;;  %s4871_s21 = inlined_call_operand.vmem [shape: f32[1,32], index: 21, kind: input, shape index: {}]   ;;  %s4872_s22 = inlined_call_operand.vmem [shape: f32[1,32], index: 22, kind: input, shape index: {}]   ;;  %s4873_s23 = inlined_call_operand.vmem [shape: f32[4,5,32], index: 23, kind: output, shape index: {}]  }
   0x1   :  { %4880 = sst [smem:[#allocation10_spill]] %s4850_s0  ;;  %s4267_s25 = smov 0  }
   0x2   :  { %4881 = sst [smem:[#allocation11_spill]] %s4851_s1 }
   0x3   :  { %4882 = sst [smem:[#allocation12_spill]] %s4852_s2 }
   0x4   :  { %4883 = sst [smem:[#allocation13_spill]] %s4853_s3 }
   0x5   :  { %4884 = sst [smem:[#allocation14_spill]] %s4854_s4  ;;  %s4261_s4 = smov 0  }
   0x6   :  { %4885 = sst [smem:[#allocation15_spill]] %s4855_s5  ;;  %s4269_s5 = smov 0  }
   0x7   :  { %4886 = sst [smem:[#allocation16_spill]] %s4856_s6 }
   0x8   :  { %4887 = sst [smem:[#allocation17_spill]] %s4857_s7 }
   0x9   :  { %4888 = sst [smem:[#allocation18_spill]] %s4858_s8 }
   0xa   :  { %4889 = sst [smem:[#allocation19_spill]] %s4859_s9 }
   0xb   :  { %4890 = sst [smem:[#allocation20_spill]] %s4860_s10 }
   0xc   :  { %4891 = sst [smem:[#allocation21_spill]] %s4861_s11 }
   0xd   :  { %4892 = sst [smem:[#allocation22_spill]] %s4862_s12 }
   0xe   :  { %4893 = sst [smem:[#allocation23_spill]] %s4863_s13 }
   0xf   :  { %4894 = sst [smem:[#allocation24_spill]] %s4864_s14 }
  0x10   :  { %4895 = sst [smem:[#allocation25_spill]] %s4865_s15 }
  0x11   :  { %4896 = sst [smem:[#allocation26_spill]] %s4866_s16 }
  0x12   :  { %4897 = sst [smem:[#allocation27_spill]] %s4868_s18 }
  0x13   :  { %4898 = sst [smem:[#allocation28_spill]] %s4869_s19 }
  0x14   :  { %4899 = sst [smem:[#allocation29_spill]] %s4870_s20 }
  0x15   :  { %4900 = sst [smem:[#allocation30_spill]] %s4871_s21 }
  0x16   :  { %4901 = sst [smem:[#allocation31_spill]] %s4872_s22 }
  0x17   :  { %4902 = sst [smem:[#allocation32_spill]] %s4873_s23 }
  0x18 LB: > { %4903 = sst [smem:[#allocation2_spill]] %s4120_s4  ;;  %s42_s1 = sadd.s32 1, %s4128_s24  ;;  %s4136_s5 = sphi %s4269_s5, %s33_s5   ;;  %s4132_s25 = sphi %s4267_s25, %s4954_s25   ;;  %s4128_s24 = sphi %s4265_s24, %s4953_s24   ;;  %s4124_s30 = sphi %s4263_s30, %s4952_s30   ;;  %s4120_s4 = sphi %s4261_s4, %s4951_s4  }
  0x19   : > { %4904 = sst [smem:[#allocation3_spill]] %s4128_s24  ;;  %s45_s26 = sadd.s32 1, %s4132_s25 }
  0x1a   : > { %4905 = sst [smem:[#allocation4_spill]] %s4132_s25  ;;  %p43_p0 = scmp.ge.s32.totalorder %s42_s1, 2 }
  0x1b   : > { %4906 = sst [smem:[#allocation5_spill]] %s4136_s5  ;;  %p3599_p1 = scmp.ge.s32.totalorder %s4136_s5, 1 }
  0x1c   : > { %p801_p2 = scmp.lt.s32.totalorder %s4136_s5, 9  ;;  %s4956_s1 = smov (%p43_p0, %s42_s1), 0 }
  0x1d   : > { %4907 = sst [smem:[#allocation6_spill]] %s4956_s1  ;;  %s4958_s26 = smov (!%p43_p0, %s45_s26), %s4132_s25 }
  0x1e   : > { %p802_p3 = pnand %p3599_p1, %p801_p2  ;;  %p47_p4 = scmp.ge.s32.totalorder %s4958_s26, 4 }
  0x20   : > { %s4960_s26 = smov (%p47_p4, %s4958_s26), 0  ;;  %805 = sbr.rel (%p802_p3) target bundleno = 5290 (0x14aa), region = 112 }
  0x21   : > { %4908 = sst [smem:[#allocation7_spill]] %s4960_s26 }
  0x25   : > { %p931_p5 = scmp.lt.s32.totalorder %s4124_s30, 3  ;;  %p940_p6 = scmp.lt.s32.totalorder %s4120_s4, 1 }
  0x26   : > { %s4909_s29 = sld [smem:[#allocation10_spill]] }
  0x27   : > { %s4962_s30 = smov (!%p931_p5, %s4124_s30), 3  ;;  %s4911_s1 = sld [smem:[#allocation11_spill]] }
  0x28   : > { %s4295_s2 = scalar_select %p940_p6, %s4120_s4, 1 }
  0x29   : > { %s3679_s6 = sshll.u32 %s4962_s30, 3  ;;  %s3602_s27 = sshll.u32 %s4962_s30, 2 }
  0x2a   : > { %s3680_s19 = sshll.u32 %s4295_s2, 7  ;;  %s3609_s7 = sshll.u32 %s4295_s2, 2 }
  0x2b   : > { %s4915_s8 = sld [smem:[#allocation18_spill]] }
  0x2c   : > { %s4300_s3 = scalar_lea.vmem %s4909_s29, %s3679_s6  ;;  %s4916_s9 = sld [smem:[#allocation19_spill]] }
  0x2d   : > { %4910 = sst [smem:[#allocation8_spill]] %s4300_s3  ;;  %s4305_s25 = scalar_lea.vmem %s4911_s1, %s3602_s27 }
  0x2e   : > { %s4914_s3 = sld [smem:[#allocation17_spill]]  ;;  %s3683_s1 = sshll.u32 %s4295_s2, 5 }
  0x2f   : > { %s4917_s10 = sld [smem:[#allocation20_spill]] }
  0x30   : > { %s4918_s11 = sld [smem:[#allocation21_spill]] }
  0x31   : > { %s4325_s27 = scalar_lea.vmem %s4915_s8, %s3680_s19  ;;  %s4919_s12 = sld [smem:[#allocation22_spill]] }
  0x32   : > { %s4330_s5 = scalar_lea.vmem %s4916_s9, %s3680_s19  ;;  %s4921_s13 = sld [smem:[#allocation23_spill]] }
  0x33   : > { %s4925_s22 = sld [smem:[#allocation27_spill]] }
  0x34   : > { %s4320_s18 = scalar_lea.vmem %s4914_s3, %s3680_s19  ;;  %s4927_s30 = sld [smem:[#allocation29_spill]] }
  0x35   : > { %s4335_s4 = scalar_lea.vmem %s4917_s10, %s3609_s7  ;;  %s4928_s28 = sld [smem:[#allocation32_spill]] }
  0x36   : > { %s4340_s3 = scalar_lea.vmem %s4918_s11, %s3609_s7 }
  0x37   : > { %s4345_s26 = scalar_lea.vmem %s4919_s12, %s3609_s7  ;;  %s4368_s12 = scalar_lea.vmem %s4867_s17, %s3683_s1 }
  0x38   : > { %s4355_s23 = scalar_lea.vmem %s4921_s13, %s3683_s1  ;;  %s4926_s13 = sld [smem:[#allocation28_spill]] }
  0x39   : > { %4922 = sst [smem:[#allocation9_spill]] %s4355_s23  ;;  %s994_s14 = scalar_lea.vmem %s4925_s22, %s4295_s2 }
  0x3a   : > { %s1002_s15 = scalar_lea.vmem %s4927_s30, %s4295_s2  ;;  %s4929_s1 = sld [smem:[#allocation2_spill]] }
  0x3b   : > { %s4386_s16 = scalar_lea.vmem %s4928_s28, %s3679_s6 }
  0x3e   : > { %s4377_s23 = scalar_lea.vmem %s4926_s13, %s3680_s19 }
  0x40   : > { %p3619_p7 = scmp.ne.s32.totalorder %s4929_s1, 0 }
  0x41   : > { %s4930_s22 = sld [smem:[#allocation13_spill]] (!%p3619_p7) }
  0x42   : > { %1010 = sbr.rel (%p3619_p7) target bundleno = 318 (0x13e), region = 116  ;;  %s4931_s21 = sld [smem:[#allocation8_spill]] (!%p3619_p7) }
  0x43   : > { %s4932_s13 = sld [smem:[#allocation12_spill]] (!%p3619_p7) }
  0x44   : > { %s4933_s30 = sld [smem:[#allocation14_spill]] (!%p3619_p7) }
  0x47   : > { %v1027_v0 = vld [vmem:[%s4930_s22 + $0x78] sm:$0xff]  ;;  %v4138_v1 = vmov 0.0   ;;  %v1026_v2 = vld [vmem:[%s4930_s22 + $0x70] sm:$0xff]  ;;  %v1025_v3 = vld [vmem:[%s4930_s22 + $0x68] sm:$0xff]  ;;  %vm1045_vm0 = vcmask 523264   ;;  %vm1121_vm1 = vcmask 253952  }
  0x48   : > { %1048 = vmatprep.subr.mxu0 %v4138_v1  ;;  %v1024_v4 = vld [vmem:[%s4930_s22 + $0x60] sm:$0xff]  ;;  %v1023_v5 = vld [vmem:[%s4930_s22 + $0x58] sm:$0xff]  ;;  %v1022_v7 = vld [vmem:[%s4930_s22 + $0x50] sm:$0xff]  ;;  %vm1123_vm2 = vcmask 257024  }
  0x49   : > { %1049 = vmatpush1.msra.mxu0 %v1027_v0  ;;  %v1011_v6 = vld [vmem:[%s4931_s21] sm:$0xff]  ;;  %v1021_v9 = vld [vmem:[%s4930_s22 + $0x48] sm:$0xff]  ;;  %v1019_v11 = vld [vmem:[%s4930_s22 + $0x38] sm:$0xff] }
  0x4a   : > { %1050 = vmatprep.subr.mxu0 %v4138_v1  ;;  %v1044_v8 = vcombine.high %v1011_v6, %v1011_v6  ;;  %v1020_v10 = vld [vmem:[%s4930_s22 + $0x40] sm:$0xff]  ;;  %v1018_v12 = vld [vmem:[%s4930_s22 + $0x30] sm:$0xff]  ;;  %v1017_v13 = vld [vmem:[%s4930_s22 + $0x28] sm:$0xff] }
  0x4b   : > { %1051 = vmatpush1.msra.mxu0 %v1026_v2  ;;  %v1016_v14 = vld [vmem:[%s4930_s22 + $0x20] sm:$0xff]  ;;  %v1015_v15 = vld [vmem:[%s4930_s22 + $0x18] sm:$0xff]  ;;  %v1014_v16 = vld [vmem:[%s4930_s22 + $0x10] sm:$0xff] }
  0x4c   : > { %1052 = vmatprep.subr.mxu0 %v4138_v1  ;;  %3621 = vmatprep.mubr.msk.f32.mxu0 %vm1045_vm0, %v1044_v8  ;;  %v1013_v17 = vld [vmem:[%s4930_s22 + $0x8] sm:$0xff]  ;;  %v1012_v18 = vld [vmem:[%s4930_s22] sm:$0xff]  ;;  %v1035_v19 = vld [vmem:[%s4930_s22 + $0xb8] sm:$0xff] }
  0x4d   : > { %1053 = vmatpush1.msra.mxu0 %v1025_v3  ;;  %v1034_v20 = vld [vmem:[%s4930_s22 + $0xb0] sm:$0xff]  ;;  %v1033_v21 = vld [vmem:[%s4930_s22 + $0xa8] sm:$0xff]  ;;  %v1032_v22 = vld [vmem:[%s4930_s22 + $0xa0] sm:$0xff] }
  0x4e   : > { %1054 = vmatprep.subr.mxu0 %v4138_v1  ;;  %v1031_v23 = vld [vmem:[%s4930_s22 + $0x98] sm:$0xff]  ;;  %v1030_v24 = vld [vmem:[%s4930_s22 + $0x90] sm:$0xff]  ;;  %v1029_v25 = vld [vmem:[%s4930_s22 + $0x88] sm:$0xff] }
  0x4f   : > { %1055 = vmatpush1.msra.mxu0 %v1024_v4  ;;  %v1028_v26 = vld [vmem:[%s4930_s22 + $0x80] sm:$0xff] }
  0x50   : > { %1056 = vmatprep.subr.mxu0 %v4138_v1  ;;  %v1120_v27 = vld [vmem:[%s4932_s13] sm:$0x1] }
  0x51   : > { %1057 = vmatpush1.msra.mxu0 %v1023_v5  ;;  %1122 = vst.msk [vmem:[%s4386_s16] sm:$0x1] %vm1121_vm1, %v1120_v27  ;;  %v3620_v28 = vld [vmem:[%s4933_s30] ss:$0 sm:$0xff] }
  0x52   : > { %1058 = vmatprep.subr.mxu0 %v4138_v1  ;;  %v1118_v30 = vld [vmem:[%s4305_s25] sm:$0xf] }
  0x53   : > { %1059 = vmatpush1.msra.mxu0 %v1022_v7 }
  0x54   : > { %1060 = vmatprep.subr.mxu0 %v4138_v1 }
  0x55   : > { %1061 = vmatpush1.msra.mxu0 %v1021_v9 }
  0x56   : > { %1062 = vmatprep.subr.mxu0 %v4138_v1 }
  0x57   : > { %1063 = vmatpush1.msra.mxu0 %v1020_v10 }
  0x58   : > { %1064 = vmatprep.subr.mxu0 %v4138_v1 }
  0x59   : > { %1065 = vmatpush1.msra.mxu0 %v1019_v11 }
  0x5a   : > { %1066 = vmatprep.subr.mxu0 %v4138_v1 }
  0x5b   : > { %1067 = vmatpush1.msra.mxu0 %v1018_v12 }
  0x5c   : > { %1068 = vmatprep.subr.mxu0 %v4138_v1 }
  0x5d   : > { %1069 = vmatpush1.msra.mxu0 %v1017_v13 }
  0x5e   : > { %1070 = vmatprep.subr.mxu0 %v4138_v1 }
  0x5f   : > { %1071 = vmatpush1.msra.mxu0 %v1016_v14 }
  0x60   : > { %1072 = vmatprep.subr.mxu0 %v4138_v1 }
  0x61   : > { %1073 = vmatpush1.msra.mxu0 %v1015_v15 }
  0x62   : > { %1074 = vmatprep.subr.mxu0 %v4138_v1 }
  0x63   : > { %1075 = vmatpush1.msra.mxu0 %v1014_v16 }
  0x64   : > { %1076 = vmatprep.subr.mxu0 %v4138_v1 }
  0x65   : > { %1077 = vmatpush1.msra.mxu0 %v1013_v17 }
  0x66   : > { %1078 = vmatprep.subr.mxu0 %v4138_v1 }
  0x67   : > { %1079 = vmatpush1.msra.mxu0 %v1012_v18 }
  0x68   : > { %1096 = vmatprep.subr.mxu0 %v4138_v1 }
  0x69   : > { %1097 = vmatpush2.msra.mxu0 %v1035_v19 }
  0x6a   : > { %1098 = vmatprep.subr.mxu0 %v4138_v1 }
  0x6b   : > { %1099 = vmatpush2.msra.mxu0 %v1034_v20 }
  0x6c   : > { %1100 = vmatprep.subr.mxu0 %v4138_v1 }
  0x6d   : > { %1101 = vmatpush2.msra.mxu0 %v1033_v21 }
  0x6e   : > { %1102 = vmatprep.subr.mxu0 %v4138_v1 }
  0x6f   : > { %1103 = vmatpush2.msra.mxu0 %v1032_v22 }
  0x70   : > { %1104 = vmatprep.subr.mxu0 %v4138_v1 }
  0x71   : > { %1105 = vmatpush2.msra.mxu0 %v1031_v23 }
  0x72   : > { %1106 = vmatprep.subr.mxu0 %v4138_v1 }
  0x73   : > { %1107 = vmatpush2.msra.mxu0 %v1030_v24 }
  0x74   : > { %1108 = vmatprep.subr.mxu0 %v4138_v1 }
  0x75   : > { %1109 = vmatpush2.msra.mxu0 %v1029_v25 }
  0x76   : > { %1110 = vmatprep.subr.mxu0 %v4138_v1 }
  0x77   : > { %1111 = vmatpush2.msra.mxu0 %v1028_v26 }
  0x78   : > { %1113 = vmatmul.mubr.f32.vlgmr.msra.gmra.mxu0 %v1011_v6 }
 0x138   : > { %v1114_v29 = vpop.f32.mrf.mxu0 }
 0x139   : > { %v1115_v31 = vadd.f32 %v3620_v28, %v1114_v29 }
 0x13a   : > { %v1116_v32 = vpop.f32.mrf.mxu0 }
 0x13b   : > { %v1119_v33 = vadd.f32 %v1118_v30, %v1115_v31 }
 0x13d   : > { %1124 = vst.msk [vmem:[%s4386_s16 + $0x1] sm:$0xf] %vm1123_vm2, %v1119_v33 }
 0x13e PF: > { %vm1128_vm3 = vcmask 258048   ;;  %v4139_v41 = vmov 0.0   ;;  %v1160_v42 = vld [vmem:[%s4320_s18 + $0x18] sm:$0xff]  ;;  %v1159_v43 = vld [vmem:[%s4320_s18 + $0x10] sm:$0xff]  ;;  %v1158_v44 = vld [vmem:[%s4320_s18 + $0x8] sm:$0xff]  ;;  %vm4140_vm4 = vmmov 0  }
 0x13f   : > { %3792 = vmatprep.subr.mxu0 %v4139_v41  ;;  %3830 = vmatprep.subr.mxu1 %v4139_v41  ;;  %v1157_v45 = vld [vmem:[%s4320_s18] sm:$0xff]  ;;  %s4934_s24 = sld [smem:[#allocation15_spill]]  ;;  %vm1227_vm5 = vcmask 261120   ;;  %v1176_v55 = vld [vmem:[%s4325_s27 + $0x18] sm:$0xff]  ;;  %v1175_v56 = vld [vmem:[%s4325_s27 + $0x10] sm:$0xff]  ;;  %vm1453_vm6 = vcmask 64512  }
 0x140   : > { %3793 = vmatpush3.msra.mxu0 %v1160_v42  ;;  %3800 = vmatprep.mubr.msk.f32.mxu0 %vm4140_vm4, %v4139_v41  ;;  %s4936_s20 = sld [smem:[#allocation16_spill]]  ;;  %v1174_v57 = vld [vmem:[%s4325_s27 + $0x8] sm:$0xff]  ;;  %v1173_v58 = vld [vmem:[%s4325_s27] sm:$0xff]  ;;  %v1192_v59 = vld [vmem:[%s4330_s5 + $0x18] sm:$0xff]  ;;  %vm1547_vm7 = vcmask 1044480   ;;  %vm1531_vm8 = vcmask 36864  }
 0x141   : > { %3794 = vmatprep.subr.mxu0 %v4139_v41  ;;  %3832 = vmatprep.mubr.msk.f32.mxu1 %vm4140_vm4, %v4139_v41  ;;  %v1191_v60 = vld [vmem:[%s4330_s5 + $0x10] sm:$0xff]  ;;  %v1190_v61 = vld [vmem:[%s4330_s5 + $0x8] sm:$0xff]  ;;  %v1189_v62 = vld [vmem:[%s4330_s5] sm:$0xff]  ;;  %vm1543_vm9 = vcmask 39936   ;;  %s4938_s0 = sld [smem:[#allocation9_spill]] }
 0x142   : > { %3795 = vmatpush3.msra.mxu0 %v1159_v43  ;;  %v3626_v1 = vld [vmem:[%s4340_s3] ss:$0 sm:$0xff]  ;;  %v1164_v7 = vld [vmem:[%s4320_s18 + $0x38] sm:$0xff]  ;;  %v1163_v9 = vld [vmem:[%s4320_s18 + $0x30] sm:$0xff]  ;;  %s4943_s21 = sld [smem:[#allocation26_spill]] }
 0x143   : > { %3796 = vmatprep.subr.mxu0 %v4139_v41  ;;  %v3624_v3 = vld [vmem:[%s4335_s4] ss:$0 sm:$0xff]  ;;  %v1162_v11 = vld [vmem:[%s4320_s18 + $0x28] sm:$0xff]  ;;  %v1196_v15 = vld [vmem:[%s4330_s5 + $0x38] sm:$0xff] }
 0x144   : > { %v4496_v34 = vld [vmem:[%s4386_s16] sm:$0x1f]  ;;  %3797 = vmatpush3.msra.mxu0 %v1158_v44  ;;  %v1195_v16 = vld [vmem:[%s4330_s5 + $0x30] sm:$0xff]  ;;  %v1194_v17 = vld [vmem:[%s4330_s5 + $0x28] sm:$0xff] }
 0x145   : > { %v1129_v35 = vsel %vm1128_vm3, %v4496_v34, 0.0  ;;  %3798 = vmatprep.subr.mxu0 %v4139_v41  ;;  %s4935_s8 = scalar_lea.vmem %s4934_s24, %s4295_s2  ;;  %v3628_v8 = vld [vmem:[%s4345_s26] ss:$0 sm:$0xff]  ;;  %v3636_v43 = vld [vmem:[%s4340_s3 + $0x1] ss:$0 sm:$0xff] }
 0x146   : > { %1130 = vadd.xlane.f32.xlu0 %v1129_v35  ;;  %3799 = vmatpush3.msra.mxu0 %v1157_v45  ;;  %v3622_v50 = vld [vmem:[%s4935_s8] ss:$0 sm:$0xff]  ;;  %s4937_s11 = scalar_lea.vmem %s4936_s20, %s4295_s2  ;;  %v3634_v45 = vld [vmem:[%s4335_s4 + $0x1] ss:$0 sm:$0xff] }
 0x147   : > { %3803 = vmatprep.subr.mxu0 %v4139_v41  ;;  %v3623_v52 = vld [vmem:[%s4937_s11] ss:$0 sm:$0xff] }
 0x148   : > { %v1161_v14 = vld [vmem:[%s4320_s18 + $0x20] sm:$0xff]  ;;  %s4944_s13 = scalar_lea.vmem %s4943_s21, %s4295_s2 }
 0x149   : > { %v1193_v18 = vld [vmem:[%s4330_s5 + $0x20] sm:$0xff] }
 0x1cf   : > { %v1131_v36 = vpop.xlane.xlu0 %1130 }
 0x1d0   : > { %v1133_v37 = vmul.f32 0.03125, %v1131_v36  ;;  %v1180_v36 = vld [vmem:[%s4325_s27 + $0x38] sm:$0xff] }
 0x1d2   : > { %v1134_v38 = vsub.f32 %v4496_v34, %v1133_v37  ;;  %v1179_v37 = vld [vmem:[%s4325_s27 + $0x30] sm:$0xff] }
 0x1d4   : > { %v1135_v39 = vmul.f32 %v1134_v38, %v1134_v38 }
 0x1d6   : > { %v1136_v40 = vsel %vm1128_vm3, %v1135_v39, 0.0  ;;  %v1177_v39 = vld [vmem:[%s4325_s27 + $0x20] sm:$0xff] }
 0x1d7   : > { %1137 = vadd.xlane.f32.xlu0 %v1136_v40 }
 0x260   : > { %v1138_v46 = vpop.xlane.xlu0 %1137 }
 0x261   : > { %v1139_v47 = vmul.f32 0.03125, %v1138_v46 }
 0x263   : > { %v1140_v48 = vadd.f32 1e-06, %v1139_v47  ;;  %v3638_v47 = vld [vmem:[%s4345_s26 + $0x1] ss:$0 sm:$0xff] }
 0x265   : > { %4074 = vrsqrt.f32 %v1140_v48 }
 0x272   : > { %v4075_v49 = vpop.eup %4074 }
 0x273   : > { %v1142_v51 = vmul.f32 %v4075_v49, %v1134_v38  ;;  %v1178_v38 = vld [vmem:[%s4325_s27 + $0x28] sm:$0xff] }
 0x275   : > { %v1149_v53 = vmul.f32 %v3622_v50, %v1142_v51 }
 0x277   : > { %v4526_v54 = vadd.f32 %v3623_v52, %v1149_v53 }
 0x279   : > { %3801 = vmatmul.mubr.msk.f32.vlgmr.msra.gmra.mxu0 %vm1227_vm5, %v4526_v54 }
 0x27a   : > { %3804 = vmatpush3.msra.mxu0 %v1176_v55  ;;  %3811 = vmatprep.mubr.msk.f32.mxu0 %vm4140_vm4, %v4139_v41 }
 0x27b   : > { %3805 = vmatprep.subr.mxu0 %v4139_v41 }
 0x27c   : > { %3806 = vmatpush3.msra.mxu0 %v1175_v56 }
 0x27d   : > { %3807 = vmatprep.subr.mxu0 %v4139_v41 }
 0x27e   : > { %3808 = vmatpush3.msra.mxu0 %v1174_v57 }
 0x27f   : > { %3809 = vmatprep.subr.mxu0 %v4139_v41 }
 0x280   : > { %3810 = vmatpush3.msra.mxu0 %v1173_v58 }
 0x281   : > { %3812 = vmatmul.mubr.msk.f32.vlgmr.msra.gmra.mxu0 %vm1227_vm5, %v4526_v54  ;;  %3814 = vmatprep.subr.mxu0 %v4139_v41 }
 0x282   : > { %3815 = vmatpush3.msra.mxu0 %v1192_v59  ;;  %3822 = vmatprep.mubr.msk.f32.mxu0 %vm4140_vm4, %v4139_v41 }
 0x283   : > { %3816 = vmatprep.subr.mxu0 %v4139_v41 }
 0x284   : > { %3817 = vmatpush3.msra.mxu0 %v1191_v60 }
 0x285   : > { %3818 = vmatprep.subr.mxu0 %v4139_v41 }
 0x286   : > { %3819 = vmatpush3.msra.mxu0 %v1190_v61  ;;  %v1206_v61 = vld [vmem:[%s4938_s0 + $0x8] sm:$0xff] }
 0x287   : > { %3820 = vmatprep.subr.mxu0 %v4139_v41 }
 0x288   : > { %3821 = vmatpush3.msra.mxu0 %v1189_v62 }
 0x289   : > { %3823 = vmatmul.mubr.msk.f32.vlgmr.msra.gmra.mxu0 %vm1227_vm5, %v4526_v54  ;;  %3825 = vmatprep.subr.mxu0 %v4139_v41 }
 0x28a   : > { %3827 = vmatprep.mubr.msk.f32.mxu0 %vm4140_vm4, %v4139_v41 }
 0x339   : > { %v1297_v63 = vpop.f32.mrf.mxu0 }
 0x33a   : > { %v1298_v6 = vadd.f32 %v3624_v3, %v1297_v63  ;;  %v1183_v3 = vld [vmem:[%s4325_s27 + $0x50] sm:$0xff] }
 0x33b   : > { %v3802_v0 = vpop.f32.mrf.mxu0 }
 0x341   : > { %v1373_v2 = vpop.f32.mrf.mxu0 }
 0x342   : > { %v1374_v4 = vadd.f32 %v3626_v1, %v1373_v2  ;;  %v1205_v1 = vld [vmem:[%s4938_s0] sm:$0xff]  ;;  %v1184_v2 = vld [vmem:[%s4325_s27 + $0x58] sm:$0xff] }
 0x343   : > { %v3813_v5 = vpop.f32.mrf.mxu0 }
 0x344   : > { %3826 = vmatpush3.xpose.msk.msra.mxu0 %vm1453_vm6, %v1374_v4  ;;  %v1182_v4 = vld [vmem:[%s4325_s27 + $0x48] sm:$0xff]  ;;  %v1181_v5 = vld [vmem:[%s4325_s27 + $0x40] sm:$0xff] }
 0x345   : > { %3835 = vmatprep.subr.mxu0 %v4139_v41 }
 0x347   : > { %3828 = vmatmul.mubr.msk.f32.vlgmr.msra.gmra.mxu0 %vm1453_vm6, %v1298_v6  ;;  %v1168_v6 = vld [vmem:[%s4320_s18 + $0x58] sm:$0xff] }
 0x348   : > { %3836 = vmatpush3.msra.mxu0 %v1164_v7  ;;  %3843 = vmatprep.mubr.msk.f32.mxu0 %vm4140_vm4, %v4139_v41 }
 0x349   : > { %v1449_v10 = vpop.f32.mrf.mxu0  ;;  %3837 = vmatprep.subr.mxu0 %v4139_v41 }
 0x34a   : > { %v1450_v12 = vadd.f32 %v3628_v8, %v1449_v10  ;;  %3838 = vmatpush3.msra.mxu0 %v1163_v9  ;;  %v1167_v8 = vld [vmem:[%s4320_s18 + $0x50] sm:$0xff]  ;;  %v1166_v10 = vld [vmem:[%s4320_s18 + $0x48] sm:$0xff] }
 0x34b   : > { %v3824_v13 = vpop.f32.mrf.mxu0  ;;  %3839 = vmatprep.subr.mxu0 %v4139_v41 }
 0x34c   : > { %3831 = vmatpush3.msk.msra.mxu1 %vm1547_vm7, %v1450_v12  ;;  %3840 = vmatpush3.msra.mxu0 %v1162_v11  ;;  %v1165_v12 = vld [vmem:[%s4320_s18 + $0x40] sm:$0xff] }
 0x34d   : > { %3841 = vmatprep.subr.mxu0 %v4139_v41  ;;  %3846 = vmatprep.subr.mxu1 %v4139_v41 }
 0x34e   : > { %3842 = vmatpush3.msra.mxu0 %v1161_v14  ;;  %v1200_v14 = vld [vmem:[%s4330_s5 + $0x58] sm:$0xff] }
 0x34f   : > { %3844 = vmatmul.mubr.msk.f32.vlgmr.msra.gmra.mxu0 %vm1227_vm5, %v4526_v54  ;;  %3857 = vmatprep.subr.mxu0 %v4139_v41 }
 0x350   : > { %3858 = vmatpush3.msra.mxu0 %v1196_v15  ;;  %3865 = vmatprep.mubr.msk.f32.mxu0 %vm4140_vm4, %v4139_v41  ;;  %v1199_v15 = vld [vmem:[%s4330_s5 + $0x50] sm:$0xff] }
 0x351   : > { %3859 = vmatprep.subr.mxu0 %v4139_v41 }
 0x352   : > { %3860 = vmatpush3.msra.mxu0 %v1195_v16  ;;  %v3648_v16 = vld [vmem:[%s4340_s3 + $0x2] ss:$0 sm:$0xff] }
 0x353   : > { %3861 = vmatprep.subr.mxu0 %v4139_v41 }
 0x354   : > { %3862 = vmatpush3.msra.mxu0 %v1194_v17  ;;  %v1198_v17 = vld [vmem:[%s4330_s5 + $0x48] sm:$0xff] }
 0x355   : > { %3863 = vmatprep.subr.mxu0 %v4139_v41 }
 0x356   : > { %3864 = vmatpush3.msra.mxu0 %v1193_v18 }
 0x357   : > { %3866 = vmatmul.mubr.msk.f32.vlgmr.msra.gmra.mxu0 %vm1227_vm5, %v4526_v54  ;;  %3878 = vmatprep.subr.mxu0 %v4139_v41 }
 0x358   : > { %3880 = vmatprep.mubr.msk.f32.mxu0 %vm4140_vm4, %v4139_v41  ;;  %3879 = vmatpush3.msra.mxu0 %v1206_v61  ;;  %v1185_v61 = vld [vmem:[%s4325_s27 + $0x60] sm:$0xff] }
 0x359   : > { %3888 = vmatprep.subr.mxu0 %v4139_v41 }
 0x407   : > { %v1526_v19 = vpop.f32.mrf.mxu0 }
 0x408   : > { %v1530_v20 = vmul.f32 0.35355338, %v1526_v19 }
 0x409   : > { %v3829_v21 = vpop.f32.mrf.mxu0 }
 0x40a   : > { %v1532_v22 = vsel %vm1531_vm8, %v1530_v20, -inf }
 0x40b   : > { %1533 = vmax.xlane.f32.xlu1 %v1532_v22 }
 0x40f   : > { %v1693_v23 = vpop.f32.mrf.mxu0 }
 0x410   : > { %v1694_v49 = vadd.f32 %v3634_v45, %v1693_v23 }
 0x411   : > { %v3845_v24 = vpop.f32.mrf.mxu0 }
 0x412   : > { %v3646_v24 = vld [vmem:[%s4335_s4 + $0x2] ss:$0 sm:$0xff] }
 0x417   : > { %v1845_v25 = vpop.f32.mrf.mxu0 }
 0x418   : > { %v1846_v50 = vadd.f32 %v3638_v47, %v1845_v25  ;;  %v1172_v47 = vld [vmem:[%s4320_s18 + $0x78] sm:$0xff] }
 0x419   : > { %v3867_v26 = vpop.f32.mrf.mxu0 }
 0x494   : > { %v1534_v27 = vpop.xlane.xlu1 %1533 }
 0x495   : > { %v1535_v28 = vsub.f32 %v1530_v20, %v1534_v27  ;;  %v1197_v20 = vld [vmem:[%s4330_s5 + $0x40] sm:$0xff] }
 0x497   : > { %v1536_v29 = vmul.f32 1.442695, %v1535_v28  ;;  %v3650_v28 = vld [vmem:[%s4345_s26 + $0x2] ss:$0 sm:$0xff] }
 0x499   : > { %4076 = vpow2.f32 %v1536_v29 }
 0x4a6   : > { %v4077_v30 = vpop.eup %4076 }
 0x4a7   : > { %v1538_v31 = vsel %vm1531_vm8, %v4077_v30, 0.0 }
 0x4a8   : > { %1539 = vadd.xlane.f32.xlu1 %v1538_v31 }
 0x531   : > { %v1540_v32 = vpop.xlane.xlu1 %1539 }
 0x532   : > { %4078 = vrcp.f32 %v1540_v32 }
 0x53f   : > { %v4079_v33 = vpop.eup %4078 }
 0x540   : > { %v1542_v35 = vmul.f32 %v4079_v33, %v4077_v30 }
 0x542   : > { %3833 = vmatmul.mubr.msk.f32.vlgmr.msra.gmra.mxu1 %vm1543_vm9, %v1542_v35 }
 0x543   : > { %3847 = vmatpush3.msra.mxu1 %v1180_v36  ;;  %3854 = vmatprep.mubr.msk.f32.mxu1 %vm4140_vm4, %v4139_v41 }
 0x544   : > { %3848 = vmatprep.subr.mxu1 %v4139_v41 }
 0x545   : > { %3849 = vmatpush3.msra.mxu1 %v1179_v37 }
 0x546   : > { %3850 = vmatprep.subr.mxu1 %v4139_v41 }
 0x547   : > { %3851 = vmatpush3.msra.mxu1 %v1178_v38 }
 0x548   : > { %3852 = vmatprep.subr.mxu1 %v4139_v41 }
 0x549   : > { %3853 = vmatpush3.msra.mxu1 %v1177_v39 }
 0x54a   : > { %3855 = vmatmul.mubr.msk.f32.vlgmr.msra.gmra.mxu1 %vm1227_vm5, %v4526_v54  ;;  %3868 = vmatprep.subr.mxu1 %v4139_v41 }
 0x54b   : > { %3870 = vmatprep.mubr.msk.f32.mxu1 %vm4140_vm4, %v4139_v41 }
 0x602   : > { %v1617_v40 = vpop.f32.mrf.mxu1 }
 0x604   : > { %v3834_v42 = vpop.f32.mrf.mxu1 }
 0x60a   : > { %v1769_v44 = vpop.f32.mrf.mxu1 }
 0x60b   : > { %v1770_v46 = vadd.f32 %v3636_v43, %v1769_v44  ;;  %v1207_v43 = vld [vmem:[%s4938_s0 + $0x10] sm:$0xff] }
 0x60c   : > { %v3856_v48 = vpop.f32.mrf.mxu1 }
 0x60d   : > { %3869 = vmatpush3.xpose.msk.msra.mxu1 %vm1453_vm6, %v1770_v46  ;;  %v1171_v48 = vld [vmem:[%s4320_s18 + $0x70] sm:$0xff] }
 0x60e   : > { %3873 = vmatprep.subr.mxu1 %v4139_v41 }
 0x610   : > { %3871 = vmatmul.mubr.msk.f32.vlgmr.msra.gmra.mxu1 %vm1453_vm6, %v1694_v49  ;;  %v1170_v49 = vld [vmem:[%s4320_s18 + $0x68] sm:$0xff] }
 0x611   : > { %3874 = vmatpush3.msk.msra.mxu1 %vm1547_vm7, %v1846_v50  ;;  %3875 = vmatprep.mubr.msk.f32.mxu1 %vm4140_vm4, %v4139_v41  ;;  %v1169_v50 = vld [vmem:[%s4320_s18 + $0x60] sm:$0xff] }
 0x612   : > { %3883 = vmatprep.subr.mxu1 %v4139_v41 }
 0x6d0   : > { %v1921_v51 = vpop.f32.mrf.mxu1 }
 0x6d1   : > { %v1925_v52 = vmul.f32 0.35355338, %v1921_v51  ;;  %v1204_v51 = vld [vmem:[%s4330_s5 + $0x78] sm:$0xff] }
 0x6d2   : > { %v3872_v53 = vpop.f32.mrf.mxu1 }
 0x6d3   : > { %v1926_v55 = vsel %vm1531_vm8, %v1925_v52, -inf  ;;  %v1202_v53 = vld [vmem:[%s4330_s5 + $0x68] sm:$0xff] }
 0x6d4   : > { %1927 = vmax.xlane.f32.xlu0 %v1926_v55  ;;  %v1201_v55 = vld [vmem:[%s4330_s5 + $0x60] sm:$0xff] }
 0x75d   : > { %v1928_v56 = vpop.xlane.xlu0 %1927 }
 0x75e   : > { %v1929_v57 = vsub.f32 %v1925_v52, %v1928_v56  ;;  %v1203_v52 = vld [vmem:[%s4330_s5 + $0x70] sm:$0xff]  ;;  %v1188_v56 = vld [vmem:[%s4325_s27 + $0x78] sm:$0xff]  ;;  %s4939_s5 = sld [smem:[#allocation24_spill]] }
 0x760   : > { %v1930_v58 = vmul.f32 1.442695, %v1929_v57 }
 0x762   : > { %4080 = vpow2.f32 %v1930_v58  ;;  %v1187_v58 = vld [vmem:[%s4325_s27 + $0x70] sm:$0xff] }
 0x76f   : > { %v4081_v59 = vpop.eup %4080 }
 0x770   : > { %v1932_v60 = vsel %vm1531_vm8, %v4081_v59, 0.0 }
 0x771   : > { %1933 = vadd.xlane.f32.xlu1 %v1932_v60  ;;  %v1186_v60 = vld [vmem:[%s4325_s27 + $0x68] sm:$0xff] }
 0x7fa   : > { %v1934_v62 = vpop.xlane.xlu1 %1933 }
 0x7fb   : > { %4082 = vrcp.f32 %v1934_v62 }
 0x808   : > { %v4083_v63 = vpop.eup %4082 }
 0x809   : > { %v1936_v0 = vmul.f32 %v4083_v63, %v4081_v59 }
 0x80b   : > { %3876 = vmatmul.mubr.msk.f32.vlgmr.msra.gmra.mxu1 %vm1543_vm9, %v1936_v0 }
 0x80c   : > { %3884 = vmatpush3.msra.mxu1 %v1205_v1  ;;  %3885 = vmatprep.mubr.msk.f32.mxu1 %vm4140_vm4, %v4139_v41 }
 0x80d   : > { %3899 = vmatprep.subr.mxu1 %v4139_v41 }
 0x80f   : > { %3886 = vmatmul.mubr.msk.f32.vlgmr.msra.gmra.mxu1 %vm1453_vm6, %v1617_v40 }
 0x810   : > { %3900 = vmatpush3.msra.mxu1 %v1184_v2  ;;  %3907 = vmatprep.mubr.msk.f32.mxu1 %vm4140_vm4, %v4139_v41 }
 0x811   : > { %3901 = vmatprep.subr.mxu1 %v4139_v41 }
 0x812   : > { %3902 = vmatpush3.msra.mxu1 %v1183_v3 }
 0x813   : > { %3903 = vmatprep.subr.mxu1 %v4139_v41 }
 0x814   : > { %3904 = vmatpush3.msra.mxu1 %v1182_v4 }
 0x815   : > { %3905 = vmatprep.subr.mxu1 %v4139_v41 }
 0x816   : > { %3906 = vmatpush3.msra.mxu1 %v1181_v5 }
 0x817   : > { %3908 = vmatmul.mubr.msk.f32.vlgmr.msra.gmra.mxu1 %vm1227_vm5, %v4526_v54  ;;  %3921 = vmatprep.subr.mxu1 %v4139_v41 }
 0x818   : > { %3923 = vmatprep.mubr.msk.f32.mxu1 %vm4140_vm4, %v4139_v41 }
 0x8cb   : > { %v2009_v7 = vpop.f32.mrf.mxu1 }
 0x8cc   : > { %3881 = vmatmul.mubr.msk.f32.vlgmr.msra.gmra.mxu0 %vm1453_vm6, %v2009_v7 }
 0x8cd   : > { %3889 = vmatpush3.msra.mxu0 %v1168_v6  ;;  %v3877_v9 = vpop.f32.mrf.mxu1  ;;  %3896 = vmatprep.mubr.msk.f32.mxu0 %vm4140_vm4, %v4139_v41  ;;  %v3659_v6 = vld [vmem:[%s4340_s3 + $0x3] ss:$0 sm:$0xff] }
 0x8ce   : > { %3890 = vmatprep.subr.mxu0 %v4139_v41 }
 0x8cf   : > { %3891 = vmatpush3.msra.mxu0 %v1167_v8  ;;  %v4648_v11 = vpop.f32.mrf.mxu1  ;;  %v3657_v8 = vld [vmem:[%s4335_s4 + $0x3] ss:$0 sm:$0xff]  ;;  %s4940_s4 = scalar_lea.vmem %s4939_s5, %s4295_s2 }
 0x8d0   : > { %3892 = vmatprep.subr.mxu0 %v4139_v41 }
 0x8d1   : > { %3893 = vmatpush3.msra.mxu0 %v1166_v10  ;;  %v3887_v13 = vpop.f32.mrf.mxu1  ;;  %v3661_v10 = vld [vmem:[%s4345_s26 + $0x3] ss:$0 sm:$0xff]  ;;  %s4941_s26 = sld [smem:[#allocation25_spill]] }
 0x8d2   : > { %3894 = vmatprep.subr.mxu0 %v4139_v41 }
 0x8d3   : > { %3895 = vmatpush3.msra.mxu0 %v1165_v12 }
 0x8d4   : > { %3897 = vmatmul.mubr.msk.f32.vlgmr.msra.gmra.mxu0 %vm1227_vm5, %v4526_v54  ;;  %3910 = vmatprep.subr.mxu0 %v4139_v41 }
 0x8d5   : > { %3911 = vmatpush3.msra.mxu0 %v1200_v14  ;;  %3918 = vmatprep.mubr.msk.f32.mxu0 %vm4140_vm4, %v4139_v41 }
 0x8d6   : > { %3912 = vmatprep.subr.mxu0 %v4139_v41 }
 0x8d7   : > { %v2307_v18 = vpop.f32.mrf.mxu1  ;;  %3913 = vmatpush3.msra.mxu0 %v1199_v15  ;;  %s4942_s1 = scalar_lea.vmem %s4941_s26, %s4295_s2 }
 0x8d8   : > { %v2308_v19 = vadd.f32 %v3648_v16, %v2307_v18  ;;  %3914 = vmatprep.subr.mxu0 %v4139_v41 }
 0x8d9   : > { %v3909_v21 = vpop.f32.mrf.mxu1  ;;  %3915 = vmatpush3.msra.mxu0 %v1198_v17 }
 0x8da   : > { %3916 = vmatprep.subr.mxu0 %v4139_v41  ;;  %3922 = vmatpush3.xpose.msk.msra.mxu1 %vm1453_vm6, %v2308_v19 }
 0x8db   : > { %3917 = vmatpush3.msra.mxu0 %v1197_v20  ;;  %3926 = vmatprep.subr.mxu1 %v4139_v41 }
 0x8dc   : > { %3919 = vmatmul.mubr.msk.f32.vlgmr.msra.gmra.mxu0 %vm1227_vm5, %v4526_v54  ;;  %3931 = vmatprep.subr.mxu0 %v4139_v41 }
 0x8dd   : > { %3933 = vmatprep.mubr.msk.f32.mxu0 %vm4140_vm4, %v4139_v41  ;;  %3932 = vmatpush3.msra.mxu0 %v1207_v43  ;;  %v3130_v43 = vld [vmem:[%s4368_s12 + $0x8] sm:$0xff] }
 0x8de   : > { %3947 = vmatprep.subr.mxu0 %v4139_v41 }
 0x98c   : > { %v4673_v22 = vpop.f32.mrf.mxu0 }
 0x98d   : > { %v2156_v2 = vadd.f32 %v4648_v11, %v4673_v22  ;;  %v1208_v22 = vld [vmem:[%s4938_s0 + $0x18] sm:$0xff] }
 0x98e   : > { %v3882_v23 = vpop.f32.mrf.mxu0 }
 0x994   : > { %v2231_v25 = vpop.f32.mrf.mxu0 }
 0x995   : > { %v2232_v26 = vadd.f32 %v3646_v24, %v2231_v25 }
 0x996   : > { %v3898_v27 = vpop.f32.mrf.mxu0 }
 0x997   : > { %3924 = vmatmul.mubr.msk.f32.vlgmr.msra.gmra.mxu1 %vm1453_vm6, %v2232_v26 }
 0x998   : > { %3928 = vmatprep.mubr.msk.f32.mxu1 %vm4140_vm4, %v4139_v41 }
 0x99c   : > { %v2383_v29 = vpop.f32.mrf.mxu0 }
 0x99d   : > { %v2384_v30 = vadd.f32 %v3650_v28, %v2383_v29 }
 0x99e   : > { %v3920_v31 = vpop.f32.mrf.mxu0 }
 0x99f   : > { %3927 = vmatpush3.msk.msra.mxu1 %vm1547_vm7, %v2384_v30  ;;  %v3668_v30 = vld [vmem:[%s4940_s4] ss:$0 sm:$0xff] }
 0x9a0   : > { %3936 = vmatprep.subr.mxu1 %v4139_v41 }
 0xa57   : > { %v2459_v32 = vpop.f32.mrf.mxu1 }
 0xa58   : > { %v2463_v33 = vmul.f32 0.35355338, %v2459_v32 }
 0xa59   : > { %v3925_v35 = vpop.f32.mrf.mxu1 }
 0xa5a   : > { %v2464_v36 = vsel %vm1531_vm8, %v2463_v33, -inf }
 0xa5b   : > { %2465 = vmax.xlane.f32.xlu0 %v2464_v36 }
 0xae4   : > { %v2466_v37 = vpop.xlane.xlu0 %2465 }
 0xae5   : > { %v2467_v38 = vsub.f32 %v2463_v33, %v2466_v37 }
 0xae7   : > { %v2468_v39 = vmul.f32 1.442695, %v2467_v38 }
 0xae9   : > { %4084 = vpow2.f32 %v2468_v39 }
 0xaf6   : > { %v4085_v40 = vpop.eup %4084 }
 0xaf7   : > { %v2470_v42 = vsel %vm1531_vm8, %v4085_v40, 0.0 }
 0xaf8   : > { %2471 = vadd.xlane.f32.xlu1 %v2470_v42  ;;  %v3132_v42 = vld [vmem:[%s4368_s12 + $0x18] sm:$0xff] }
 0xb81   : > { %v2472_v44 = vpop.xlane.xlu1 %2471 }
 0xb82   : > { %4086 = vrcp.f32 %v2472_v44  ;;  %v3129_v44 = vld [vmem:[%s4368_s12] sm:$0xff] }
 0xb8f   : > { %v4087_v45 = vpop.eup %4086 }
 0xb90   : > { %v2474_v46 = vmul.f32 %v4087_v45, %v4085_v40  ;;  %v3233_v45 = vld [vmem:[%s4377_s23 + $0x78] sm:$0xff] }
 0xb92   : > { %3929 = vmatmul.mubr.msk.f32.vlgmr.msra.gmra.mxu1 %vm1543_vm9, %v2474_v46  ;;  %v3232_v46 = vld [vmem:[%s4377_s23 + $0x70] sm:$0xff] }
 0xb93   : > { %3937 = vmatpush3.msra.mxu1 %v1172_v47  ;;  %3944 = vmatprep.mubr.msk.f32.mxu1 %vm4140_vm4, %v4139_v41  ;;  %v3231_v47 = vld [vmem:[%s4377_s23 + $0x68] sm:$0xff] }
 0xb94   : > { %3938 = vmatprep.subr.mxu1 %v4139_v41 }
 0xb95   : > { %3939 = vmatpush3.msra.mxu1 %v1171_v48  ;;  %v3230_v48 = vld [vmem:[%s4377_s23 + $0x60] sm:$0xff] }
 0xb96   : > { %3940 = vmatprep.subr.mxu1 %v4139_v41 }
 0xb97   : > { %3941 = vmatpush3.msra.mxu1 %v1170_v49 }
 0xb98   : > { %3942 = vmatprep.subr.mxu1 %v4139_v41 }
 0xb99   : > { %3943 = vmatpush3.msra.mxu1 %v1169_v50 }
 0xb9a   : > { %3945 = vmatmul.mubr.msk.f32.vlgmr.msra.gmra.mxu1 %vm1227_vm5, %v4526_v54  ;;  %3958 = vmatprep.subr.mxu1 %v4139_v41 }
 0xb9b   : > { %3959 = vmatpush3.msra.mxu1 %v1204_v51  ;;  %3966 = vmatprep.mubr.msk.f32.mxu1 %vm4140_vm4, %v4139_v41 }
 0xb9c   : > { %3960 = vmatprep.subr.mxu1 %v4139_v41 }
 0xb9d   : > { %3961 = vmatpush3.msra.mxu1 %v1203_v52 }
 0xb9e   : > { %3962 = vmatprep.subr.mxu1 %v4139_v41 }
 0xb9f   : > { %3963 = vmatpush3.msra.mxu1 %v1202_v53  ;;  %v3669_v53 = vld [vmem:[%s4942_s1] ss:$0 sm:$0xff] }
 0xba0   : > { %3964 = vmatprep.subr.mxu1 %v4139_v41 }
 0xba1   : > { %3965 = vmatpush3.msra.mxu1 %v1201_v55 }
 0xba2   : > { %3967 = vmatmul.mubr.msk.f32.vlgmr.msra.gmra.mxu1 %vm1227_vm5, %v4526_v54  ;;  %3979 = vmatprep.subr.mxu1 %v4139_v41 }
 0xba3   : > { %3981 = vmatprep.mubr.msk.f32.mxu1 %vm4140_vm4, %v4139_v41  ;;  %3980 = vmatpush3.msra.mxu1 %v1208_v22 }
 0xba4   : > { %3995 = vmatprep.subr.mxu1 %v4139_v41 }
 0xc52   : > { %v2547_v57 = vpop.f32.mrf.mxu1 }
 0xc53   : > { %3934 = vmatmul.mubr.msk.f32.vlgmr.msra.gmra.mxu0 %vm1453_vm6, %v2547_v57 }
 0xc54   : > { %3948 = vmatpush3.msra.mxu0 %v1188_v56  ;;  %v3930_v59 = vpop.f32.mrf.mxu1  ;;  %3955 = vmatprep.mubr.msk.f32.mxu0 %vm4140_vm4, %v4139_v41  ;;  %v3670_v56 = vld [vmem:[%s4944_s13] ss:$0 sm:$0xff] }
 0xc55   : > { %3949 = vmatprep.subr.mxu0 %v4139_v41  ;;  %v3229_v59 = vld [vmem:[%s4377_s23 + $0x58] sm:$0xff] }
 0xc56   : > { %3950 = vmatpush3.msra.mxu0 %v1187_v58 }
 0xc57   : > { %3951 = vmatprep.subr.mxu0 %v4139_v41 }
 0xc58   : > { %3952 = vmatpush3.msra.mxu0 %v1186_v60  ;;  %v3228_v60 = vld [vmem:[%s4377_s23 + $0x50] sm:$0xff] }
 0xc59   : > { %3953 = vmatprep.subr.mxu0 %v4139_v41 }
 0xc5a   : > { %v2697_v62 = vpop.f32.mrf.mxu1  ;;  %3954 = vmatpush3.msra.mxu0 %v1185_v61  ;;  %v3227_v61 = vld [vmem:[%s4377_s23 + $0x48] sm:$0xff] }
 0xc5b   : > { %3956 = vmatmul.mubr.msk.f32.vlgmr.msra.gmra.mxu0 %vm1227_vm5, %v4526_v54  ;;  %3969 = vmatprep.subr.mxu0 %v4139_v41  ;;  %v2698_v12 = vadd.f32 %v3657_v8, %v2697_v62  ;;  %v3226_v62 = vld [vmem:[%s4377_s23 + $0x40] sm:$0xff] }
 0xc5c   : > { %v3946_v63 = vpop.f32.mrf.mxu1  ;;  %3971 = vmatprep.mubr.msk.f32.mxu0 %vm4140_vm4, %v4139_v41 }
 0xc5d   : > { %v3225_v63 = vld [vmem:[%s4377_s23 + $0x38] sm:$0xff] }
 0xc62   : > { %v2849_v0 = vpop.f32.mrf.mxu1 }
 0xc63   : > { %v2850_v13 = vadd.f32 %v3661_v10, %v2849_v0  ;;  %v3224_v0 = vld [vmem:[%s4377_s23 + $0x30] sm:$0xff] }
 0xc64   : > { %v3968_v1 = vpop.f32.mrf.mxu1 }
 0xc65   : > { %v3223_v1 = vld [vmem:[%s4377_s23 + $0x28] sm:$0xff] }
 0xd13   : > { %v2620_v3 = vpop.f32.mrf.mxu0 }
 0xd14   : > { %v2624_v4 = vadd.f32 %v2620_v3, %v2156_v2  ;;  %v3222_v2 = vld [vmem:[%s4377_s23 + $0x20] sm:$0xff]  ;;  %v3221_v3 = vld [vmem:[%s4377_s23 + $0x18] sm:$0xff] }
 0xd15   : > { %v3935_v5 = vpop.f32.mrf.mxu0 }
 0xd16   : > { %v3219_v5 = vld [vmem:[%s4377_s23 + $0x8] sm:$0xff] }
 0xd1b   : > { %v2773_v7 = vpop.f32.mrf.mxu0 }
 0xd1c   : > { %v2774_v9 = vadd.f32 %v3659_v6, %v2773_v7  ;;  %v3218_v6 = vld [vmem:[%s4377_s23] sm:$0xff] }
 0xd1d   : > { %v3957_v54 = vpop.f32.mrf.mxu0  ;;  %v3671_v7 = vld [vmem:[%s994_s14] ss:$0 sm:$0xff]  ;;  %s4947_s14 = sld [smem:[#allocation2_spill]] }
 0xd1e   : > { %3970 = vmatpush3.xpose.msk.msra.mxu0 %vm1453_vm6, %v2774_v9 }
 0xd1f   : > { %3974 = vmatprep.subr.mxu0 %v4139_v41 }
 0xd21   : > { %3972 = vmatmul.mubr.msk.f32.vlgmr.msra.gmra.mxu0 %vm1453_vm6, %v2698_v12 }
 0xd22   : > { %3975 = vmatpush3.msk.msra.mxu0 %vm1547_vm7, %v2850_v13  ;;  %3976 = vmatprep.mubr.msk.f32.mxu0 %vm4140_vm4, %v4139_v41 }
 0xd23   : > { %3984 = vmatprep.subr.mxu0 %v4139_v41  ;;  %p3674_p8 = scmp.ne.s32.totalorder %s4947_s14, 1 }
 0xd24   : > { %s4948_s24 = sld [smem:[#allocation30_spill]] (!%p3674_p8) }
 0xd25   : > { %s4949_s10 = sld [smem:[#allocation31_spill]] (!%p3674_p8) }
 0xde1   : > { %v2925_v11 = vpop.f32.mrf.mxu0 }
 0xde2   : > { %v2929_v14 = vmul.f32 0.35355338, %v2925_v11 }
 0xde3   : > { %v3973_v15 = vpop.f32.mrf.mxu0 }
 0xde4   : > { %v2930_v16 = vsel %vm1531_vm8, %v2929_v14, -inf }
 0xde5   : > { %2931 = vmax.xlane.f32.xlu0 %v2930_v16 }
 0xe6e   : > { %v2932_v17 = vpop.xlane.xlu0 %2931 }
 0xe6f   : > { %v2933_v18 = vsub.f32 %v2929_v14, %v2932_v17 }
 0xe71   : > { %v2934_v19 = vmul.f32 1.442695, %v2933_v18 }
 0xe73   : > { %4088 = vpow2.f32 %v2934_v19 }
 0xe80   : > { %v4089_v20 = vpop.eup %4088 }
 0xe81   : > { %v2936_v21 = vsel %vm1531_vm8, %v4089_v20, 0.0 }
 0xe82   : > { %2937 = vadd.xlane.f32.xlu1 %v2936_v21 }
 0xf0b   : > { %v2938_v23 = vpop.xlane.xlu1 %2937 }
 0xf0c   : > { %4090 = vrcp.f32 %v2938_v23 }
 0xf19   : > { %v4091_v24 = vpop.eup %4090 }
 0xf1a   : > { %v2940_v25 = vmul.f32 %v4091_v24, %v4089_v20 }
 0xf1c   : > { %3977 = vmatmul.mubr.msk.f32.vlgmr.msra.gmra.mxu0 %vm1543_vm9, %v2940_v25 }
 0xf1d   : > { %3992 = vmatprep.mubr.msk.f32.mxu0 %vm4140_vm4, %v4139_v41  ;;  %3985 = vmatpush3.msra.mxu0 %v3132_v42 }
 0xf1e   : > { %3986 = vmatprep.subr.mxu0 %v4139_v41 }
 0xfdc   : > { %v3013_v26 = vpop.f32.mrf.mxu0 }
 0xfdd   : > { %3982 = vmatmul.mubr.msk.f32.vlgmr.msra.gmra.mxu1 %vm1453_vm6, %v3013_v26 }
 0xfde   : > { %v3978_v27 = vpop.f32.mrf.mxu0  ;;  %4027 = vmatprep.mubr.msk.f32.mxu1 %vm4140_vm4, %v4139_v41  ;;  %3996 = vmatpush3.msra.mxu1 %v3233_v45 }
 0xfdf   : > { %3997 = vmatprep.subr.mxu1 %v4139_v41 }
 0xfe0   : > { %3998 = vmatpush3.msra.mxu1 %v3232_v46 }
 0xfe1   : > { %3999 = vmatprep.subr.mxu1 %v4139_v41 }
 0xfe2   : > { %4000 = vmatpush3.msra.mxu1 %v3231_v47 }
 0xfe3   : > { %4001 = vmatprep.subr.mxu1 %v4139_v41 }
 0xfe4   : > { %4002 = vmatpush3.msra.mxu1 %v3230_v48 }
 0xfe5   : > { %4003 = vmatprep.subr.mxu1 %v4139_v41 }
 0xfe6   : > { %4004 = vmatpush3.msra.mxu1 %v3229_v59 }
 0xfe7   : > { %4005 = vmatprep.subr.mxu1 %v4139_v41 }
 0xfe8   : > { %4006 = vmatpush3.msra.mxu1 %v3228_v60 }
 0xfe9   : > { %4007 = vmatprep.subr.mxu1 %v4139_v41 }
 0xfea   : > { %4008 = vmatpush3.msra.mxu1 %v3227_v61 }
 0xfeb   : > { %4009 = vmatprep.subr.mxu1 %v4139_v41 }
 0xfec   : > { %4010 = vmatpush3.msra.mxu1 %v3226_v62 }
 0xfed   : > { %4011 = vmatprep.subr.mxu1 %v4139_v41 }
 0xfee   : > { %4012 = vmatpush3.msra.mxu1 %v3225_v63 }
 0xfef   : > { %4013 = vmatprep.subr.mxu1 %v4139_v41 }
 0xff0   : > { %4014 = vmatpush3.msra.mxu1 %v3224_v0 }
 0xff1   : > { %4015 = vmatprep.subr.mxu1 %v4139_v41 }
 0xff2   : > { %4016 = vmatpush3.msra.mxu1 %v3223_v1 }
 0xff3   : > { %4017 = vmatprep.subr.mxu1 %v4139_v41 }
 0xff4   : > { %4018 = vmatpush3.msra.mxu1 %v3222_v2 }
 0xff5   : > { %4019 = vmatprep.subr.mxu1 %v4139_v41 }
 0xff6   : > { %4020 = vmatpush3.msra.mxu1 %v3221_v3 }
 0xff7   : > { %4021 = vmatprep.subr.mxu1 %v4139_v41 }
0x109d   : > { %v3086_v28 = vpop.f32.mrf.mxu1 }
0x109e   : > { %v3090_v29 = vadd.f32 %v3086_v28, %v2624_v4  ;;  %v3220_v4 = vld [vmem:[%s4377_s23 + $0x10] sm:$0xff] }
0x109f   : > { %v3983_v31 = vpop.f32.mrf.mxu1  ;;  %4022 = vmatpush3.msra.mxu1 %v3220_v4 }
0x10a0   : > { %v3091_v32 = vadd.f32 %v3090_v29, %v4496_v34  ;;  %v3131_v34 = vld [vmem:[%s4368_s12 + $0x10] sm:$0xff]  ;;  %4023 = vmatprep.subr.mxu1 %v4139_v41 }
0x10a1   : > { %3987 = vmatpush3.msra.mxu0 %v3131_v34  ;;  %4024 = vmatpush3.msra.mxu1 %v3219_v5 }
0x10a2   : > { %v4756_v33 = vadd.f32 %v3668_v30, %v3091_v32  ;;  %3988 = vmatprep.subr.mxu0 %v4139_v41  ;;  %4025 = vmatprep.subr.mxu1 %v4139_v41 }
0x10a3   : > { %3989 = vmatpush3.msra.mxu0 %v3130_v43  ;;  %4026 = vmatpush3.msra.mxu1 %v3218_v6 }
0x10a4   : > { %v3102_v35 = vsel %vm1128_vm3, %v4756_v33, 0.0  ;;  %3990 = vmatprep.subr.mxu0 %v4139_v41  ;;  %v3673_v41 = vld [vmem:[%s1002_s15] ss:$0 sm:$0xff] }
0x10a5   : > { %3103 = vadd.xlane.f32.xlu0 %v3102_v35  ;;  %3991 = vmatpush3.msra.mxu0 %v3129_v44 }
0x112e   : > { %v3104_v36 = vpop.xlane.xlu0 %3103 }
0x112f   : > { %v3105_v37 = vmul.f32 0.03125, %v3104_v36 }
0x1131   : > { %v3106_v38 = vsub.f32 %v4756_v33, %v3105_v37 }
0x1133   : > { %v3107_v39 = vmul.f32 %v3106_v38, %v3106_v38 }
0x1135   : > { %v3108_v40 = vsel %vm1128_vm3, %v3107_v39, 0.0 }
0x1136   : > { %3109 = vadd.xlane.f32.xlu1 %v3108_v40 }
0x11bf   : > { %v3110_v49 = vpop.xlane.xlu1 %3109 }
0x11c0   : > { %v3111_v50 = vmul.f32 0.03125, %v3110_v49 }
0x11c2   : > { %v3112_v51 = vadd.f32 1e-06, %v3111_v50 }
0x11c4   : > { %4092 = vrsqrt.f32 %v3112_v51 }
0x11d1   : > { %v4093_v52 = vpop.eup %4092 }
0x11d2   : > { %v3114_v55 = vmul.f32 %v4093_v52, %v3106_v38 }
0x11d4   : > { %v3121_v57 = vmul.f32 %v3669_v53, %v3114_v55 }
0x11d6   : > { %v3128_v58 = vadd.f32 %v3670_v56, %v3121_v57 }
0x11d8   : > { %3993 = vmatmul.mubr.msk.f32.vlgmr.msra.gmra.mxu0 %vm1227_vm5, %v3128_v58 }
0x1298   : > { %v3209_v8 = vpop.f32.mrf.mxu0 }
0x1299   : > { %v3210_v9 = vadd.f32 %v3671_v7, %v3209_v8 }
0x129a   : > { %v3994_v10 = vpop.f32.mrf.mxu0 }
0x129b   : > { %v3214_v54 = vmul.f32 0.70710677, %v3210_v9  ;;  %v3213_v13 = vmul.f32 0.5, %v3210_v9 }
0x129d   : > { %4094 = verf.f32 %v3214_v54 }
0x12aa   : > { %v4095_v12 = vpop.eup %4094 }
0x12ab   : > { %v3216_v11 = vadd.f32 1.0, %v4095_v12 }
0x12ad   : > { %v3217_v14 = vmul.f32 %v3216_v11, %v3213_v13 }
0x12af   : > { %4028 = vmatmul.mubr.f32.vlgmr.msra.gmra.mxu1 %v3217_v14 }
0x136f   : > { %v3300_v15 = vpop.f32.mrf.mxu1 }
0x1370   : > { %v3304_v16 = vadd.f32 %v3300_v15, %v4756_v33  ;;  %3317 = sbr.rel (%p3674_p8) target bundleno = 5290 (0x14aa), region = 120 }
0x1371   : > { %v4029_v17 = vpop.f32.mrf.mxu1 }
0x1372   : > { %v3312_v18 = vadd.f32 %v3673_v41, %v3304_v16 }
0x1374   : > { %3313 = vst.msk [vmem:[%s4386_s16] sm:$0x1f] %vm1128_vm3, %v3312_v18 }
0x1375   : > { %v3320_v19 = vsel %vm1128_vm3, %v3312_v18, 0.0  ;;  %v3675_v29 = vld [vmem:[%s4948_s24] ss:$0 sm:$0xff] }
0x1376   : > { %3321 = vadd.xlane.f32.xlu0 %v3320_v19  ;;  %v3676_v31 = vld [vmem:[%s4949_s10] ss:$0 sm:$0xff] }
0x13ff   : > { %v3322_v20 = vpop.xlane.xlu0 %3321 }
0x1400   : > { %v3323_v21 = vmul.f32 0.03125, %v3322_v20 }
0x1402   : > { %v3324_v22 = vsub.f32 %v3312_v18, %v3323_v21 }
0x1404   : > { %v3325_v23 = vmul.f32 %v3324_v22, %v3324_v22 }
0x1406   : > { %v3326_v24 = vsel %vm1128_vm3, %v3325_v23, 0.0 }
0x1407   : > { %3327 = vadd.xlane.f32.xlu0 %v3326_v24 }
0x1490   : > { %v3328_v25 = vpop.xlane.xlu0 %3327 }
0x1491   : > { %v3329_v26 = vmul.f32 0.03125, %v3328_v25 }
0x1493   : > { %v3330_v27 = vadd.f32 1e-06, %v3329_v26 }
0x1495   : > { %4096 = vrsqrt.f32 %v3330_v27 }
0x14a2   : > { %v4097_v28 = vpop.eup %4096 }
0x14a3   : > { %v3332_v30 = vmul.f32 %v4097_v28, %v3324_v22 }
0x14a5   : > { %v3339_v32 = vmul.f32 %v3675_v29, %v3332_v30 }
0x14a7   : > { %v3346_v33 = vadd.f32 %v3676_v31, %v3339_v32 }
0x14a9   : > { %3347 = vst.msk [vmem:[%s4386_s16] sm:$0x1f] %vm1128_vm3, %v3346_v33 }
0x14aa PF: > { %s4950_s20 = sld [smem:[#allocation5_spill]] }
0x14ab   : > { %s4951_s4 = sld [smem:[#allocation3_spill]] }
0x14ac   : > { %s4952_s30 = sld [smem:[#allocation4_spill]] }
0x14ad   : > { %s4953_s24 = sld [smem:[#allocation6_spill]] }
0x14ae   : > { %s4954_s25 = sld [smem:[#allocation7_spill]] }
0x14b0   : > { %s33_s5 = sadd.s32 1, %s4950_s20  }
0x14b1   : > { %p30_p9 = scmp.ge.s32.totalorder %s33_s5, 10  }
0x14b3   :  { %32 = sbr.rel (!%p30_p9) target bundleno = 24 (0x18), region = 201 }

// kernel: _lambda_.7
= control target key start
LH: loop header
LB: loop body
LE: loop exit
PB: predicated region body
PF: predicated region fallthrough
CT: control target
= control target key end

     0   :  { %s6219_s0 = inlined_call_operand.vmem [shape: f32[2,8,32], index: 0, kind: input, shape index: {}]   ;;  %s6220_s1 = inlined_call_operand.vmem [shape: f32[2,8,32], index: 1, kind: input, shape index: {}]   ;;  %s6221_s2 = inlined_call_operand.vmem [shape: f32[4,32,8], index: 2, kind: input, shape index: {}]   ;;  %s6222_s3 = inlined_call_operand.vmem [shape: f32[4,32,8], index: 3, kind: input, shape index: {}]   ;;  %s6223_s4 = inlined_call_operand.vmem [shape: f32[4,32,8], index: 4, kind: input, shape index: {}]   ;;  %s6224_s5 = inlined_call_operand.vmem [shape: f32[4,8,32], index: 5, kind: input, shape index: {}]   ;;  %s6225_s6 = inlined_call_operand.vmem [shape: f32[1,32], index: 6, kind: input, shape index: {}]   ;;  %s6226_s7 = inlined_call_operand.vmem [shape: f32[1,32], index: 7, kind: input, shape index: {}]   ;;  %s6227_s8 = inlined_call_operand.vmem [shape: f32[1,32], index: 8, kind: input, shape index: {}]   ;;  %s6228_s9 = inlined_call_operand.vmem [shape: f32[64,32], index: 9, kind: input, shape index: {}]   ;;  %s6229_s10 = inlined_call_operand.vmem [shape: f32[1,32], index: 10, kind: input, shape index: {}]   ;;  %s6230_s11 = inlined_call_operand.vmem [shape: f32[32,3], index: 11, kind: input, shape index: {}]   ;;  %s6231_s12 = inlined_call_operand.vmem [shape: f32[1,3], index: 12, kind: input, shape index: {}]   ;;  %s6232_s13 = inlined_call_operand.hbm [shape: f32[2,1,3], index: 13, kind: output, shape index: {}]  }
   0x1   :  { %6236 = sst [smem:[#allocation9_spill]] %s6219_s0 }
   0x2   :  { %18 = vsyncpa [#allocation3], 0 }
   0x3   :  { %20 = vsyncpa [#allocation3 + $0x1], 0  ;;  %s5335_s25 = smov 0   ;;  %s5337_s26 = smov 0  }
   0x4   :  { %s5339_s27 = smov 0   ;;  %s5341_s28 = smov 0  }
   0x5 LB: > { %6237 = sst [smem:[#allocation5_spill]] %s5256_s27  ;;  %s5356_s29 = sadd.s32 4294967295, %s5260_s28   ;;  %s5260_s28 = sphi %s5341_s28, %s6250_s28   ;;  %s5256_s27 = sphi %s5339_s27, %s6247_s27   ;;  %s5252_s26 = sphi %s5337_s26, %s6249_s26   ;;  %s5248_s25 = sphi %s5335_s25, %s6248_s25  }
   0x6   : > { %s4450_s30 = sadd.s32 4294967294, %s5260_s28   ;;  %s5360_s14 = sadd.s32 1, %s5260_s28  }
   0x7   : > { %s316_s15 = sadd.s32 1, %s5256_s27  ;;  %s313_s16 = ssub.s32 %s5260_s28, %s5360_s14 }
   0x8   : > { %p326_p0 = scmp.ne.s32.totalorder %s5256_s27, %s5252_s26  ;;  %p314_p1 = scmp.eq.s32.totalorder %s313_s16, 0 }
   0x9   : > { %p327_p2 = scmp.eq.s32.totalorder %s5356_s29, 1  ;;  %p332_p3 = scmp.ne.s32.totalorder %s5252_s26, %s5248_s25 }
   0xa   : > { %p333_p4 = scmp.eq.s32.totalorder %s4450_s30, 1  ;;  %p4453_p7 = scmp.ge.s32.totalorder %s5260_s28, 1 }
   0xb   : > { %s5371_s17 = scalar_select %p314_p1, %s5256_s27, %s316_s15  }
   0xc   : > { %p5373_p5 = por %p327_p2, %p326_p0  ;;  %p5377_p6 = por %p333_p4, %p332_p3 }
   0xd   : > { %6238 = sst [smem:[#allocation6_spill]] %s5371_s17  ;;  %p398_p8 = scmp.lt.s32.totalorder %s5260_s28, 3 }
   0xf   : > { %p399_p9 = pnand %p4453_p7, %p398_p8 }
  0x11   : > { %402 = sbr.rel (%p399_p9) target bundleno = 7816 (0x1e88), region = 72 }
  0x16   : > { %v5386_v0 = vld [vmem:[%s6222_s3 + $0x18] sm:$0xff]  ;;  %p444_p10 = scmp.lt.s32.totalorder %s5356_s29, 1  ;;  %v5262_v2 = vmov 0.0   ;;  %v5399_v3 = vld [vmem:[%s6222_s3 + $0x10] sm:$0xff]  ;;  %v5414_v5 = vld [vmem:[%s6222_s3 + $0x8] sm:$0xff]  ;;  %s6241_s0 = sld [smem:[#allocation9_spill]] }
  0x17   : > { %v5391_v1 = vld [vmem:[%s6221_s2 + $0x18] sm:$0xff]  ;;  %4713 = vmatprep.subr.mxu1 %v5262_v2  ;;  %4702 = vmatprep.subr.mxu0 %v5262_v2  ;;  %v5404_v4 = vld [vmem:[%s6221_s2 + $0x10] sm:$0xff]  ;;  %v5419_v6 = vld [vmem:[%s6221_s2 + $0x8] sm:$0xff]  ;;  %vm506_vm0 = vcmask 261120   ;;  %vm5263_vm1 = vmmov 0   ;;  %vm723_vm2 = vcmask 64512  }
  0x18   : > { %4714 = vmatpush3.msra.mxu1 %v5386_v0  ;;  %4703 = vmatpush3.msra.mxu0 %v5391_v1  ;;  %s445_s20 = scalar_select %p444_p10, %s5356_s29, 1  ;;  %v5428_v7 = vld [vmem:[%s6222_s3] sm:$0xff]  ;;  %v5479_v15 = vld [vmem:[%s6223_s4 + $0x18] sm:$0xff]  ;;  %v5484_v16 = vld [vmem:[%s6223_s4 + $0x10] sm:$0xff]  ;;  %vm4368_vm3 = vcmask 16384  }
  0x19   : > { %4715 = vmatprep.subr.mxu1 %v5262_v2  ;;  %4704 = vmatprep.subr.mxu0 %v5262_v2  ;;  %v5445_v8 = vld [vmem:[%s6221_s2] sm:$0xff]  ;;  %v5491_v17 = vld [vmem:[%s6223_s4 + $0x8] sm:$0xff]  ;;  %v5514_v30 = vld [vmem:[%s6221_s2 + $0x38] sm:$0xff]  ;;  %s442_s17 = sand.u32 1, %s5252_s26   ;;  %s4516_s21 = sshll.u32 %s5356_s29, 4 }
  0x1a   : > { %4716 = vmatpush3.msra.mxu1 %v5399_v3  ;;  %4705 = vmatpush3.msra.mxu0 %v5404_v4  ;;  %s4454_s30 = sshll.u32 %s445_s20, 3  ;;  %v5498_v18 = vld [vmem:[%s6223_s4] sm:$0xff]  ;;  %v5521_v31 = vld [vmem:[%s6221_s2 + $0x30] sm:$0xff]  ;;  %v5528_v32 = vld [vmem:[%s6221_s2 + $0x28] sm:$0xff]  ;;  %s443_s22 = scalar_lea.vmem [#allocation2], %s442_s17 }
  0x1b   : > { %4717 = vmatprep.subr.mxu1 %v5262_v2  ;;  %4706 = vmatprep.subr.mxu0 %v5262_v2  ;;  %s5433_s23 = scalar_lea.vmem %s6220_s1, %s4454_s30  ;;  %v5535_v33 = vld [vmem:[%s6221_s2 + $0x20] sm:$0xff]  ;;  %v5546_v37 = vld [vmem:[%s6222_s3 + $0x38] sm:$0xff]  ;;  %v5552_v38 = vld [vmem:[%s6222_s3 + $0x30] sm:$0xff]  ;;  %s4383_s24 = sshll.u32 %s443_s22, 4  ;;  %s4384_s24 = int_to_ptr.vmem [resolvable:$true] %s4383_s24 }
  0x1c   : > { %s5438_s27 = scalar_lea.vmem %s6241_s0, %s4454_s30  ;;  %4718 = vmatpush3.msra.mxu1 %v5414_v5  ;;  %4707 = vmatpush3.msra.mxu0 %v5419_v6  ;;  %v5450_v9 = vld [vmem:[%s5433_s23] sm:$0xff]  ;;  %v5561_v39 = vld [vmem:[%s6222_s3 + $0x28] sm:$0xff]  ;;  %v5588_v47 = vld [vmem:[%s6223_s4 + $0x38] sm:$0xff]  ;;  %s5200_s0 = scalar_lea.vmem %s4384_s24, 16 }
  0x1d   : > { %4719 = vmatprep.subr.mxu1 %v5262_v2  ;;  %4708 = vmatprep.subr.mxu0 %v5262_v2  ;;  %v5453_v10 = vld [vmem:[%s5438_s27] sm:$0xff]  ;;  %v5593_v48 = vld [vmem:[%s6223_s4 + $0x30] sm:$0xff]  ;;  %v5600_v49 = vld [vmem:[%s6223_s4 + $0x28] sm:$0xff]  ;;  %p5201_p11 = scmp.ne.s32.totalorder %s4384_s24, %s5200_s0  ;;  %s5264_s29 = smov [#allocation2]  }
  0x1e   : > { %4720 = vmatpush3.msra.mxu1 %v5428_v7  ;;  %4721 = vmatprep.mubr.msk.f32.mxu1 %vm5263_vm1, %v5262_v2  ;;  %v5568_v40 = vld [vmem:[%s6222_s3 + $0x20] sm:$0xff]  ;;  %s5204_s30 = sshll.u32 %s5264_s29, 4  ;;  %s5205_s30 = int_to_ptr.vmem [resolvable:$false] %s5204_s30 }
  0x1f   : > { %4709 = vmatpush3.msra.mxu0 %v5445_v8  ;;  %4710 = vmatprep.mubr.msk.f32.mxu0 %vm5263_vm1, %v5262_v2  ;;  %v5607_v50 = vld [vmem:[%s6223_s4 + $0x20] sm:$0xff]  ;;  %p5202_p12 = pnand %p5201_p11, %p5373_p5  ;;  %s5206_s16 = scalar_lea.vmem %s5205_s30, 32 }
  0x20   : > { %4722 = vmatmul.mubr.msk.f32.vlgmr.msra.gmra.mxu1 %vm506_vm0, %v5450_v9  ;;  %4711 = vmatmul.mubr.msk.f32.vlgmr.msra.gmra.mxu0 %vm506_vm0, %v5453_v10  ;;  %p5207_p0 = scmp.lt.s32.totalorder %s4384_s24, %s5205_s30  ;;  %p5208_p1 = scmp.lt.s32.totalorder %s5206_s16, %s5200_s0 }
  0x21   : > { %4735 = vmatprep.subr.mxu1 %v5262_v2  ;;  %4737 = vmatprep.mubr.msk.f32.mxu1 %vm5263_vm1, %v5262_v2  ;;  %p5203_p13 = pneg %p5202_p12 }
  0x22   : > { %4724 = vmatprep.subr.mxu0 %v5262_v2  ;;  %4732 = vmatprep.mubr.msk.f32.mxu0 %vm5263_vm1, %v5262_v2  ;;  %p5209_p2 = por %p5208_p1, %p5207_p0 }
  0x23   : > { %4725 = vmatpush3.msra.mxu0 %v5479_v15 }
  0x24   : > { %4726 = vmatprep.subr.mxu0 %v5262_v2  ;;  %p5210_p3 = pnand %p5209_p2, %p5203_p13 }
  0x25   : > { %4727 = vmatpush3.msra.mxu0 %v5484_v16 }
  0x26   : > { %4728 = vmatprep.subr.mxu0 %v5262_v2 }
  0x27   : > { %4729 = vmatpush3.msra.mxu0 %v5491_v17 }
  0x28   : > { %4730 = vmatprep.subr.mxu0 %v5262_v2 }
  0x29   : > { %4731 = vmatpush3.msra.mxu0 %v5498_v18 }
  0x2a   : > { %4733 = vmatmul.mubr.msk.f32.vlgmr.msra.gmra.mxu0 %vm506_vm0, %v5450_v9  ;;  %4745 = vmatprep.subr.mxu0 %v5262_v2 }
  0x2b   : > { %4753 = vmatprep.mubr.msk.f32.mxu0 %vm5263_vm1, %v5262_v2  ;;  %4746 = vmatpush3.msra.mxu0 %v5514_v30 }
  0x2c   : > { %4747 = vmatprep.subr.mxu0 %v5262_v2 }
  0x2d   : > { %4748 = vmatpush3.msra.mxu0 %v5521_v31 }
  0x2e   : > { %4749 = vmatprep.subr.mxu0 %v5262_v2 }
  0x2f   : > { %4750 = vmatpush3.msra.mxu0 %v5528_v32 }
  0x30   : > { %4751 = vmatprep.subr.mxu0 %v5262_v2 }
  0x31   : > { %4752 = vmatpush3.msra.mxu0 %v5535_v33 }
  0x32   : > { %4754 = vmatmul.mubr.msk.f32.vlgmr.msra.gmra.mxu0 %vm506_vm0, %v5453_v10  ;;  %4767 = vmatprep.subr.mxu0 %v5262_v2 }
  0x33   : > { %4775 = vmatprep.mubr.msk.f32.mxu0 %vm5263_vm1, %v5262_v2  ;;  %4768 = vmatpush3.msra.mxu0 %v5588_v47 }
  0x34   : > { %4769 = vmatprep.subr.mxu0 %v5262_v2 }
  0x35   : > { %4770 = vmatpush3.msra.mxu0 %v5593_v48 }
  0x36   : > { %4771 = vmatprep.subr.mxu0 %v5262_v2 }
  0x37   : > { %4772 = vmatpush3.msra.mxu0 %v5600_v49 }
  0x38   : > { %4773 = vmatprep.subr.mxu0 %v5262_v2 }
  0x39   : > { %4774 = vmatpush3.msra.mxu0 %v5607_v50 }
  0x3a   : > { %4776 = vmatmul.mubr.msk.f32.vlgmr.msra.gmra.mxu0 %vm506_vm0, %v5450_v9  ;;  %4798 = vmatprep.subr.mxu0 %v5262_v2 }
  0x3b   : > { %4806 = vmatprep.mubr.msk.f32.mxu0 %vm5263_vm1, %v5262_v2 }
  0xe0   : > { %v649_v11 = vpop.f32.mrf.mxu1  ;;  %v576_v12 = vpop.f32.mrf.mxu0 }
  0xe1   : > { %4736 = vmatpush3.xpose.msk.msra.mxu1 %vm723_vm2, %v649_v11 }
  0xe2   : > { %v4723_v13 = vpop.f32.mrf.mxu1  ;;  %v4712_v14 = vpop.f32.mrf.mxu0  ;;  %4740 = vmatprep.subr.mxu1 %v5262_v2 }
  0xe3   : > { %v5633_v13 = vld [vmem:[%s6221_s2 + $0x58] sm:$0xff]  ;;  %v5640_v14 = vld [vmem:[%s6221_s2 + $0x50] sm:$0xff] }
  0xe4   : > { %4738 = vmatmul.mubr.msk.f32.vlgmr.msra.gmra.mxu1 %vm723_vm2, %v576_v12  ;;  %v5623_v12 = vld [vmem:[%s6224_s5 + $0x8] sm:$0xff]  ;;  %4799 = vmatpush3.msra.mxu0 %v5633_v13 }
  0xe5   : > { %4742 = vmatprep.mubr.msk.f32.mxu1 %vm5263_vm1, %v5262_v2  ;;  %4800 = vmatprep.subr.mxu0 %v5262_v2 }
  0xe6   : > { %4801 = vmatpush3.msra.mxu0 %v5640_v14 }
  0xe7   : > { %4802 = vmatprep.subr.mxu0 %v5262_v2 }
  0xea   : > { %v719_v28 = vpop.f32.mrf.mxu0 }
  0xeb   : > { %4741 = vmatpush3.msra.mxu1 %v719_v28 }
  0xec   : > { %v4734_v29 = vpop.f32.mrf.mxu0  ;;  %4756 = vmatprep.subr.mxu1 %v5262_v2 }
  0xf2   : > { %v951_v41 = vpop.f32.mrf.mxu0 }
  0xf4   : > { %v4755_v42 = vpop.f32.mrf.mxu0 }
  0xfa   : > { %v1091_v60 = vpop.f32.mrf.mxu0 }
  0xfc   : > { %v4777_v61 = vpop.f32.mrf.mxu0 }
 0x1a4   : > { %v796_v19 = vpop.f32.mrf.mxu1 }
 0x1a5   : > { %v800_v20 = vmul.f32 0.35355338, %v796_v19  ;;  %v5647_v19 = vld [vmem:[%s6221_s2 + $0x48] sm:$0xff] }
 0x1a6   : > { %v4739_v21 = vpop.f32.mrf.mxu1  ;;  %4803 = vmatpush3.msra.mxu0 %v5647_v19 }
 0x1a7   : > { %v801_v22 = vsel %vm723_vm2, %v800_v20, -inf  ;;  %4804 = vmatprep.subr.mxu0 %v5262_v2  ;;  %v5665_v21 = vld [vmem:[%s6224_s5] sm:$0xff] }
 0x1a8   : > { %802 = vmax.xlane.f32.xlu0 %v801_v22 }
 0x231   : > { %v803_v23 = vpop.xlane.xlu0 %802 }
 0x232   : > { %v804_v24 = vsub.f32 %v800_v20, %v803_v23  ;;  %v5654_v20 = vld [vmem:[%s6221_s2 + $0x40] sm:$0xff] }
 0x233   : > { %4805 = vmatpush3.msra.mxu0 %v5654_v20 }
 0x234   : > { %v805_v25 = vmul.f32 1.442695, %v804_v24  ;;  %4807 = vmatmul.mubr.msk.f32.vlgmr.msra.gmra.mxu0 %vm506_vm0, %v5453_v10  ;;  %4820 = vmatprep.subr.mxu0 %v5262_v2  ;;  %v5675_v24 = vld [vmem:[%s6222_s3 + $0x58] sm:$0xff] }
 0x235   : > { %4828 = vmatprep.mubr.msk.f32.mxu0 %vm5263_vm1, %v5262_v2 }
 0x236   : > { %5160 = vpow2.f32 %v805_v25  ;;  %v5682_v25 = vld [vmem:[%s6222_s3 + $0x50] sm:$0xff] }
 0x243   : > { %v5161_v26 = vpop.eup %5160 }
 0x244   : > { %v807_v27 = vsel %vm723_vm2, %v5161_v26, 0.0 }
 0x245   : > { %808 = vadd.xlane.f32.xlu0 %v807_v27  ;;  %v5698_v27 = vld [vmem:[%s6222_s3 + $0x40] sm:$0xff] }
 0x2ce   : > { %v809_v34 = vpop.xlane.xlu0 %808 }
 0x2cf   : > { %5162 = vrcp.f32 %v809_v34 }
 0x2dc   : > { %v5163_v35 = vpop.eup %5162 }
 0x2dd   : > { %v811_v36 = vmul.f32 %v5163_v35, %v5161_v26  ;;  %v5691_v26 = vld [vmem:[%s6222_s3 + $0x48] sm:$0xff] }
 0x2df   : > { %4743 = vmatmul.mubr.msk.f32.vlgmr.msra.gmra.mxu1 %vm723_vm2, %v811_v36 }
 0x2e0   : > { %4757 = vmatpush3.msra.mxu1 %v5546_v37  ;;  %4764 = vmatprep.mubr.msk.f32.mxu1 %vm5263_vm1, %v5262_v2 }
 0x2e1   : > { %4758 = vmatprep.subr.mxu1 %v5262_v2 }
 0x2e2   : > { %4759 = vmatpush3.msra.mxu1 %v5552_v38 }
 0x2e3   : > { %4760 = vmatprep.subr.mxu1 %v5262_v2 }
 0x2e4   : > { %4761 = vmatpush3.msra.mxu1 %v5561_v39 }
 0x2e5   : > { %4762 = vmatprep.subr.mxu1 %v5262_v2 }
 0x2e6   : > { %4763 = vmatpush3.msra.mxu1 %v5568_v40 }
 0x2e7   : > { %4765 = vmatmul.mubr.msk.f32.vlgmr.msra.gmra.mxu1 %vm506_vm0, %v5450_v9  ;;  %4778 = vmatprep.subr.mxu1 %v5262_v2 }
 0x2e8   : > { %4780 = vmatprep.mubr.msk.f32.mxu1 %vm5263_vm1, %v5262_v2 }
 0x2f4   : > { %v1468_v28 = vpop.f32.mrf.mxu0 }
 0x2f6   : > { %v4808_v29 = vpop.f32.mrf.mxu0 }
 0x2f7   : > { %v5763_v29 = vld [vmem:[%s6221_s2 + $0x78] sm:$0xff] }
 0x39f   : > { %v5578_v43 = vpop.f32.mrf.mxu1 }
 0x3a1   : > { %v4744_v44 = vpop.f32.mrf.mxu1 }
 0x3a7   : > { %v1021_v45 = vpop.f32.mrf.mxu1 }
 0x3a8   : > { %4779 = vmatpush3.xpose.msk.msra.mxu1 %vm723_vm2, %v1021_v45  ;;  %v5718_v45 = vld [vmem:[%s6223_s4 + $0x58] sm:$0xff] }
 0x3a9   : > { %v4766_v46 = vpop.f32.mrf.mxu1  ;;  %4783 = vmatprep.subr.mxu1 %v5262_v2  ;;  %4821 = vmatpush3.msra.mxu0 %v5718_v45 }
 0x3aa   : > { %v5723_v46 = vld [vmem:[%s6223_s4 + $0x50] sm:$0xff]  ;;  %4822 = vmatprep.subr.mxu0 %v5262_v2 }
 0x3ab   : > { %4781 = vmatmul.mubr.msk.f32.vlgmr.msra.gmra.mxu1 %vm723_vm2, %v951_v41  ;;  %4823 = vmatpush3.msra.mxu0 %v5723_v46 }
 0x3ac   : > { %4785 = vmatprep.mubr.msk.f32.mxu1 %vm5263_vm1, %v5262_v2  ;;  %4784 = vmatpush3.msra.mxu1 %v1091_v60 }
 0x3ad   : > { %4788 = vmatprep.subr.mxu1 %v5262_v2  ;;  %4824 = vmatprep.subr.mxu0 %v5262_v2 }
 0x46b   : > { %v1167_v51 = vpop.f32.mrf.mxu1 }
 0x46c   : > { %v1171_v52 = vmul.f32 0.35355338, %v1167_v51  ;;  %v5730_v51 = vld [vmem:[%s6223_s4 + $0x48] sm:$0xff] }
 0x46d   : > { %v4782_v53 = vpop.f32.mrf.mxu1  ;;  %4825 = vmatpush3.msra.mxu0 %v5730_v51 }
 0x46e   : > { %v1172_v54 = vsel %vm723_vm2, %v1171_v52, -inf  ;;  %4826 = vmatprep.subr.mxu0 %v5262_v2 }
 0x46f   : > { %1173 = vmax.xlane.f32.xlu1 %v1172_v54 }
 0x4f8   : > { %v1174_v55 = vpop.xlane.xlu1 %1173 }
 0x4f9   : > { %v1175_v56 = vsub.f32 %v1171_v52, %v1174_v55  ;;  %v5737_v52 = vld [vmem:[%s6223_s4 + $0x40] sm:$0xff] }
 0x4fa   : > { %4827 = vmatpush3.msra.mxu0 %v5737_v52 }
 0x4fb   : > { %v1176_v57 = vmul.f32 1.442695, %v1175_v56  ;;  %4829 = vmatmul.mubr.msk.f32.vlgmr.msra.gmra.mxu0 %vm506_vm0, %v5450_v9  ;;  %4841 = vmatprep.subr.mxu0 %v5262_v2 }
 0x4fc   : > { %4843 = vmatprep.mubr.msk.f32.mxu0 %vm5263_vm1, %v5262_v2 }
 0x4fd   : > { %5164 = vpow2.f32 %v1176_v57 }
 0x50a   : > { %v5165_v58 = vpop.eup %5164 }
 0x50b   : > { %v1178_v59 = vsel %vm723_vm2, %v5165_v58, 0.0 }
 0x50c   : > { %1179 = vadd.xlane.f32.xlu1 %v1178_v59 }
 0x595   : > { %v1180_v62 = vpop.xlane.xlu1 %1179 }
 0x596   : > { %5166 = vrcp.f32 %v1180_v62 }
 0x5a3   : > { %v5167_v63 = vpop.eup %5166 }
 0x5a4   : > { %v1182_v11 = vmul.f32 %v5167_v63, %v5165_v58 }
 0x5a6   : > { %4786 = vmatmul.mubr.msk.f32.vlgmr.msra.gmra.mxu1 %vm723_vm2, %v1182_v11  ;;  %v5753_v11 = vld [vmem:[%s6224_s5 + $0x10] sm:$0xff] }
 0x5a7   : > { %4789 = vmatpush3.msra.mxu1 %v5623_v12  ;;  %4790 = vmatprep.mubr.msk.f32.mxu1 %vm5263_vm1, %v5262_v2 }
 0x5a8   : > { %4793 = vmatprep.subr.mxu1 %v5262_v2  ;;  %4842 = vmatpush3.msra.mxu0 %v5753_v11 }
 0x5a9   : > { %4857 = vmatprep.subr.mxu0 %v5262_v2 }
 0x5bb   : > { %v1608_v62 = vpop.f32.mrf.mxu0 }
 0x5bd   : > { %v4830_v63 = vpop.f32.mrf.mxu0 }
 0x5be   : > { %v5838_v63 = vld [vmem:[%s6223_s4 + $0x78] sm:$0xff] }
 0x666   : > { %v1252_v22 = vpop.f32.mrf.mxu1 }
 0x667   : > { %4791 = vmatmul.mubr.msk.f32.vlgmr.msra.gmra.mxu1 %vm723_vm2, %v1252_v22 }
 0x668   : > { %v4787_v23 = vpop.f32.mrf.mxu1  ;;  %4794 = vmatpush3.msra.mxu1 %v5665_v21  ;;  %4795 = vmatprep.mubr.msk.f32.mxu1 %vm5263_vm1, %v5262_v2 }
 0x669   : > { %4809 = vmatprep.subr.mxu1 %v5262_v2 }
 0x66b   : > { %4796 = vmatmul.mubr.msk.f32.vlgmr.msra.gmra.mxu1 %vm723_vm2, %v5578_v43 }
 0x66c   : > { %4810 = vmatpush3.msra.mxu1 %v5675_v24  ;;  %4817 = vmatprep.mubr.msk.f32.mxu1 %vm5263_vm1, %v5262_v2 }
 0x66d   : > { %4811 = vmatprep.subr.mxu1 %v5262_v2 }
 0x66e   : > { %4812 = vmatpush3.msra.mxu1 %v5682_v25 }
 0x66f   : > { %4813 = vmatprep.subr.mxu1 %v5262_v2 }
 0x670   : > { %4814 = vmatpush3.msra.mxu1 %v5691_v26 }
 0x671   : > { %4815 = vmatprep.subr.mxu1 %v5262_v2 }
 0x672   : > { %4816 = vmatpush3.msra.mxu1 %v5698_v27 }
 0x673   : > { %4818 = vmatmul.mubr.msk.f32.vlgmr.msra.gmra.mxu1 %vm506_vm0, %v5450_v9  ;;  %4831 = vmatprep.subr.mxu1 %v5262_v2 }
 0x674   : > { %4833 = vmatprep.mubr.msk.f32.mxu1 %vm5263_vm1, %v5262_v2 }
 0x727   : > { %v1325_v34 = vpop.f32.mrf.mxu1 }
 0x729   : > { %v4792_v35 = vpop.f32.mrf.mxu1 }
 0x72a   : > { %v5777_v35 = vld [vmem:[%s6221_s2 + $0x68] sm:$0xff] }
 0x72b   : > { %v1398_v36 = vpop.f32.mrf.mxu1 }
 0x72c   : > { %v5708_v41 = vadd.f32 %v1398_v36, %v1325_v34  ;;  %v5770_v34 = vld [vmem:[%s6221_s2 + $0x70] sm:$0xff]  ;;  %v5784_v36 = vld [vmem:[%s6221_s2 + $0x60] sm:$0xff] }
 0x72d   : > { %v4797_v42 = vpop.f32.mrf.mxu1 }
 0x72e   : > { %v5795_v42 = vld [vmem:[%s6222_s3 + $0x78] sm:$0xff] }
 0x733   : > { %v1538_v43 = vpop.f32.mrf.mxu1 }
 0x734   : > { %4832 = vmatpush3.xpose.msk.msra.mxu1 %vm723_vm2, %v1538_v43 }
 0x735   : > { %v4819_v44 = vpop.f32.mrf.mxu1  ;;  %4836 = vmatprep.subr.mxu1 %v5262_v2 }
 0x736   : > { %v5801_v44 = vld [vmem:[%s6222_s3 + $0x70] sm:$0xff] }
 0x737   : > { %4834 = vmatmul.mubr.msk.f32.vlgmr.msra.gmra.mxu1 %vm723_vm2, %v1468_v28 }
 0x738   : > { %4838 = vmatprep.mubr.msk.f32.mxu1 %vm5263_vm1, %v5262_v2  ;;  %4837 = vmatpush3.msra.mxu1 %v1608_v62 }
 0x739   : > { %4846 = vmatprep.subr.mxu1 %v5262_v2 }
 0x7f7   : > { %v1684_v53 = vpop.f32.mrf.mxu1 }
 0x7f8   : > { %v1688_v54 = vmul.f32 0.35355338, %v1684_v53 }
 0x7f9   : > { %v4835_v55 = vpop.f32.mrf.mxu1 }
 0x7fa   : > { %v1689_v56 = vsel %vm723_vm2, %v1688_v54, -inf  ;;  %v5817_v55 = vld [vmem:[%s6222_s3 + $0x60] sm:$0xff] }
 0x7fb   : > { %1690 = vmax.xlane.f32.xlu0 %v1689_v56  ;;  %6243 = vst [vmem:[#allocation8_spill] sm:$0xff] %v5817_v55 }
 0x884   : > { %v1691_v57 = vpop.xlane.xlu0 %1690 }
 0x885   : > { %v1692_v58 = vsub.f32 %v1688_v54, %v1691_v57  ;;  %v5810_v54 = vld [vmem:[%s6222_s3 + $0x68] sm:$0xff] }
 0x886   : > { %6242 = vst [vmem:[#allocation7_spill] sm:$0xff] %v5810_v54 }
 0x887   : > { %v1693_v59 = vmul.f32 1.442695, %v1692_v58 }
 0x889   : > { %5168 = vpow2.f32 %v1693_v59 }
 0x896   : > { %v5169_v60 = vpop.eup %5168 }
 0x897   : > { %v1695_v61 = vsel %vm723_vm2, %v5169_v60, 0.0 }
 0x898   : > { %1696 = vadd.xlane.f32.xlu1 %v1695_v61 }
 0x921   : > { %v1697_v22 = vpop.xlane.xlu1 %1696 }
 0x922   : > { %5170 = vrcp.f32 %v1697_v22  ;;  %v5850_v22 = vld [vmem:[%s6223_s4 + $0x68] sm:$0xff] }
 0x92f   : > { %v5171_v23 = vpop.eup %5170 }
 0x930   : > { %v1699_v28 = vmul.f32 %v5171_v23, %v5169_v60  ;;  %v5857_v23 = vld [vmem:[%s6223_s4 + $0x60] sm:$0xff] }
 0x932   : > { %4839 = vmatmul.mubr.msk.f32.vlgmr.msra.gmra.mxu1 %vm723_vm2, %v1699_v28 }
 0x933   : > { %4854 = vmatprep.mubr.msk.f32.mxu1 %vm5263_vm1, %v5262_v2  ;;  %4847 = vmatpush3.msra.mxu1 %v5763_v29 }
 0x934   : > { %4848 = vmatprep.subr.mxu1 %v5262_v2 }
 0x935   : > { %4849 = vmatpush3.msra.mxu1 %v5770_v34 }
 0x936   : > { %4850 = vmatprep.subr.mxu1 %v5262_v2 }
 0x937   : > { %4851 = vmatpush3.msra.mxu1 %v5777_v35 }
 0x938   : > { %4852 = vmatprep.subr.mxu1 %v5262_v2 }
 0x939   : > { %4853 = vmatpush3.msra.mxu1 %v5784_v36 }
 0x93a   : > { %4855 = vmatmul.mubr.msk.f32.vlgmr.msra.gmra.mxu1 %vm506_vm0, %v5453_v10  ;;  %4868 = vmatprep.subr.mxu1 %v5262_v2 }
 0x93b   : > { %4876 = vmatprep.mubr.msk.f32.mxu1 %vm5263_vm1, %v5262_v2  ;;  %4869 = vmatpush3.msra.mxu1 %v5838_v63 }
 0x93c   : > { %4870 = vmatprep.subr.mxu1 %v5262_v2 }
 0x9f2   : > { %v1769_v43 = vpop.f32.mrf.mxu1 }
 0x9f3   : > { %4844 = vmatmul.mubr.msk.f32.vlgmr.msra.gmra.mxu0 %vm723_vm2, %v1769_v43 }
 0x9f4   : > { %4858 = vmatpush3.msra.mxu0 %v5795_v42  ;;  %v4840_v53 = vpop.f32.mrf.mxu1  ;;  %4865 = vmatprep.mubr.msk.f32.mxu0 %vm5263_vm1, %v5262_v2 }
 0x9f5   : > { %4859 = vmatprep.subr.mxu0 %v5262_v2 }
 0x9f6   : > { %4860 = vmatpush3.msra.mxu0 %v5801_v44 }
 0x9f7   : > { %4861 = vmatprep.subr.mxu0 %v5262_v2 }
 0x9f8   : > { %4862 = vmatpush3.msra.mxu0 %v5810_v54 }
 0x9f9   : > { %4863 = vmatprep.subr.mxu0 %v5262_v2 }
 0x9fa   : > { %4864 = vmatpush3.msra.mxu0 %v5817_v55  ;;  %v1913_v56 = vpop.f32.mrf.mxu1 }
 0x9fb   : > { %4866 = vmatmul.mubr.msk.f32.vlgmr.msra.gmra.mxu0 %vm506_vm0, %v5450_v9  ;;  %4879 = vmatprep.subr.mxu0 %v5262_v2 }
 0x9fc   : > { %4881 = vmatprep.mubr.msk.f32.mxu0 %vm5263_vm1, %v5262_v2  ;;  %v4856_v57 = vpop.f32.mrf.mxu1 }
 0xab3   : > { %v1842_v58 = vpop.f32.mrf.mxu0 }
 0xab4   : > { %v5828_v59 = vadd.f32 %v1842_v58, %v5708_v41  ;;  %v5843_v41 = vld [vmem:[%s6223_s4 + $0x70] sm:$0xff] }
 0xab5   : > { %v4845_v60 = vpop.f32.mrf.mxu0  ;;  %4871 = vmatpush3.msra.mxu1 %v5843_v41 }
 0xab6   : > { %4872 = vmatprep.subr.mxu1 %v5262_v2 }
 0xab7   : > { %4873 = vmatpush3.msra.mxu1 %v5850_v22 }
 0xab8   : > { %4874 = vmatprep.subr.mxu1 %v5262_v2 }
 0xab9   : > { %4875 = vmatpush3.msra.mxu1 %v5857_v23 }
 0xaba   : > { %4877 = vmatmul.mubr.msk.f32.vlgmr.msra.gmra.mxu1 %vm506_vm0, %v5450_v9  ;;  %4889 = vmatprep.subr.mxu1 %v5262_v2 }
 0xabb   : > { %v1983_v61 = vpop.f32.mrf.mxu0  ;;  %4891 = vmatprep.mubr.msk.f32.mxu1 %vm5263_vm1, %v5262_v2 }
 0xabc   : > { %4880 = vmatpush3.xpose.msk.msra.mxu0 %vm723_vm2, %v1983_v61 }
 0xabd   : > { %v4867_v62 = vpop.f32.mrf.mxu0  ;;  %4884 = vmatprep.subr.mxu0 %v5262_v2 }
 0xabf   : > { %4882 = vmatmul.mubr.msk.f32.vlgmr.msra.gmra.mxu0 %vm723_vm2, %v1913_v56 }
 0xac0   : > { %4886 = vmatprep.mubr.msk.f32.mxu0 %vm5263_vm1, %v5262_v2 }
 0xb7a   : > { %v2053_v55 = vpop.f32.mrf.mxu1 }
 0xb7b   : > { %4885 = vmatpush3.msra.mxu0 %v2053_v55 }
 0xb7c   : > { %v4878_v54 = vpop.f32.mrf.mxu1  ;;  %4894 = vmatprep.subr.mxu0 %v5262_v2 }
 0xb7f   : > { %v2129_v28 = vpop.f32.mrf.mxu0 }
 0xb80   : > { %v2133_v43 = vmul.f32 0.35355338, %v2129_v28  ;;  %v5873_v28 = vld [vmem:[%s6224_s5 + $0x18] sm:$0xff] }
 0xb81   : > { %v4883_v53 = vpop.f32.mrf.mxu0  ;;  %4890 = vmatpush3.msra.mxu1 %v5873_v28 }
 0xb82   : > { %v2134_v56 = vsel %vm723_vm2, %v2133_v43, -inf  ;;  %4905 = vmatprep.subr.mxu1 %v5262_v2 }
 0xb83   : > { %2135 = vmax.xlane.f32.xlu0 %v2134_v56 }
 0xc0c   : > { %v2136_v57 = vpop.xlane.xlu0 %2135 }
 0xc0d   : > { %v2137_v58 = vsub.f32 %v2133_v43, %v2136_v57 }
 0xc0f   : > { %v2138_v60 = vmul.f32 1.442695, %v2137_v58 }
 0xc11   : > { %5172 = vpow2.f32 %v2138_v60 }
 0xc1e   : > { %v5173_v61 = vpop.eup %5172 }
 0xc1f   : > { %v2140_v62 = vsel %vm723_vm2, %v5173_v61, 0.0 }
 0xc20   : > { %2141 = vadd.xlane.f32.xlu1 %v2140_v62 }
 0xca9   : > { %v2142_v43 = vpop.xlane.xlu1 %2141 }
 0xcaa   : > { %5174 = vrcp.f32 %v2142_v43 }
 0xcb7   : > { %v5175_v53 = vpop.eup %5174 }
 0xcb8   : > { %v2144_v56 = vmul.f32 %v5175_v53, %v5173_v61 }
 0xcba   : > { %4887 = vmatmul.mubr.msk.f32.vlgmr.msra.gmra.mxu0 %vm723_vm2, %v2144_v56 }
 0xcbb   : > { %4895 = vmatpush3.msra.mxu0 %v5391_v1  ;;  %4902 = vmatprep.mubr.msk.f32.mxu0 %vm5263_vm1, %v5262_v2 }
 0xcbc   : > { %4896 = vmatprep.subr.mxu0 %v5262_v2 }
 0xcbd   : > { %4897 = vmatpush3.msra.mxu0 %v5404_v4 }
 0xcbe   : > { %4898 = vmatprep.subr.mxu0 %v5262_v2 }
 0xcbf   : > { %4899 = vmatpush3.msra.mxu0 %v5419_v6 }
 0xcc0   : > { %4900 = vmatprep.subr.mxu0 %v5262_v2 }
 0xcc1   : > { %4901 = vmatpush3.msra.mxu0 %v5445_v8 }
 0xcc2   : > { %4903 = vmatmul.mubr.msk.f32.vlgmr.msra.gmra.mxu0 %vm506_vm0, %v5450_v9  ;;  %4916 = vmatprep.subr.mxu0 %v5262_v2 }
 0xcc3   : > { %4917 = vmatpush3.msra.mxu0 %v5479_v15  ;;  %4924 = vmatprep.mubr.msk.f32.mxu0 %vm5263_vm1, %v5262_v2 }
 0xcc4   : > { %4918 = vmatprep.subr.mxu0 %v5262_v2 }
 0xcc5   : > { %4919 = vmatpush3.msra.mxu0 %v5484_v16 }
 0xcc6   : > { %4920 = vmatprep.subr.mxu0 %v5262_v2 }
 0xcc7   : > { %4921 = vmatpush3.msra.mxu0 %v5491_v17 }
 0xcc8   : > { %4922 = vmatprep.subr.mxu0 %v5262_v2 }
 0xcc9   : > { %4923 = vmatpush3.msra.mxu0 %v5498_v18 }
 0xcca   : > { %4925 = vmatmul.mubr.msk.f32.vlgmr.msra.gmra.mxu0 %vm506_vm0, %v5453_v10  ;;  %4937 = vmatprep.subr.mxu0 %v5262_v2 }
 0xccb   : > { %4938 = vmatpush3.msra.mxu0 %v5514_v30  ;;  %4945 = vmatprep.mubr.msk.f32.mxu0 %vm5263_vm1, %v5262_v2 }
 0xccc   : > { %4939 = vmatprep.subr.mxu0 %v5262_v2 }
 0xccd   : > { %4940 = vmatpush3.msra.mxu0 %v5521_v31 }
 0xcce   : > { %4941 = vmatprep.subr.mxu0 %v5262_v2 }
 0xccf   : > { %4942 = vmatpush3.msra.mxu0 %v5528_v32 }
 0xcd0   : > { %4943 = vmatprep.subr.mxu0 %v5262_v2 }
 0xcd1   : > { %4944 = vmatpush3.msra.mxu0 %v5535_v33 }
 0xcd2   : > { %4946 = vmatmul.mubr.msk.f32.vlgmr.msra.gmra.mxu0 %vm506_vm0, %v5450_v9  ;;  %4959 = vmatprep.subr.mxu0 %v5262_v2 }
 0xcd3   : > { %4960 = vmatpush3.msra.mxu0 %v5588_v47  ;;  %4967 = vmatprep.mubr.msk.f32.mxu0 %vm5263_vm1, %v5262_v2 }
 0xcd4   : > { %4961 = vmatprep.subr.mxu0 %v5262_v2 }
 0xcd5   : > { %4962 = vmatpush3.msra.mxu0 %v5593_v48 }
 0xcd6   : > { %4963 = vmatprep.subr.mxu0 %v5262_v2 }
 0xcd7   : > { %4964 = vmatpush3.msra.mxu0 %v5600_v49 }
 0xcd8   : > { %4965 = vmatprep.subr.mxu0 %v5262_v2 }
 0xcd9   : > { %4966 = vmatpush3.msra.mxu0 %v5607_v50 }
 0xcda   : > { %4968 = vmatmul.mubr.msk.f32.vlgmr.msra.gmra.mxu0 %vm506_vm0, %v5453_v10  ;;  %4980 = vmatprep.subr.mxu0 %v5262_v2 }
 0xcdb   : > { %4981 = vmatpush3.msra.mxu0 %v5623_v12  ;;  %4982 = vmatprep.mubr.msk.f32.mxu0 %vm5263_vm1, %v5262_v2 }
 0xcdc   : > { %4990 = vmatprep.subr.mxu0 %v5262_v2 }
 0xd7a   : > { %v2214_v1 = vpop.f32.mrf.mxu0 }
 0xd7b   : > { %4892 = vmatmul.mubr.msk.f32.vlgmr.msra.gmra.mxu1 %vm723_vm2, %v2214_v1 }
 0xd7c   : > { %4906 = vmatpush3.msra.mxu1 %v5386_v0  ;;  %v4888_v4 = vpop.f32.mrf.mxu0  ;;  %4913 = vmatprep.mubr.msk.f32.mxu1 %vm5263_vm1, %v5262_v2 }
 0xd7d   : > { %4907 = vmatprep.subr.mxu1 %v5262_v2 }
 0xd7e   : > { %4908 = vmatpush3.msra.mxu1 %v5399_v3 }
 0xd7f   : > { %4909 = vmatprep.subr.mxu1 %v5262_v2 }
 0xd80   : > { %4910 = vmatpush3.msra.mxu1 %v5414_v5 }
 0xd81   : > { %4911 = vmatprep.subr.mxu1 %v5262_v2 }
 0xd82   : > { %4912 = vmatpush3.msra.mxu1 %v5428_v7  ;;  %v2366_v0 = vpop.f32.mrf.mxu0 }
 0xd83   : > { %4914 = vmatmul.mubr.msk.f32.vlgmr.msra.gmra.mxu1 %vm506_vm0, %v5453_v10  ;;  %4927 = vmatprep.subr.mxu1 %v5262_v2 }
 0xd84   : > { %4929 = vmatprep.mubr.msk.f32.mxu1 %vm5263_vm1, %v5262_v2  ;;  %v4904_v6 = vpop.f32.mrf.mxu0 }
 0xd8a   : > { %v2506_v49 = vpop.f32.mrf.mxu0 }
 0xd8c   : > { %v4926_v50 = vpop.f32.mrf.mxu0 }
 0xd8d   : > { %v6095_v50 = vld [vmem:[%s6225_s6] ss:$0 sm:$0xff] }
 0xe3b   : > { %v2287_v8 = vpop.f32.mrf.mxu1 }
 0xe3c   : > { %v5946_v3 = vadd.f32 %v2287_v8, %v5828_v59 }
 0xe3d   : > { %v4893_v15 = vpop.f32.mrf.mxu1 }
 0xe43   : > { %v2436_v5 = vpop.f32.mrf.mxu1 }
 0xe44   : > { %4928 = vmatpush3.xpose.msk.msra.mxu1 %vm723_vm2, %v2436_v5 }
 0xe45   : > { %v4915_v16 = vpop.f32.mrf.mxu1  ;;  %4932 = vmatprep.subr.mxu1 %v5262_v2 }
 0xe47   : > { %4930 = vmatmul.mubr.msk.f32.vlgmr.msra.gmra.mxu1 %vm723_vm2, %v2366_v0 }
 0xe48   : > { %4934 = vmatprep.mubr.msk.f32.mxu1 %vm5263_vm1, %v5262_v2  ;;  %4933 = vmatpush3.msra.mxu1 %v2506_v49 }
 0xe49   : > { %4948 = vmatprep.subr.mxu1 %v5262_v2 }
 0xf07   : > { %v2582_v7 = vpop.f32.mrf.mxu1 }
 0xf08   : > { %v2586_v17 = vmul.f32 0.35355338, %v2582_v7 }
 0xf09   : > { %v4931_v18 = vpop.f32.mrf.mxu1 }
 0xf0a   : > { %v2587_v30 = vsel %vm723_vm2, %v2586_v17, -inf }
 0xf0b   : > { %2588 = vmax.xlane.f32.xlu0 %v2587_v30 }
 0xf94   : > { %v2589_v31 = vpop.xlane.xlu0 %2588 }
 0xf95   : > { %v2590_v32 = vsub.f32 %v2586_v17, %v2589_v31 }
 0xf97   : > { %v2591_v33 = vmul.f32 1.442695, %v2590_v32 }
 0xf99   : > { %5176 = vpow2.f32 %v2591_v33 }
 0xfa6   : > { %v5177_v47 = vpop.eup %5176 }
 0xfa7   : > { %v2593_v48 = vsel %vm723_vm2, %v5177_v47, 0.0 }
 0xfa8   : > { %2594 = vadd.xlane.f32.xlu1 %v2593_v48 }
0x1031   : > { %v2595_v12 = vpop.xlane.xlu1 %2594 }
0x1032   : > { %5178 = vrcp.f32 %v2595_v12  ;;  %v2299_v12 = vadd.f32 %v6095_v50, %v5946_v3 }
0x103f   : > { %v5179_v54 = vpop.eup %5178 }
0x1040   : > { %v2597_v55 = vmul.f32 %v5179_v54, %v5177_v47  ;;  %v5198_v47 = vld [vmem:[%s5433_s23] sm:$0xff]  ;;  %v4079_v54 = vsel %vm506_vm0, %v2299_v12, 0.0  ;;  %s4371_s23 = scalar_lea.sflag [#allocation3], %s442_s17 }
0x1042   : > { %4935 = vmatmul.mubr.msk.f32.vlgmr.msra.gmra.mxu1 %vm723_vm2, %v2597_v55  ;;  %v4080_v55 = vrot.slane %v4079_v54, 4 }
0x1043   : > { %4949 = vmatpush3.msra.mxu1 %v5546_v37  ;;  %4956 = vmatprep.mubr.msk.f32.mxu1 %vm5263_vm1, %v5262_v2  ;;  %v2737_v37 = vpop.f32.mrf.mxu0 }
0x1044   : > { %4950 = vmatprep.subr.mxu1 %v5262_v2 }
0x1045   : > { %4951 = vmatpush3.msra.mxu1 %v5552_v38  ;;  %v4947_v59 = vpop.f32.mrf.mxu0 }
0x1046   : > { %4952 = vmatprep.subr.mxu1 %v5262_v2 }
0x1047   : > { %4953 = vmatpush3.msra.mxu1 %v5561_v39  ;;  %v2877_v0 = vpop.f32.mrf.mxu0 }
0x1048   : > { %4954 = vmatprep.subr.mxu1 %v5262_v2 }
0x1049   : > { %4955 = vmatpush3.msra.mxu1 %v5568_v40  ;;  %v4969_v6 = vpop.f32.mrf.mxu0 }
0x104a   : > { %4957 = vmatmul.mubr.msk.f32.vlgmr.msra.gmra.mxu1 %vm506_vm0, %v5453_v10  ;;  %4970 = vmatprep.subr.mxu1 %v5262_v2 }
0x104b   : > { %4972 = vmatprep.mubr.msk.f32.mxu1 %vm5263_vm1, %v5262_v2 }
0x1102   : > { %v2667_v57 = vpop.f32.mrf.mxu1 }
0x1104   : > { %v4936_v38 = vpop.f32.mrf.mxu1 }
0x110a   : > { %v2807_v58 = vpop.f32.mrf.mxu1 }
0x110b   : > { %4971 = vmatpush3.xpose.msk.msra.mxu1 %vm723_vm2, %v2807_v58 }
0x110c   : > { %v4958_v39 = vpop.f32.mrf.mxu1  ;;  %4975 = vmatprep.subr.mxu1 %v5262_v2 }
0x110e   : > { %4973 = vmatmul.mubr.msk.f32.vlgmr.msra.gmra.mxu1 %vm723_vm2, %v2737_v37  ;;  %v4081_v37 = vadd.f32 %v4080_v55, %v4079_v54  ;;  %v4136_v54 = vld [vmem:[%s6228_s9 + $0x38] sm:$0xff]  ;;  %v4135_v55 = vld [vmem:[%s6228_s9 + $0x30] sm:$0xff] }
0x110f   : > { %4977 = vmatprep.mubr.msk.f32.mxu1 %vm5263_vm1, %v5262_v2  ;;  %4976 = vmatpush3.msra.mxu1 %v2877_v0 }
0x1110   : > { %4985 = vmatprep.subr.mxu1 %v5262_v2  ;;  %v4082_v59 = vrot.slane %v4081_v37, 2 }
0x11ce   : > { %v2953_v40 = vpop.f32.mrf.mxu1 }
0x11cf   : > { %v2957_v60 = vmul.f32 0.35355338, %v2953_v40 }
0x11d0   : > { %v4974_v61 = vpop.f32.mrf.mxu1 }
0x11d1   : > { %v2958_v62 = vsel %vm723_vm2, %v2957_v60, -inf }
0x11d2   : > { %2959 = vmax.xlane.f32.xlu0 %v2958_v62 }
0x125b   : > { %v2960_v43 = vpop.xlane.xlu0 %2959 }
0x125c   : > { %v2961_v53 = vsub.f32 %v2957_v60, %v2960_v43 }
0x125e   : > { %v2962_v56 = vmul.f32 1.442695, %v2961_v53 }
0x1260   : > { %5180 = vpow2.f32 %v2962_v56 }
0x126d   : > { %v5181_v1 = vpop.eup %5180 }
0x126e   : > { %v2964_v4 = vsel %vm723_vm2, %v5181_v1, 0.0 }
0x126f   : > { %2965 = vadd.xlane.f32.xlu1 %v2964_v4 }
0x12f8   : > { %v2966_v8 = vpop.xlane.xlu1 %2965 }
0x12f9   : > { %5182 = vrcp.f32 %v2966_v8 }
0x1306   : > { %v5183_v15 = vpop.eup %5182 }
0x1307   : > { %v2968_v5 = vmul.f32 %v5183_v15, %v5181_v1 }
0x1309   : > { %4978 = vmatmul.mubr.msk.f32.vlgmr.msra.gmra.mxu1 %vm723_vm2, %v2968_v5 }
0x130a   : > { %4986 = vmatpush3.msra.mxu1 %v5665_v21  ;;  %4987 = vmatprep.mubr.msk.f32.mxu1 %vm5263_vm1, %v5262_v2 }
0x130b   : > { %5001 = vmatprep.subr.mxu1 %v5262_v2 }
0x130d   : > { %4988 = vmatmul.mubr.msk.f32.vlgmr.msra.gmra.mxu1 %vm723_vm2, %v2667_v57  ;;  %v4083_v57 = vadd.f32 %v4082_v59, %v4081_v37  ;;  %v4134_v37 = vld [vmem:[%s6228_s9 + $0x28] sm:$0xff]  ;;  %v4133_v59 = vld [vmem:[%s6228_s9 + $0x20] sm:$0xff] }
0x130e   : > { %5002 = vmatpush3.msra.mxu1 %v5675_v24  ;;  %5009 = vmatprep.mubr.msk.f32.mxu1 %vm5263_vm1, %v5262_v2 }
0x130f   : > { %5003 = vmatprep.subr.mxu1 %v5262_v2  ;;  %v4084_v38 = vrot.slane %v4083_v57, 1 }
0x1310   : > { %5004 = vmatpush3.msra.mxu1 %v5682_v25 }
0x1311   : > { %5005 = vmatprep.subr.mxu1 %v5262_v2  ;;  %v4085_v58 = vadd.f32 %v4084_v38, %v4083_v57 }
0x1312   : > { %5006 = vmatpush3.msra.mxu1 %v5691_v26 }
0x1313   : > { %5007 = vmatprep.subr.mxu1 %v5262_v2  ;;  %v4087_v62 = vmul.f32 0.125, %v4085_v58 }
0x1314   : > { %5008 = vmatpush3.msra.mxu1 %v5698_v27 }
0x1315   : > { %5010 = vmatmul.mubr.msk.f32.vlgmr.msra.gmra.mxu1 %vm506_vm0, %v5453_v10  ;;  %5023 = vmatprep.subr.mxu1 %v5262_v2  ;;  %v4090_v43 = vsel %vm506_vm0, %v4087_v62, 0.0 }
0x1316   : > { %5025 = vmatprep.mubr.msk.f32.mxu1 %vm5263_vm1, %v5262_v2 }
0x13c9   : > { %v3038_v21 = vpop.f32.mrf.mxu1 }
0x13ca   : > { %4983 = vmatmul.mubr.msk.f32.vlgmr.msra.gmra.mxu0 %vm723_vm2, %v3038_v21 }
0x13cb   : > { %4991 = vmatpush3.msra.mxu0 %v5633_v13  ;;  %v4979_v24 = vpop.f32.mrf.mxu1  ;;  %4998 = vmatprep.mubr.msk.f32.mxu0 %vm5263_vm1, %v5262_v2 }
0x13cc   : > { %4992 = vmatprep.subr.mxu0 %v5262_v2 }
0x13cd   : > { %4993 = vmatpush3.msra.mxu0 %v5640_v14  ;;  %v6005_v25 = vpop.f32.mrf.mxu1 }
0x13ce   : > { %4994 = vmatprep.subr.mxu0 %v5262_v2 }
0x13cf   : > { %4995 = vmatpush3.msra.mxu0 %v5647_v19  ;;  %v4989_v26 = vpop.f32.mrf.mxu1 }
0x13d0   : > { %4996 = vmatprep.subr.mxu0 %v5262_v2 }
0x13d1   : > { %4997 = vmatpush3.msra.mxu0 %v5654_v20 }
0x13d2   : > { %4999 = vmatmul.mubr.msk.f32.vlgmr.msra.gmra.mxu0 %vm506_vm0, %v5450_v9  ;;  %5012 = vmatprep.subr.mxu0 %v5262_v2 }
0x13d3   : > { %5013 = vmatpush3.msra.mxu0 %v5718_v45  ;;  %5020 = vmatprep.mubr.msk.f32.mxu0 %vm5263_vm1, %v5262_v2 }
0x13d4   : > { %5014 = vmatprep.subr.mxu0 %v5262_v2 }
0x13d5   : > { %5015 = vmatpush3.msra.mxu0 %v5723_v46  ;;  %v3324_v9 = vpop.f32.mrf.mxu1 }
0x13d6   : > { %5016 = vmatprep.subr.mxu0 %v5262_v2  ;;  %5024 = vmatpush3.xpose.msk.msra.mxu1 %vm723_vm2, %v3324_v9 }
0x13d7   : > { %5017 = vmatpush3.msra.mxu0 %v5730_v51  ;;  %v5011_v13 = vpop.f32.mrf.mxu1  ;;  %5028 = vmatprep.subr.mxu1 %v5262_v2 }
0x13d8   : > { %5018 = vmatprep.subr.mxu0 %v5262_v2 }
0x13d9   : > { %5019 = vmatpush3.msra.mxu0 %v5737_v52 }
0x13da   : > { %5021 = vmatmul.mubr.msk.f32.vlgmr.msra.gmra.mxu0 %vm506_vm0, %v5453_v10  ;;  %5033 = vmatprep.subr.mxu0 %v5262_v2 }
0x13db   : > { %5034 = vmatpush3.msra.mxu0 %v5753_v11  ;;  %5035 = vmatprep.mubr.msk.f32.mxu0 %vm5263_vm1, %v5262_v2 }
0x13dc   : > { %5049 = vmatprep.subr.mxu0 %v5262_v2 }
0x148a   : > { %v6032_v14 = vpop.f32.mrf.mxu0 }
0x148c   : > { %v4984_v19 = vpop.f32.mrf.mxu0 }
0x1492   : > { %v3254_v20 = vpop.f32.mrf.mxu0 }
0x1493   : > { %5026 = vmatmul.mubr.msk.f32.vlgmr.msra.gmra.mxu1 %vm723_vm2, %v3254_v20 }
0x1494   : > { %v5000_v10 = vpop.f32.mrf.mxu0  ;;  %5030 = vmatprep.mubr.msk.f32.mxu1 %vm5263_vm1, %v5262_v2 }
0x149a   : > { %v3394_v18 = vpop.f32.mrf.mxu0 }
0x149b   : > { %5029 = vmatpush3.msra.mxu1 %v3394_v18 }
0x149c   : > { %v5022_v30 = vpop.f32.mrf.mxu0  ;;  %5038 = vmatprep.subr.mxu1 %v5262_v2 }
0x1553   : > { %v3470_v27 = vpop.f32.mrf.mxu1 }
0x1554   : > { %v3474_v45 = vmul.f32 0.35355338, %v3470_v27  ;;  %v4132_v27 = vld [vmem:[%s6228_s9 + $0x18] sm:$0xff] }
0x1555   : > { %v5027_v46 = vpop.f32.mrf.mxu1 }
0x1556   : > { %v3475_v51 = vsel %vm723_vm2, %v3474_v45, -inf  ;;  %v4088_v46 = vld [vmem:[%s6226_s7] sm:$0x1] }
0x1557   : > { %3476 = vmax.xlane.f32.xlu0 %v3475_v51  ;;  %v4131_v51 = vld [vmem:[%s6228_s9 + $0x10] sm:$0xff] }
0x15e0   : > { %v3477_v52 = vpop.xlane.xlu0 %3476 }
0x15e1   : > { %v3478_v11 = vsub.f32 %v3474_v45, %v3477_v52 }
0x15e3   : > { %v3479_v16 = vmul.f32 1.442695, %v3478_v11  ;;  %v4130_v11 = vld [vmem:[%s6228_s9 + $0x8] sm:$0xff] }
0x15e5   : > { %5184 = vpow2.f32 %v3479_v16 }
0x15f2   : > { %v5185_v7 = vpop.eup %5184 }
0x15f3   : > { %v3481_v17 = vsel %vm723_vm2, %v5185_v7, 0.0 }
0x15f4   : > { %3482 = vadd.xlane.f32.xlu1 %v3481_v17  ;;  %v4129_v17 = vld [vmem:[%s6228_s9] sm:$0xff] }
0x167d   : > { %v3483_v31 = vpop.xlane.xlu1 %3482 }
0x167e   : > { %5186 = vrcp.f32 %v3483_v31 }
0x168b   : > { %v5187_v32 = vpop.eup %5186 }
0x168c   : > { %v3485_v33 = vmul.f32 %v5187_v32, %v5185_v7  ;;  %v4089_v7 = vld [vmem:[%s6227_s8] sm:$0x1] }
0x168e   : > { %5031 = vmatmul.mubr.msk.f32.vlgmr.msra.gmra.mxu1 %vm723_vm2, %v3485_v33 }
0x168f   : > { %5039 = vmatpush3.msra.mxu1 %v5763_v29  ;;  %5046 = vmatprep.mubr.msk.f32.mxu1 %vm5263_vm1, %v5262_v2  ;;  %v5199_v29 = vld [vmem:[%s5438_s27] sm:$0xff]  ;;  %s6184_s27 = scalar_lea.hbm %s6232_s13, %s4516_s21 }
0x1690   : > { %5040 = vmatprep.subr.mxu1 %v5262_v2 }
0x1691   : > { %5041 = vmatpush3.msra.mxu1 %v5770_v34 }
0x1692   : > { %5042 = vmatprep.subr.mxu1 %v5262_v2 }
0x1693   : > { %5043 = vmatpush3.msra.mxu1 %v5777_v35 }
0x1694   : > { %5044 = vmatprep.subr.mxu1 %v5262_v2 }
0x1695   : > { %5045 = vmatpush3.msra.mxu1 %v5784_v36  ;;  %v6244_v36 = vld [vmem:[#allocation7_spill] sm:$0xff] }
0x1696   : > { %5047 = vmatmul.mubr.msk.f32.vlgmr.msra.gmra.mxu1 %vm506_vm0, %v5198_v47  ;;  %5060 = vmatprep.subr.mxu1 %v5262_v2 }
0x1697   : > { %5061 = vmatpush3.msra.mxu1 %v5838_v63  ;;  %5068 = vmatprep.mubr.msk.f32.mxu1 %vm5263_vm1, %v5262_v2  ;;  %v6245_v63 = vld [vmem:[#allocation8_spill] sm:$0xff] }
0x1698   : > { %5062 = vmatprep.subr.mxu1 %v5262_v2 }
0x1699   : > { %5063 = vmatpush3.msra.mxu1 %v5843_v41 }
0x169a   : > { %5064 = vmatprep.subr.mxu1 %v5262_v2 }
0x169b   : > { %5065 = vmatpush3.msra.mxu1 %v5850_v22 }
0x169c   : > { %5066 = vmatprep.subr.mxu1 %v5262_v2 }
0x169d   : > { %5067 = vmatpush3.msra.mxu1 %v5857_v23 }
0x169e   : > { %5069 = vmatmul.mubr.msk.f32.vlgmr.msra.gmra.mxu1 %vm506_vm0, %v5199_v29  ;;  %5081 = vmatprep.subr.mxu1 %v5262_v2 }
0x169f   : > { %5082 = vmatpush3.msra.mxu1 %v5873_v28  ;;  %5083 = vmatprep.mubr.msk.f32.mxu1 %vm5263_vm1, %v5262_v2 }
0x16a0   : > { %5097 = vmatprep.subr.mxu1 %v5262_v2 }
0x174e   : > { %v3555_v34 = vpop.f32.mrf.mxu1 }
0x174f   : > { %5036 = vmatmul.mubr.msk.f32.vlgmr.msra.gmra.mxu0 %vm723_vm2, %v3555_v34 }
0x1750   : > { %5050 = vmatpush3.msra.mxu0 %v5795_v42  ;;  %v5032_v35 = vpop.f32.mrf.mxu1  ;;  %5057 = vmatprep.mubr.msk.f32.mxu0 %vm5263_vm1, %v5262_v2 }
0x1751   : > { %5051 = vmatprep.subr.mxu0 %v5262_v2 }
0x1752   : > { %5052 = vmatpush3.msra.mxu0 %v5801_v44  ;;  %v3185_v44 = vadd.f32 %v6005_v25, %v6032_v14 }
0x1753   : > { %5053 = vmatprep.subr.mxu0 %v5262_v2 }
0x1754   : > { %5054 = vmatpush3.msra.mxu0 %v6244_v36 }
0x1755   : > { %5055 = vmatprep.subr.mxu0 %v5262_v2 }
0x1756   : > { %5056 = vmatpush3.msra.mxu0 %v6245_v63  ;;  %v3699_v42 = vpop.f32.mrf.mxu1 }
0x1757   : > { %5058 = vmatmul.mubr.msk.f32.vlgmr.msra.gmra.mxu0 %vm506_vm0, %v5199_v29  ;;  %5071 = vmatprep.subr.mxu0 %v5262_v2 }
0x1758   : > { %5073 = vmatprep.mubr.msk.f32.mxu0 %vm5263_vm1, %v5262_v2  ;;  %v5048_v41 = vpop.f32.mrf.mxu1 }
0x175e   : > { %v3839_v21 = vpop.f32.mrf.mxu1 }
0x1760   : > { %v5070_v24 = vpop.f32.mrf.mxu1 }
0x180f   : > { %v3628_v22 = vpop.f32.mrf.mxu0 }
0x1810   : > { %v6085_v23 = vadd.f32 %v3628_v22, %v3185_v44 }
0x1811   : > { %v5037_v28 = vpop.f32.mrf.mxu0 }
0x1817   : > { %v3769_v48 = vpop.f32.mrf.mxu0 }
0x1818   : > { %5072 = vmatpush3.xpose.msk.msra.mxu0 %vm723_vm2, %v3769_v48 }
0x1819   : > { %v5059_v49 = vpop.f32.mrf.mxu0  ;;  %5076 = vmatprep.subr.mxu0 %v5262_v2 }
0x181b   : > { %5074 = vmatmul.mubr.msk.f32.vlgmr.msra.gmra.mxu0 %vm723_vm2, %v3699_v42 }
0x181c   : > { %5078 = vmatprep.mubr.msk.f32.mxu0 %vm5263_vm1, %v5262_v2  ;;  %5077 = vmatpush3.msra.mxu0 %v3839_v21 }
0x181d   : > { %5086 = vmatprep.subr.mxu0 %v5262_v2 }
0x18db   : > { %v3915_v39 = vpop.f32.mrf.mxu0 }
0x18dc   : > { %v3919_v40 = vmul.f32 0.35355338, %v3915_v39 }
0x18dd   : > { %v5075_v60 = vpop.f32.mrf.mxu0 }
0x18de   : > { %v3920_v61 = vsel %vm723_vm2, %v3919_v40, -inf }
0x18df   : > { %3921 = vmax.xlane.f32.xlu0 %v3920_v61 }
0x18e3   : > { %4091 = vadd.xlane.f32.xlu0 %v4090_v43  ;;  %v4292_v43 = vld [vmem:[%s6230_s11 + $0x10] sm:$0xff] }
0x1968   : > { %v3922_v53 = vpop.xlane.xlu0 %3921 }
0x1969   : > { %v3923_v3 = vsub.f32 %v3919_v40, %v3922_v53  ;;  %v4291_v53 = vld [vmem:[%s6230_s11 + $0x8] sm:$0xff] }
0x196b   : > { %v3924_v56 = vmul.f32 1.442695, %v3923_v3  ;;  %v4290_v3 = vld [vmem:[%s6230_s11] sm:$0xff] }
0x196c   : > { %v4092_v1 = vpop.xlane.xlu0 %4091 }
0x196d   : > { %5188 = vpow2.f32 %v3924_v56  ;;  %v4094_v4 = vmul.f32 0.03125, %v4092_v1  ;;  %v4283_v1 = vld [vmem:[%s6229_s10] sm:$0x1] }
0x196f   : > { %v4095_v0 = vsub.f32 %v4087_v62, %v4094_v4  ;;  %v4293_v62 = vld [vmem:[%s6230_s11 + $0x18] sm:$0xff] }
0x1971   : > { %v4096_v6 = vmul.f32 %v4095_v0, %v4095_v0 }
0x1973   : > { %v4097_v8 = vsel %vm506_vm0, %v4096_v6, 0.0 }
0x1974   : > { %4098 = vadd.xlane.f32.xlu0 %v4097_v8 }
0x197a   : > { %v5189_v15 = vpop.eup %5188 }
0x197b   : > { %v3926_v5 = vsel %vm723_vm2, %v5189_v15, 0.0 }
0x197c   : > { %3927 = vadd.xlane.f32.xlu1 %v3926_v5 }
0x19fd   : > { %v4099_v13 = vpop.xlane.xlu0 %4098 }
0x19fe   : > { %v4100_v14 = vmul.f32 0.03125, %v4099_v13 }
0x1a00   : > { %v4101_v19 = vadd.f32 1e-06, %v4100_v14 }
0x1a05   : > { %v3928_v25 = vpop.xlane.xlu1 %3927 }
0x1a06   : > { %5190 = vrcp.f32 %v3928_v25 }
0x1a07   : > { %5192 = vrsqrt.f32 %v4101_v19 }
0x1a13   : > { %v5191_v26 = vpop.eup %5190 }
0x1a14   : > { %v3930_v9 = vmul.f32 %v5191_v26, %v5189_v15  ;;  %v5193_v20 = vpop.eup %5192 }
0x1a15   : > { %v4103_v10 = vmul.f32 %v5193_v20, %v4095_v0 }
0x1a16   : > { %5079 = vmatmul.mubr.msk.f32.vlgmr.msra.gmra.mxu0 %vm723_vm2, %v3930_v9 }
0x1a17   : > { %5094 = vmatprep.mubr.msk.f32.mxu0 %vm5263_vm1, %v5262_v2  ;;  %v4104_v16 = vmul.f32 %v4103_v10, %v4088_v46  ;;  %5087 = vmatpush3.msra.mxu0 %v4136_v54 }
0x1a18   : > { %5088 = vmatprep.subr.mxu0 %v5262_v2 }
0x1a19   : > { %v4105_v18 = vadd.f32 %v4104_v16, %v4089_v7  ;;  %5089 = vmatpush3.msra.mxu0 %v4135_v55 }
0x1a1a   : > { %5090 = vmatprep.subr.mxu0 %v5262_v2 }
0x1a1b   : > { %5091 = vmatpush3.msra.mxu0 %v4134_v37 }
0x1a1c   : > { %5092 = vmatprep.subr.mxu0 %v5262_v2 }
0x1a1d   : > { %5093 = vmatpush3.msra.mxu0 %v4133_v59 }
0x1a1e   : > { %5108 = vmatprep.subr.mxu0 %v5262_v2 }
0x1ad6   : > { %v4000_v45 = vpop.f32.mrf.mxu0 }
0x1ad7   : > { %5084 = vmatmul.mubr.msk.f32.vlgmr.msra.gmra.mxu1 %vm723_vm2, %v4000_v45 }
0x1ad8   : > { %5098 = vmatpush3.msra.mxu1 %v4132_v27  ;;  %v5080_v52 = vpop.f32.mrf.mxu0  ;;  %5105 = vmatprep.mubr.msk.f32.mxu1 %vm5263_vm1, %v5262_v2 }
0x1ad9   : > { %5099 = vmatprep.subr.mxu1 %v5262_v2 }
0x1ada   : > { %5100 = vmatpush3.msra.mxu1 %v4131_v51 }
0x1adb   : > { %5101 = vmatprep.subr.mxu1 %v5262_v2 }
0x1adc   : > { %5102 = vmatpush3.msra.mxu1 %v4130_v11 }
0x1add   : > { %5103 = vmatprep.subr.mxu1 %v5262_v2 }
0x1ade   : > { %5104 = vmatpush3.msra.mxu1 %v4129_v17 }
0x1adf   : > { %5106 = vmatmul.mubr.msk.f32.vlgmr.msra.gmra.mxu1 %vm506_vm0, %v4105_v18 }
0x1b97   : > { %v4073_v30 = vpop.f32.mrf.mxu1 }
0x1b98   : > { %v4077_v31 = vadd.f32 %v4073_v30, %v6085_v23 }
0x1b99   : > { %v5085_v32 = vpop.f32.mrf.mxu1 }
0x1b9a   : > { %v4078_v33 = vadd.f32 %v6095_v50, %v4077_v31 }
0x1b9c   : > { %v4106_v47 = vsel %vm506_vm0, %v4078_v33, 0.0 }
0x1b9d   : > { %v4107_v29 = vrot.slane %v4106_v47, 4 }
0x1b9f   : > { %v4108_v34 = vadd.f32 %v4107_v29, %v4106_v47  ;;  %v4279_v35 = vpop.f32.mrf.mxu1 }
0x1ba1   : > { %v5107_v36 = vpop.f32.mrf.mxu1  ;;  %v4109_v63 = vrot.slane %v4108_v34, 2 }
0x1ba3   : > { %v4110_v42 = vadd.f32 %v4109_v63, %v4108_v34 }
0x1ba5   : > { %v4111_v41 = vrot.slane %v4110_v42, 1 }
0x1ba7   : > { %v4112_v44 = vadd.f32 %v4111_v41, %v4110_v42 }
0x1ba9   : > { %v4113_v22 = vmul.f32 0.125, %v4112_v44 }
0x1bab   : > { %v4114_v28 = vsel %vm506_vm0, %v4113_v22, 0.0 }
0x1bac   : > { %4115 = vadd.xlane.f32.xlu1 %v4114_v28 }
0x1c35   : > { %v4116_v48 = vpop.xlane.xlu1 %4115 }
0x1c36   : > { %v4117_v49 = vmul.f32 0.03125, %v4116_v48 }
0x1c38   : > { %v4118_v23 = vsub.f32 %v4113_v22, %v4117_v49 }
0x1c3a   : > { %v4119_v12 = vmul.f32 %v4118_v23, %v4118_v23 }
0x1c3c   : > { %v4120_v50 = vsel %vm506_vm0, %v4119_v12, 0.0 }
0x1c3d   : > { %4121 = vadd.xlane.f32.xlu1 %v4120_v50 }
0x1cc6   : > { %v4122_v57 = vpop.xlane.xlu1 %4121 }
0x1cc7   : > { %v4123_v38 = vmul.f32 0.03125, %v4122_v57 }
0x1cc9   : > { %v4124_v58 = vadd.f32 1e-06, %v4123_v38 }
0x1ccb   : > { %5194 = vrsqrt.f32 %v4124_v58 }
0x1cd8   : > { %v5195_v39 = vpop.eup %5194 }
0x1cd9   : > { %v4126_v40 = vmul.f32 %v5195_v39, %v4118_v23 }
0x1cdb   : > { %v4127_v60 = vmul.f32 %v4126_v40, %v4088_v46 }
0x1cdd   : > { %v4128_v61 = vadd.f32 %v4127_v60, %v4089_v7 }
0x1cdf   : > { %5095 = vmatmul.mubr.msk.f32.vlgmr.msra.gmra.mxu0 %vm506_vm0, %v4128_v61 }
0x1ce0   : > { %5116 = vmatprep.mubr.msk.f32.mxu0 %vm5263_vm1, %v5262_v2  ;;  %5109 = vmatpush3.msra.mxu0 %v4293_v62 }
0x1ce1   : > { %5110 = vmatprep.subr.mxu0 %v5262_v2 }
0x1ce2   : > { %5111 = vmatpush3.msra.mxu0 %v4292_v43 }
0x1ce3   : > { %5112 = vmatprep.subr.mxu0 %v5262_v2 }
0x1ce4   : > { %5113 = vmatpush3.msra.mxu0 %v4291_v53 }
0x1ce5   : > { %5114 = vmatprep.subr.mxu0 %v5262_v2  ;;  %v4294_v2 = vld [vmem:[%s6231_s12] sm:$0x1] }
0x1ce6   : > { %5115 = vmatpush3.msra.mxu0 %v4290_v3 }
0x1d9f   : > { %v4206_v56 = vpop.f32.mrf.mxu0 }
0x1da0   : > { %v4280_v4 = vadd.f32 %v4279_v35, %v4206_v56 }
0x1da1   : > { %v5096_v0 = vpop.f32.mrf.mxu0 }
0x1da2   : > { %v4284_v6 = vadd.f32 %v4283_v1, %v4280_v4 }
0x1da4   : > { %v4286_v8 = vmul.f32 0.70710677, %v4284_v6  ;;  %v4285_v5 = vmul.f32 0.5, %v4284_v6 }
0x1da6   : > { %5196 = verf.f32 %v4286_v8 }
0x1db3   : > { %v5197_v15 = vpop.eup %5196 }
0x1db4   : > { %v4288_v21 = vadd.f32 1.0, %v5197_v15 }
0x1db6   : > { %v4289_v24 = vmul.f32 %v4288_v21, %v4285_v5 }
0x1db8   : > { %5117 = vmatmul.mubr.msk.f32.vlgmr.msra.gmra.mxu0 %vm506_vm0, %v4289_v24 }
0x1e78   : > { %v4364_v25 = vpop.f32.mrf.mxu0 }
0x1e79   : > { %v4365_v26 = vadd.f32 %v4364_v25, %v4294_v2 }
0x1e7a   : > { %v5118_v9 = vpop.f32.mrf.mxu0 }
0x1e7b   : > { %4369 = vst.msk [vmem:[%s443_s22] sm:$0x1] %vm4368_vm3, %v4365_v26 }
0x1e7c   : > { %5213 = shalt.err (!%p5210_p3)
}
0x1e7d   : > { %s5214_s21 = scalar_lea.hbm %s6184_s27, 16  ;;  %s5218_s20 = scalar_lea.hbm %s6232_s13, 32 }
0x1e7e   : > { %p5215_p4 = scmp.ne.s32.totalorder %s6184_s27, %s5214_s21  ;;  %p5219_p9 = scmp.lt.s32.totalorder %s6184_s27, %s6232_s13 }
0x1e7f   : > { %p5220_p10 = scmp.lt.s32.totalorder %s5218_s20, %s5214_s21 }
0x1e80   : > { %p5216_p7 = pnand %p5215_p4, %p5373_p5 }
0x1e81   : > { %p5221_p11 = por %p5220_p10, %p5219_p9 }
0x1e82   : > { %p5217_p8 = pneg %p5216_p7 }
0x1e84   : > { %p5222_p12 = pnand %p5221_p11, %p5217_p8 }
0x1e86   : > { %5225 = shalt.err (!%p5222_p12)
}
0x1e87   : > { %5119 = dma.vmem_to_hbm [thread:$0]  (%p5373_p5), %s4384_s24, 16, %s6184_s27, %s4371_s23  }
0x1e88 PF: > { %p5125_p13 = scmp.ge.s32.totalorder %s5260_s28, 2  ;;  %s4395_s0 = sand.u32 1, %s5248_s25  }
0x1e89   : > { %s4396_s30 = scalar_lea.sflag [#allocation3], %s4395_s0 }
0x1e8a   : > { %p5122_p0 = pnand %p5125_p13, %p5377_p6 }
0x1e8c   : > { %p5123_p1 = pneg %p5122_p0 }
0x1e8e   : > { %5243 = dma.done.wait (%p5123_p1), %s4396_s30, 16  }
0x1e8f   : > { %5245 = vsyncadd (%p5123_p1), %s4396_s30, 4294967280  ;;  %s6246_s16 = sld [smem:[#allocation5_spill]]  ;;  %p23_p2 = scmp.ge.s32.totalorder %s5360_s14, 4  }
0x1e90   : > { %s6247_s27 = sld [smem:[#allocation6_spill]]  ;;  %s6248_s25 = smov %s5252_s26 }
0x1e91   : > { %s6250_s28 = smov %s5360_s14  ;;  %25 = sbr.rel (!%p23_p2) target bundleno = 5 (0x5), region = 110 }
0x1e95   : > { %s6249_s26 = smov %s6246_s16 }
0x1e96   :  { %4400 = vsyncpa [#allocation3], 1 }
0x1e97   :  { %4402 = vsyncpa [#allocation3 + $0x1], 1 }

</bundles_post_ra>
